<compile_context>
chip_gen: v7x
topology: tpu7x:2x2x1
jax: 0.10.0
libtpu: 0.0.40
codegen_flags: <defaults>
</compile_context>

<pallas_src>
import jax
import jax.numpy as jnp
from jax import lax
from jax.experimental import pallas as pl
from jax.experimental.pallas import tpu as pltpu


def _round_up(x, m):
    return (x + m - 1) // m * m


# ----------------------------- Pallas kernel -------------------------------- #

def make_encoder_kernel(*, T, B_pad, H, H_pad, nlayers, ndir, concat, return_last):
    """Fused encoder kernel. All loops are static (fully unrolled, T is small)."""
    GW = ndir * H_pad          # per-gate lane width; multiple of 128 by construction

    def kernel(x_ref, *refs):
        n_w = 4 * nlayers
        w_refs = refs[:n_w]
        out_ref = refs[n_w]
        gi_ref = refs[n_w + 1]                      # (T*B_pad, 3*GW) hoisted projections
        hist_ref = refs[n_w + 2]                    # (T*B_pad, GW)   step-ordered h history
        inter_ref = refs[n_w + 3] if nlayers > 1 else None

        # Direction-select masks (True on forward-direction lanes). Hoisted constants.
        if ndir == 2:
            lane1 = lax.broadcasted_iota(jnp.int32, (B_pad, GW), 1)
            mask1 = lane1 < H_pad
            mask3 = jnp.concatenate([lane1, lane1, lane1], axis=1) < H_pad

        x2d = x_ref[...]                            # (T*B_pad, D_0), row = t*B_pad + b

        for l in range(nlayers):
            wih_ref, bi_ref, whh_ref, bhn_ref = w_refs[4 * l:4 * l + 4]

            # Hoisted, direction-fused input projection: ONE MXU pass for all timesteps
            # and both directions; parked in VMEM so the recurrence never holds it live.
            gi_ref[...] = (jnp.dot(x2d, wih_ref[...],
                                   preferred_element_type=jnp.float32)
                           + bi_ref[...])

            # n-gate recurrent bias, broadcast ONCE per layer (r/z folded into b_i).
            bhn_b = jnp.broadcast_to(bhn_ref[...], (B_pad, GW))

            # Serial recurrence: one fused block-diagonal W_hh matmul per step drives
            # both directions at once.
            h = jnp.zeros((B_pad, GW), jnp.float32)
            for s in range(T):
                rf = s * B_pad                      # forward direction reads time s
                rb = (T - 1 - s) * B_pad            # backward direction reads time T-1-s
                gi_s = gi_ref[rf:rf + B_pad, :]
                if ndir == 2:
                    gi_s = jnp.where(mask3, gi_s, gi_ref[rb:rb + B_pad, :])
                gh = jnp.dot(h, whh_ref[...], preferred_element_type=jnp.float32)
                r = jax.nn.sigmoid(gi_s[:, 0:GW] + gh[:, 0:GW])
                z = jax.nn.sigmoid(gi_s[:, GW:2 * GW] + gh[:, GW:2 * GW])
                n = jnp.tanh(gi_s[:, 2 * GW:3 * GW] + r * (gh[:, 2 * GW:3 * GW] + bhn_b))
                h = (1.0 - z) * n + z * h
                # step-ordered history: unmasked full-tile store
                hist_ref[rf:rf + B_pad, :] = h

            out_idx = l if concat else 0
            write_out = concat or (l == nlayers - 1)
            c0 = out_idx * GW

            if return_last and write_out:
                out_ref[:, c0:c0 + GW] = h          # [h_fwd_final | h_bwd_final]

            # Re-time the step-ordered history into time order (bwd half comes from the
            # mirrored step) and emit lane-dense (8, 128k) stores -- off the serial chain.
            if (l < nlayers - 1) or ((not return_last) and write_out):
                for t in range(T):
                    blk = hist_ref[t * B_pad:(t + 1) * B_pad, :]
                    if ndir == 2:
                        rb2 = (T - 1 - t) * B_pad
                        blk = jnp.where(mask1, blk, hist_ref[rb2:rb2 + B_pad, :])
                    if l < nlayers - 1:
                        inter_ref[t * B_pad:(t + 1) * B_pad, :] = blk
                    if (not return_last) and write_out:
                        out_ref[t * B_pad:(t + 1) * B_pad, c0:c0 + GW] = blk

            if l < nlayers - 1:
                x2d = inter_ref[...]                # (T*B_pad, GW) next-layer input

    return kernel


# ------------------------------- wrapper ------------------------------------- #

def encoder_rnn_pallas(params, x, *, bidir, concat, return_last):
    """x: (B, T, input_size) batch_first (PyTorch convention). Eval mode."""
    B, T, D0 = x.shape
    H = params["num_units"]
    layers = params["layers"]
    nlayers = len(layers)
    ndir = 2 if bidir else 1

    B_pad = _round_up(B, 8)
    H_pad = _round_up(H, 128 // ndir)               # ndir * H_pad is a multiple of 128
    GW = ndir * H_pad

    # Padded, time-major input: row index = t*B_pad + b.
    x_p = jnp.zeros((T, B_pad, D0), jnp.float32)
    x_p = x_p.at[:, :B, :].set(jnp.transpose(x, (1, 0, 2)).astype(jnp.float32))
    x2d = x_p.reshape(T * B_pad, D0)

    inputs = [x2d]
    in_specs = [pl.BlockSpec((T * B_pad, D0), lambda i: (0, 0))]

    def add_input(arr):
        inputs.append(arr)
        nd = arr.ndim
        in_specs.append(pl.BlockSpec(arr.shape, lambda i, z=(0,) * nd: z))

    # Pack per-layer weights: gate-major, direction-interleaved columns
    #   [r_f r_b | z_f z_b | n_f n_b], each direction block H_pad lanes wide.
    # W_hh is block-diagonal over directions; b_hh(r,z) folded into the input bias.
    for li, layer in enumerate(layers):
        dirs = [layer["fwd"]] + ([layer["bwd"]] if bidir else [])
        if li == 0:
            D_pad = D0
            row_map = jnp.arange(D0)
        else:
            D_pad = GW
            row_map = jnp.concatenate([jnp.arange(H) + d * H_pad for d in range(ndir)])

        wih_f = jnp.zeros((D_pad, 3 * GW), jnp.float32)
        bi_f = jnp.zeros((1, 3 * GW), jnp.float32)
        whh_f = jnp.zeros((GW, 3 * GW), jnp.float32)
        bhn_f = jnp.zeros((1, GW), jnp.float32)
        for d, p in enumerate(dirs):
            wih = jnp.zeros((D_pad, 3 * H), jnp.float32).at[row_map].set(
                p["wih"].astype(jnp.float32))
            whh = p["whh"].astype(jnp.float32)
            bih = p["bih"].astype(jnp.float32)
            bhh = p["bhh"].astype(jnp.float32)
            r0 = d * H_pad
            for g in range(3):
                c0 = g * GW + d * H_pad
                wih_f = wih_f.at[:, c0:c0 + H].set(wih[:, g * H:(g + 1) * H])
                whh_f = whh_f.at[r0:r0 + H, c0:c0 + H].set(whh[:, g * H:(g + 1) * H])
                b = bih[:, g * H:(g + 1) * H]
                if g < 2:                            # fold b_hr / b_hz into input bias
                    b = b + bhh[:, g * H:(g + 1) * H]
                bi_f = bi_f.at[:, c0:c0 + H].set(b)
            bhn_f = bhn_f.at[:, r0:r0 + H].set(bhh[:, 2 * H:3 * H])
        for arr in (wih_f, bi_f, whh_f, bhn_f):
            add_input(arr)

    n_out = nlayers if concat else 1
    C_pad = n_out * GW
    if return_last:
        out_shape = jax.ShapeDtypeStruct((B_pad, C_pad), jnp.float32)
        out_spec = pl.BlockSpec((B_pad, C_pad), lambda i: (0, 0))
    else:
        out_shape = jax.ShapeDtypeStruct((T * B_pad, C_pad), jnp.float32)
        out_spec = pl.BlockSpec((T * B_pad, C_pad), lambda i: (0, 0))

    scratch = [pltpu.VMEM((T * B_pad, 3 * GW), jnp.float32),   # hoisted gi
               pltpu.VMEM((T * B_pad, GW), jnp.float32)]       # step-ordered h history
    if nlayers > 1:
        scratch.append(pltpu.VMEM((T * B_pad, GW), jnp.float32))  # inter-layer acts

    kernel = make_encoder_kernel(T=T, B_pad=B_pad, H=H, H_pad=H_pad,
                                 nlayers=nlayers, ndir=ndir,
                                 concat=concat, return_last=return_last)

    raw = pl.pallas_call(
        kernel,
        out_shape=out_shape,
        grid_spec=pltpu.PrefetchScalarGridSpec(
            num_scalar_prefetch=0,
            grid=(1,),                 # single invocation; time loop lives in-kernel
            in_specs=in_specs,
            out_specs=out_spec,
            scratch_shapes=scratch,
        ),
        compiler_params=pltpu.CompilerParams(
            dimension_semantics=("arbitrary",)),
    )(*inputs)

    # Layout plumbing back to the PyTorch convention (drops B / H padding).
    if return_last:
        out = raw.reshape(B_pad, n_out, ndir, H_pad)[:B, :, :, :H]
        return out.reshape(B, n_out * ndir * H)
    out = raw.reshape(T, B_pad, n_out, ndir, H_pad)[:, :B, :, :, :H]
    out = jnp.transpose(out, (1, 0, 2, 3, 4))
    return out.reshape(B, T, n_out * ndir * H)


# -------------------------- pure-JAX reference ------------------------------ #

def gru_direction_ref(x_tbd, wih, whh, bih, bhh, h0):
    H = h0.shape[-1]

    def step(h, x_t):
        gi = x_t @ wih + bih
        gh = h @ whh + bhh
        r = jax.nn.sigmoid(gi[:, :H] + gh[:, :H])
        z = jax.nn.sigmoid(gi[:, H:2 * H] + gh[:, H:2 * H])
        n = jnp.tanh(gi[:, 2 * H:] + r * gh[:, 2 * H:])
        h_new = (1.0 - z) * n + z * h
        return h_new, h_new

    _, ys = jax.lax.scan(step, h0, x_tbd)
    return ys


def encoder_rnn_ref(params, x, *, bidir, concat, return_last):
    B, T, _ = x.shape
    H = params["num_units"]
    output = x
    outputs = []
    for layer in params["layers"]:
        x_tbd = jnp.transpose(output, (1, 0, 2)).astype(jnp.float32)  # (T, B, D)
        h0 = jnp.zeros((B, H), jnp.float32)                           # init_hidden is zeros

        f = layer["fwd"]
        fwd = gru_direction_ref(x_tbd, f["wih"], f["whh"], f["bih"], f["bhh"], h0)
        if bidir:
            b = layer["bwd"]
            bwd_rev = gru_direction_ref(x_tbd[::-1], b["wih"], b["whh"], b["bih"], b["bhh"], h0)
            bwd = bwd_rev[::-1]
            out_tbh = jnp.concatenate([fwd, bwd], axis=-1)
            hidden = jnp.stack([fwd[-1], bwd_rev[-1]], axis=0)
        else:
            out_tbh = fwd
            hidden = fwd[-1][None]

        output = jnp.transpose(out_tbh, (1, 0, 2))                    # (B, T, dirs*H)
        if return_last:
            outputs.append(jnp.transpose(hidden, (1, 0, 2)).reshape(B, -1))
        else:
            outputs.append(output)

    if concat:
        return jnp.concatenate(outputs, axis=-1)
    return outputs[-1]


# ------------------------------ params glue ---------------------------------- #

def make_gru_dir_params(key, input_size, hidden_size):
    k1, k2, k3, k4 = jax.random.split(key, 4)
    return dict(
        wih=0.1 * jax.random.normal(k1, (input_size, 3 * hidden_size), jnp.float32),
        whh=0.1 * jax.random.normal(k2, (hidden_size, 3 * hidden_size), jnp.float32),
        bih=0.01 * jax.random.normal(k3, (1, 3 * hidden_size), jnp.float32),
        bhh=0.01 * jax.random.normal(k4, (1, 3 * hidden_size), jnp.float32),
    )


def make_encoder_params(key, input_size, num_units, nlayers, bidir):
    layers = []
    for i in range(nlayers):
        in_sz = input_size if i == 0 else (num_units * 2 if bidir else num_units)
        key, kf, kb = jax.random.split(key, 3)
        layer = {"fwd": make_gru_dir_params(kf, in_sz, num_units)}
        if bidir:
            layer["bwd"] = make_gru_dir_params(kb, in_sz, num_units)
        layers.append(layer)
    return {"layers": layers, "num_units": num_units}


# --------------------------------- main --------------------------------------- #

if __name__ == "__main__":
    key = jax.random.PRNGKey(0)
    B, T = 2, 8
    input_size, num_units, nlayers = 16, 32, 2

    kp, kp1, kx = jax.random.split(key, 3)
    params_bi = make_encoder_params(kp, input_size, num_units, nlayers, bidir=True)
    params_uni = make_encoder_params(kp1, input_size, num_units, nlayers, bidir=False)
    x = jax.random.normal(kx, (B, T, input_size), jnp.float32)

    # bidir, concat=True, return_last=False -> (B, T, nlayers*2*H)
    out = jax.block_until_ready(
        encoder_rnn_pallas(params_bi, x, bidir=True, concat=True, return_last=False))
    ref = jax.block_until_ready(
        encoder_rnn_ref(params_bi, x, bidir=True, concat=True, return_last=False))
    assert out.shape == (B, T, nlayers * 2 * num_units), out.shape
    assert jnp.allclose(out, ref, atol=1e-3, rtol=1e-3), \
        float(jnp.max(jnp.abs(out - ref)))

    # bidir, concat=True, return_last=True -> (B, nlayers*2*H) final hidden states
    out2 = jax.block_until_ready(
        encoder_rnn_pallas(params_bi, x, bidir=True, concat=True, return_last=True))
    ref2 = jax.block_until_ready(
        encoder_rnn_ref(params_bi, x, bidir=True, concat=True, return_last=True))
    assert out2.shape == (B, nlayers * 2 * num_units), out2.shape
    assert jnp.allclose(out2, ref2, atol=1e-3, rtol=1e-3), \
        float(jnp.max(jnp.abs(out2 - ref2)))

    # unidirectional, concat=True, return_last=False -> (B, T, nlayers*H)
    out3 = jax.block_until_ready(
        encoder_rnn_pallas(params_uni, x, bidir=False, concat=True, return_last=False))
    ref3 = jax.block_until_ready(
        encoder_rnn_ref(params_uni, x, bidir=False, concat=True, return_last=False))
    assert out3.shape == (B, T, nlayers * num_units), out3.shape
    assert jnp.allclose(out3, ref3, atol=1e-3, rtol=1e-3), \
        float(jnp.max(jnp.abs(out3 - ref3)))

    print("KERNEL_OK")
</pallas_src>

<mosaic_0001>
module attributes {stable_mosaic.version = 11 : i64} {
  func.func @kernel(%arg0: i32, %arg1: memref<64x16xf32, #tpu.memory_space<vmem>>, %arg2: memref<16x384xf32, #tpu.memory_space<vmem>>, %arg3: memref<1x384xf32, #tpu.memory_space<vmem>>, %arg4: memref<128x384xf32, #tpu.memory_space<vmem>>, %arg5: memref<1x128xf32, #tpu.memory_space<vmem>>, %arg6: memref<128x384xf32, #tpu.memory_space<vmem>>, %arg7: memref<1x384xf32, #tpu.memory_space<vmem>>, %arg8: memref<128x384xf32, #tpu.memory_space<vmem>>, %arg9: memref<1x128xf32, #tpu.memory_space<vmem>>, %arg10: memref<64x256xf32, #tpu.memory_space<vmem>>, %arg11: memref<64x384xf32, #tpu.memory_space<vmem>>, %arg12: memref<64x128xf32, #tpu.memory_space<vmem>>, %arg13: memref<64x128xf32, #tpu.memory_space<vmem>>) attributes {dimension_semantics = [#tpu.dimension_semantics<arbitrary>], iteration_bounds = array<i64: 1>, scalar_prefetch = 0 : i64, scratch_operands = 3 : i64, tpu.core_type = #tpu.core_type<tc>, window_params = [{pipeline_mode = #tpu.pipeline_mode<synchronous>, transform_indices = @transform_0, window_bounds = array<i64: 64, 16>}, {pipeline_mode = #tpu.pipeline_mode<synchronous>, transform_indices = @transform_1, window_bounds = array<i64: 16, 384>}, {pipeline_mode = #tpu.pipeline_mode<synchronous>, transform_indices = @transform_2, window_bounds = array<i64: 1, 384>}, {pipeline_mode = #tpu.pipeline_mode<synchronous>, transform_indices = @transform_3, window_bounds = array<i64: 128, 384>}, {pipeline_mode = #tpu.pipeline_mode<synchronous>, transform_indices = @transform_4, window_bounds = array<i64: 1, 128>}, {pipeline_mode = #tpu.pipeline_mode<synchronous>, transform_indices = @transform_5, window_bounds = array<i64: 128, 384>}, {pipeline_mode = #tpu.pipeline_mode<synchronous>, transform_indices = @transform_6, window_bounds = array<i64: 1, 384>}, {pipeline_mode = #tpu.pipeline_mode<synchronous>, transform_indices = @transform_7, window_bounds = array<i64: 128, 384>}, {pipeline_mode = #tpu.pipeline_mode<synchronous>, transform_indices = @transform_8, window_bounds = array<i64: 1, 128>}, {pipeline_mode = #tpu.pipeline_mode<synchronous>, transform_indices = @transform_9, window_bounds = array<i64: 64, 256>}]} {
    %0 = tpu.iota {dimensions = array<i32: 1>} : vector<8x128xi32>
    %c64_i32 = arith.constant 64 : i32
    %1 = vector.broadcast %c64_i32 : i32 to vector<8x128xi32>
    %2 = arith.cmpi slt, %0, %1 : vector<8x128xi32>
    %3 = tpu.concatenate %0, %0, %0 in 1 : vector<8x128xi32>, vector<8x128xi32>, vector<8x128xi32> -> vector<8x384xi32>
    %c64_i32_0 = arith.constant 64 : i32
    %4 = vector.broadcast %c64_i32_0 : i32 to vector<8x384xi32>
    %5 = arith.cmpi slt, %3, %4 : vector<8x384xi32>
    %c0 = arith.constant 0 : index
    %c0_1 = arith.constant 0 : index
    %6 = vector.load %arg1[%c0, %c0_1] : memref<64x16xf32, #tpu.memory_space<vmem>>, vector<64x16xf32>
    %c0_2 = arith.constant 0 : index
    %c0_3 = arith.constant 0 : index
    %7 = vector.load %arg2[%c0_2, %c0_3] : memref<16x384xf32, #tpu.memory_space<vmem>>, vector<16x384xf32>
    %cst = arith.constant dense<0.000000e+00> : vector<64x384xf32>
    %8 = tpu.matmul %6, %7, %cst {dimension_numbers = #tpu.dot_dimension_numbers<[1], [0], [0], [1], [0, 0, 1, 1], [], []>} : vector<64x16xf32>, vector<16x384xf32>, vector<64x384xf32> -> vector<64x384xf32>
    %c0_4 = arith.constant 0 : index
    %c0_5 = arith.constant 0 : index
    %9 = vector.load %arg3[%c0_4, %c0_5] : memref<1x384xf32, #tpu.memory_space<vmem>>, vector<1x384xf32>
    %10 = vector.broadcast %9 : vector<1x384xf32> to vector<64x384xf32>
    %11 = arith.addf %8, %10 : vector<64x384xf32>
    %c0_6 = arith.constant 0 : index
    %c0_7 = arith.constant 0 : index
    %12 = vector.load %arg11[%c0_6, %c0_7] : memref<64x384xf32, #tpu.memory_space<vmem>>, vector<64x384xf32>
    tpu.vector_store %arg11[%c0_6, %c0_7], %11 {strides = array<i32>} : memref<64x384xf32, #tpu.memory_space<vmem>>, vector<64x384xf32>,
    %c0_8 = arith.constant 0 : index
    %c0_9 = arith.constant 0 : index
    %13 = vector.load %arg5[%c0_8, %c0_9] : memref<1x128xf32, #tpu.memory_space<vmem>>, vector<1x128xf32>
    %14 = vector.shape_cast %13 : vector<1x128xf32> to vector<1x128xf32>
    %15 = vector.broadcast %14 : vector<1x128xf32> to vector<8x128xf32>
    %cst_10 = arith.constant 0.000000e+00 : f32
    %16 = vector.broadcast %cst_10 : f32 to vector<8x128xf32>
    %c0_11 = arith.constant 0 : index
    %c0_12 = arith.constant 0 : index
    %17 = vector.load %arg11[%c0_11, %c0_12] : memref<64x384xf32, #tpu.memory_space<vmem>>, vector<8x384xf32>
    %c56 = arith.constant 56 : index
    %c0_13 = arith.constant 0 : index
    %18 = vector.load %arg11[%c56, %c0_13] : memref<64x384xf32, #tpu.memory_space<vmem>>, vector<8x384xf32>
    %19 = arith.select %5, %17, %18 : vector<8x384xi1>, vector<8x384xf32>
    %c0_14 = arith.constant 0 : index
    %c0_15 = arith.constant 0 : index
    %20 = vector.load %arg4[%c0_14, %c0_15] : memref<128x384xf32, #tpu.memory_space<vmem>>, vector<128x384xf32>
    %cst_16 = arith.constant dense<0.000000e+00> : vector<8x384xf32>
    %21 = tpu.matmul %16, %20, %cst_16 {dimension_numbers = #tpu.dot_dimension_numbers<[1], [0], [0], [1], [0, 0, 1, 1], [], []>} : vector<8x128xf32>, vector<128x384xf32>, vector<8x384xf32> -> vector<8x384xf32>
    %22 = vector.extract_strided_slice %19 {offsets = [0, 0], sizes = [8, 128], strides = [1, 1]} : vector<8x384xf32> to vector<8x128xf32>
    %23 = vector.extract_strided_slice %21 {offsets = [0, 0], sizes = [8, 128], strides = [1, 1]} : vector<8x384xf32> to vector<8x128xf32>
    %24 = arith.addf %22, %23 : vector<8x128xf32>
    %25 = arith.negf %24 : vector<8x128xf32>
    %26 = math.exp %25 : vector<8x128xf32>
    %cst_17 = arith.constant 1.000000e+00 : f32
    %27 = vector.broadcast %cst_17 : f32 to vector<8x128xf32>
    %28 = arith.addf %27, %26 : vector<8x128xf32>
    %29 = arith.divf %27, %28 : vector<8x128xf32>
    %30 = vector.extract_strided_slice %19 {offsets = [0, 128], sizes = [8, 128], strides = [1, 1]} : vector<8x384xf32> to vector<8x128xf32>
    %31 = vector.extract_strided_slice %21 {offsets = [0, 128], sizes = [8, 128], strides = [1, 1]} : vector<8x384xf32> to vector<8x128xf32>
    %32 = arith.addf %30, %31 : vector<8x128xf32>
    %33 = arith.negf %32 : vector<8x128xf32>
    %34 = math.exp %33 : vector<8x128xf32>
    %cst_18 = arith.constant 1.000000e+00 : f32
    %35 = vector.broadcast %cst_18 : f32 to vector<8x128xf32>
    %36 = arith.addf %35, %34 : vector<8x128xf32>
    %37 = arith.divf %35, %36 : vector<8x128xf32>
    %38 = vector.extract_strided_slice %19 {offsets = [0, 256], sizes = [8, 128], strides = [1, 1]} : vector<8x384xf32> to vector<8x128xf32>
    %39 = vector.extract_strided_slice %21 {offsets = [0, 256], sizes = [8, 128], strides = [1, 1]} : vector<8x384xf32> to vector<8x128xf32>
    %40 = arith.addf %39, %15 : vector<8x128xf32>
    %41 = arith.mulf %29, %40 : vector<8x128xf32>
    %42 = arith.addf %38, %41 : vector<8x128xf32>
    %43 = math.tanh %42 : vector<8x128xf32>
    %cst_19 = arith.constant 1.000000e+00 : f32
    %44 = vector.broadcast %cst_19 : f32 to vector<8x128xf32>
    %45 = arith.subf %44, %37 : vector<8x128xf32>
    %46 = arith.mulf %45, %43 : vector<8x128xf32>
    %47 = arith.mulf %37, %16 : vector<8x128xf32>
    %48 = arith.addf %46, %47 : vector<8x128xf32>
    %c0_20 = arith.constant 0 : index
    %c0_21 = arith.constant 0 : index
    %49 = vector.load %arg12[%c0_20, %c0_21] : memref<64x128xf32, #tpu.memory_space<vmem>>, vector<8x128xf32>
    tpu.vector_store %arg12[%c0_20, %c0_21], %48 {strides = array<i32>} : memref<64x128xf32, #tpu.memory_space<vmem>>, vector<8x128xf32>,
    %c8 = arith.constant 8 : index
    %c0_22 = arith.constant 0 : index
    %50 = vector.load %arg11[%c8, %c0_22] : memref<64x384xf32, #tpu.memory_space<vmem>>, vector<8x384xf32>
    %c48 = arith.constant 48 : index
    %c0_23 = arith.constant 0 : index
    %51 = vector.load %arg11[%c48, %c0_23] : memref<64x384xf32, #tpu.memory_space<vmem>>, vector<8x384xf32>
    %52 = arith.select %5, %50, %51 : vector<8x384xi1>, vector<8x384xf32>
    %c0_24 = arith.constant 0 : index
    %c0_25 = arith.constant 0 : index
    %53 = vector.load %arg4[%c0_24, %c0_25] : memref<128x384xf32, #tpu.memory_space<vmem>>, vector<128x384xf32>
    %cst_26 = arith.constant dense<0.000000e+00> : vector<8x384xf32>
    %54 = tpu.matmul %48, %53, %cst_26 {dimension_numbers = #tpu.dot_dimension_numbers<[1], [0], [0], [1], [0, 0, 1, 1], [], []>} : vector<8x128xf32>, vector<128x384xf32>, vector<8x384xf32> -> vector<8x384xf32>
    %55 = vector.extract_strided_slice %52 {offsets = [0, 0], sizes = [8, 128], strides = [1, 1]} : vector<8x384xf32> to vector<8x128xf32>
    %56 = vector.extract_strided_slice %54 {offsets = [0, 0], sizes = [8, 128], strides = [1, 1]} : vector<8x384xf32> to vector<8x128xf32>
    %57 = arith.addf %55, %56 : vector<8x128xf32>
    %58 = arith.negf %57 : vector<8x128xf32>
    %59 = math.exp %58 : vector<8x128xf32>
    %cst_27 = arith.constant 1.000000e+00 : f32
    %60 = vector.broadcast %cst_27 : f32 to vector<8x128xf32>
    %61 = arith.addf %60, %59 : vector<8x128xf32>
    %62 = arith.divf %60, %61 : vector<8x128xf32>
    %63 = vector.extract_strided_slice %52 {offsets = [0, 128], sizes = [8, 128], strides = [1, 1]} : vector<8x384xf32> to vector<8x128xf32>
    %64 = vector.extract_strided_slice %54 {offsets = [0, 128], sizes = [8, 128], strides = [1, 1]} : vector<8x384xf32> to vector<8x128xf32>
    %65 = arith.addf %63, %64 : vector<8x128xf32>
    %66 = arith.negf %65 : vector<8x128xf32>
    %67 = math.exp %66 : vector<8x128xf32>
    %cst_28 = arith.constant 1.000000e+00 : f32
    %68 = vector.broadcast %cst_28 : f32 to vector<8x128xf32>
    %69 = arith.addf %68, %67 : vector<8x128xf32>
    %70 = arith.divf %68, %69 : vector<8x128xf32>
    %71 = vector.extract_strided_slice %52 {offsets = [0, 256], sizes = [8, 128], strides = [1, 1]} : vector<8x384xf32> to vector<8x128xf32>
    %72 = vector.extract_strided_slice %54 {offsets = [0, 256], sizes = [8, 128], strides = [1, 1]} : vector<8x384xf32> to vector<8x128xf32>
    %73 = arith.addf %72, %15 : vector<8x128xf32>
    %74 = arith.mulf %62, %73 : vector<8x128xf32>
    %75 = arith.addf %71, %74 : vector<8x128xf32>
    %76 = math.tanh %75 : vector<8x128xf32>
    %cst_29 = arith.constant 1.000000e+00 : f32
    %77 = vector.broadcast %cst_29 : f32 to vector<8x128xf32>
    %78 = arith.subf %77, %70 : vector<8x128xf32>
    %79 = arith.mulf %78, %76 : vector<8x128xf32>
    %80 = arith.mulf %70, %48 : vector<8x128xf32>
    %81 = arith.addf %79, %80 : vector<8x128xf32>
    %c8_30 = arith.constant 8 : index
    %c0_31 = arith.constant 0 : index
    %82 = vector.load %arg12[%c8_30, %c0_31] : memref<64x128xf32, #tpu.memory_space<vmem>>, vector<8x128xf32>
    tpu.vector_store %arg12[%c8_30, %c0_31], %81 {strides = array<i32>} : memref<64x128xf32, #tpu.memory_space<vmem>>, vector<8x128xf32>,
    %c16 = arith.constant 16 : index
    %c0_32 = arith.constant 0 : index
    %83 = vector.load %arg11[%c16, %c0_32] : memref<64x384xf32, #tpu.memory_space<vmem>>, vector<8x384xf32>
    %c40 = arith.constant 40 : index
    %c0_33 = arith.constant 0 : index
    %84 = vector.load %arg11[%c40, %c0_33] : memref<64x384xf32, #tpu.memory_space<vmem>>, vector<8x384xf32>
    %85 = arith.select %5, %83, %84 : vector<8x384xi1>, vector<8x384xf32>
    %c0_34 = arith.constant 0 : index
    %c0_35 = arith.constant 0 : index
    %86 = vector.load %arg4[%c0_34, %c0_35] : memref<128x384xf32, #tpu.memory_space<vmem>>, vector<128x384xf32>
    %cst_36 = arith.constant dense<0.000000e+00> : vector<8x384xf32>
    %87 = tpu.matmul %81, %86, %cst_36 {dimension_numbers = #tpu.dot_dimension_numbers<[1], [0], [0], [1], [0, 0, 1, 1], [], []>} : vector<8x128xf32>, vector<128x384xf32>, vector<8x384xf32> -> vector<8x384xf32>
    %88 = vector.extract_strided_slice %85 {offsets = [0, 0], sizes = [8, 128], strides = [1, 1]} : vector<8x384xf32> to vector<8x128xf32>
    %89 = vector.extract_strided_slice %87 {offsets = [0, 0], sizes = [8, 128], strides = [1, 1]} : vector<8x384xf32> to vector<8x128xf32>
    %90 = arith.addf %88, %89 : vector<8x128xf32>
    %91 = arith.negf %90 : vector<8x128xf32>
    %92 = math.exp %91 : vector<8x128xf32>
    %cst_37 = arith.constant 1.000000e+00 : f32
    %93 = vector.broadcast %cst_37 : f32 to vector<8x128xf32>
    %94 = arith.addf %93, %92 : vector<8x128xf32>
    %95 = arith.divf %93, %94 : vector<8x128xf32>
    %96 = vector.extract_strided_slice %85 {offsets = [0, 128], sizes = [8, 128], strides = [1, 1]} : vector<8x384xf32> to vector<8x128xf32>
    %97 = vector.extract_strided_slice %87 {offsets = [0, 128], sizes = [8, 128], strides = [1, 1]} : vector<8x384xf32> to vector<8x128xf32>
    %98 = arith.addf %96, %97 : vector<8x128xf32>
    %99 = arith.negf %98 : vector<8x128xf32>
    %100 = math.exp %99 : vector<8x128xf32>
    %cst_38 = arith.constant 1.000000e+00 : f32
    %101 = vector.broadcast %cst_38 : f32 to vector<8x128xf32>
    %102 = arith.addf %101, %100 : vector<8x128xf32>
    %103 = arith.divf %101, %102 : vector<8x128xf32>
    %104 = vector.extract_strided_slice %85 {offsets = [0, 256], sizes = [8, 128], strides = [1, 1]} : vector<8x384xf32> to vector<8x128xf32>
    %105 = vector.extract_strided_slice %87 {offsets = [0, 256], sizes = [8, 128], strides = [1, 1]} : vector<8x384xf32> to vector<8x128xf32>
    %106 = arith.addf %105, %15 : vector<8x128xf32>
    %107 = arith.mulf %95, %106 : vector<8x128xf32>
    %108 = arith.addf %104, %107 : vector<8x128xf32>
    %109 = math.tanh %108 : vector<8x128xf32>
    %cst_39 = arith.constant 1.000000e+00 : f32
    %110 = vector.broadcast %cst_39 : f32 to vector<8x128xf32>
    %111 = arith.subf %110, %103 : vector<8x128xf32>
    %112 = arith.mulf %111, %109 : vector<8x128xf32>
    %113 = arith.mulf %103, %81 : vector<8x128xf32>
    %114 = arith.addf %112, %113 : vector<8x128xf32>
    %c16_40 = arith.constant 16 : index
    %c0_41 = arith.constant 0 : index
    %115 = vector.load %arg12[%c16_40, %c0_41] : memref<64x128xf32, #tpu.memory_space<vmem>>, vector<8x128xf32>
    tpu.vector_store %arg12[%c16_40, %c0_41], %114 {strides = array<i32>} : memref<64x128xf32, #tpu.memory_space<vmem>>, vector<8x128xf32>,
    %c24 = arith.constant 24 : index
    %c0_42 = arith.constant 0 : index
    %116 = vector.load %arg11[%c24, %c0_42] : memref<64x384xf32, #tpu.memory_space<vmem>>, vector<8x384xf32>
    %c32 = arith.constant 32 : index
    %c0_43 = arith.constant 0 : index
    %117 = vector.load %arg11[%c32, %c0_43] : memref<64x384xf32, #tpu.memory_space<vmem>>, vector<8x384xf32>
    %118 = arith.select %5, %116, %117 : vector<8x384xi1>, vector<8x384xf32>
    %c0_44 = arith.constant 0 : index
    %c0_45 = arith.constant 0 : index
    %119 = vector.load %arg4[%c0_44, %c0_45] : memref<128x384xf32, #tpu.memory_space<vmem>>, vector<128x384xf32>
    %cst_46 = arith.constant dense<0.000000e+00> : vector<8x384xf32>
    %120 = tpu.matmul %114, %119, %cst_46 {dimension_numbers = #tpu.dot_dimension_numbers<[1], [0], [0], [1], [0, 0, 1, 1], [], []>} : vector<8x128xf32>, vector<128x384xf32>, vector<8x384xf32> -> vector<8x384xf32>
    %121 = vector.extract_strided_slice %118 {offsets = [0, 0], sizes = [8, 128], strides = [1, 1]} : vector<8x384xf32> to vector<8x128xf32>
    %122 = vector.extract_strided_slice %120 {offsets = [0, 0], sizes = [8, 128], strides = [1, 1]} : vector<8x384xf32> to vector<8x128xf32>
    %123 = arith.addf %121, %122 : vector<8x128xf32>
    %124 = arith.negf %123 : vector<8x128xf32>
    %125 = math.exp %124 : vector<8x128xf32>
    %cst_47 = arith.constant 1.000000e+00 : f32
    %126 = vector.broadcast %cst_47 : f32 to vector<8x128xf32>
    %127 = arith.addf %126, %125 : vector<8x128xf32>
    %128 = arith.divf %126, %127 : vector<8x128xf32>
    %129 = vector.extract_strided_slice %118 {offsets = [0, 128], sizes = [8, 128], strides = [1, 1]} : vector<8x384xf32> to vector<8x128xf32>
    %130 = vector.extract_strided_slice %120 {offsets = [0, 128], sizes = [8, 128], strides = [1, 1]} : vector<8x384xf32> to vector<8x128xf32>
    %131 = arith.addf %129, %130 : vector<8x128xf32>
    %132 = arith.negf %131 : vector<8x128xf32>
    %133 = math.exp %132 : vector<8x128xf32>
    %cst_48 = arith.constant 1.000000e+00 : f32
    %134 = vector.broadcast %cst_48 : f32 to vector<8x128xf32>
    %135 = arith.addf %134, %133 : vector<8x128xf32>
    %136 = arith.divf %134, %135 : vector<8x128xf32>
    %137 = vector.extract_strided_slice %118 {offsets = [0, 256], sizes = [8, 128], strides = [1, 1]} : vector<8x384xf32> to vector<8x128xf32>
    %138 = vector.extract_strided_slice %120 {offsets = [0, 256], sizes = [8, 128], strides = [1, 1]} : vector<8x384xf32> to vector<8x128xf32>
    %139 = arith.addf %138, %15 : vector<8x128xf32>
    %140 = arith.mulf %128, %139 : vector<8x128xf32>
    %141 = arith.addf %137, %140 : vector<8x128xf32>
    %142 = math.tanh %141 : vector<8x128xf32>
    %cst_49 = arith.constant 1.000000e+00 : f32
    %143 = vector.broadcast %cst_49 : f32 to vector<8x128xf32>
    %144 = arith.subf %143, %136 : vector<8x128xf32>
    %145 = arith.mulf %144, %142 : vector<8x128xf32>
    %146 = arith.mulf %136, %114 : vector<8x128xf32>
    %147 = arith.addf %145, %146 : vector<8x128xf32>
    %c24_50 = arith.constant 24 : index
    %c0_51 = arith.constant 0 : index
    %148 = vector.load %arg12[%c24_50, %c0_51] : memref<64x128xf32, #tpu.memory_space<vmem>>, vector<8x128xf32>
    tpu.vector_store %arg12[%c24_50, %c0_51], %147 {strides = array<i32>} : memref<64x128xf32, #tpu.memory_space<vmem>>, vector<8x128xf32>,
    %c32_52 = arith.constant 32 : index
    %c0_53 = arith.constant 0 : index
    %149 = vector.load %arg11[%c32_52, %c0_53] : memref<64x384xf32, #tpu.memory_space<vmem>>, vector<8x384xf32>
    %c24_54 = arith.constant 24 : index
    %c0_55 = arith.constant 0 : index
    %150 = vector.load %arg11[%c24_54, %c0_55] : memref<64x384xf32, #tpu.memory_space<vmem>>, vector<8x384xf32>
    %151 = arith.select %5, %149, %150 : vector<8x384xi1>, vector<8x384xf32>
    %c0_56 = arith.constant 0 : index
    %c0_57 = arith.constant 0 : index
    %152 = vector.load %arg4[%c0_56, %c0_57] : memref<128x384xf32, #tpu.memory_space<vmem>>, vector<128x384xf32>
    %cst_58 = arith.constant dense<0.000000e+00> : vector<8x384xf32>
    %153 = tpu.matmul %147, %152, %cst_58 {dimension_numbers = #tpu.dot_dimension_numbers<[1], [0], [0], [1], [0, 0, 1, 1], [], []>} : vector<8x128xf32>, vector<128x384xf32>, vector<8x384xf32> -> vector<8x384xf32>
    %154 = vector.extract_strided_slice %151 {offsets = [0, 0], sizes = [8, 128], strides = [1, 1]} : vector<8x384xf32> to vector<8x128xf32>
    %155 = vector.extract_strided_slice %153 {offsets = [0, 0], sizes = [8, 128], strides = [1, 1]} : vector<8x384xf32> to vector<8x128xf32>
    %156 = arith.addf %154, %155 : vector<8x128xf32>
    %157 = arith.negf %156 : vector<8x128xf32>
    %158 = math.exp %157 : vector<8x128xf32>
    %cst_59 = arith.constant 1.000000e+00 : f32
    %159 = vector.broadcast %cst_59 : f32 to vector<8x128xf32>
    %160 = arith.addf %159, %158 : vector<8x128xf32>
    %161 = arith.divf %159, %160 : vector<8x128xf32>
    %162 = vector.extract_strided_slice %151 {offsets = [0, 128], sizes = [8, 128], strides = [1, 1]} : vector<8x384xf32> to vector<8x128xf32>
    %163 = vector.extract_strided_slice %153 {offsets = [0, 128], sizes = [8, 128], strides = [1, 1]} : vector<8x384xf32> to vector<8x128xf32>
    %164 = arith.addf %162, %163 : vector<8x128xf32>
    %165 = arith.negf %164 : vector<8x128xf32>
    %166 = math.exp %165 : vector<8x128xf32>
    %cst_60 = arith.constant 1.000000e+00 : f32
    %167 = vector.broadcast %cst_60 : f32 to vector<8x128xf32>
    %168 = arith.addf %167, %166 : vector<8x128xf32>
    %169 = arith.divf %167, %168 : vector<8x128xf32>
    %170 = vector.extract_strided_slice %151 {offsets = [0, 256], sizes = [8, 128], strides = [1, 1]} : vector<8x384xf32> to vector<8x128xf32>
    %171 = vector.extract_strided_slice %153 {offsets = [0, 256], sizes = [8, 128], strides = [1, 1]} : vector<8x384xf32> to vector<8x128xf32>
    %172 = arith.addf %171, %15 : vector<8x128xf32>
    %173 = arith.mulf %161, %172 : vector<8x128xf32>
    %174 = arith.addf %170, %173 : vector<8x128xf32>
    %175 = math.tanh %174 : vector<8x128xf32>
    %cst_61 = arith.constant 1.000000e+00 : f32
    %176 = vector.broadcast %cst_61 : f32 to vector<8x128xf32>
    %177 = arith.subf %176, %169 : vector<8x128xf32>
    %178 = arith.mulf %177, %175 : vector<8x128xf32>
    %179 = arith.mulf %169, %147 : vector<8x128xf32>
    %180 = arith.addf %178, %179 : vector<8x128xf32>
    %c32_62 = arith.constant 32 : index
    %c0_63 = arith.constant 0 : index
    %181 = vector.load %arg12[%c32_62, %c0_63] : memref<64x128xf32, #tpu.memory_space<vmem>>, vector<8x128xf32>
    tpu.vector_store %arg12[%c32_62, %c0_63], %180 {strides = array<i32>} : memref<64x128xf32, #tpu.memory_space<vmem>>, vector<8x128xf32>,
    %c40_64 = arith.constant 40 : index
    %c0_65 = arith.constant 0 : index
    %182 = vector.load %arg11[%c40_64, %c0_65] : memref<64x384xf32, #tpu.memory_space<vmem>>, vector<8x384xf32>
    %c16_66 = arith.constant 16 : index
    %c0_67 = arith.constant 0 : index
    %183 = vector.load %arg11[%c16_66, %c0_67] : memref<64x384xf32, #tpu.memory_space<vmem>>, vector<8x384xf32>
    %184 = arith.select %5, %182, %183 : vector<8x384xi1>, vector<8x384xf32>
    %c0_68 = arith.constant 0 : index
    %c0_69 = arith.constant 0 : index
    %185 = vector.load %arg4[%c0_68, %c0_69] : memref<128x384xf32, #tpu.memory_space<vmem>>, vector<128x384xf32>
    %cst_70 = arith.constant dense<0.000000e+00> : vector<8x384xf32>
    %186 = tpu.matmul %180, %185, %cst_70 {dimension_numbers = #tpu.dot_dimension_numbers<[1], [0], [0], [1], [0, 0, 1, 1], [], []>} : vector<8x128xf32>, vector<128x384xf32>, vector<8x384xf32> -> vector<8x384xf32>
    %187 = vector.extract_strided_slice %184 {offsets = [0, 0], sizes = [8, 128], strides = [1, 1]} : vector<8x384xf32> to vector<8x128xf32>
    %188 = vector.extract_strided_slice %186 {offsets = [0, 0], sizes = [8, 128], strides = [1, 1]} : vector<8x384xf32> to vector<8x128xf32>
    %189 = arith.addf %187, %188 : vector<8x128xf32>
    %190 = arith.negf %189 : vector<8x128xf32>
    %191 = math.exp %190 : vector<8x128xf32>
    %cst_71 = arith.constant 1.000000e+00 : f32
    %192 = vector.broadcast %cst_71 : f32 to vector<8x128xf32>
    %193 = arith.addf %192, %191 : vector<8x128xf32>
    %194 = arith.divf %192, %193 : vector<8x128xf32>
    %195 = vector.extract_strided_slice %184 {offsets = [0, 128], sizes = [8, 128], strides = [1, 1]} : vector<8x384xf32> to vector<8x128xf32>
    %196 = vector.extract_strided_slice %186 {offsets = [0, 128], sizes = [8, 128], strides = [1, 1]} : vector<8x384xf32> to vector<8x128xf32>
    %197 = arith.addf %195, %196 : vector<8x128xf32>
    %198 = arith.negf %197 : vector<8x128xf32>
    %199 = math.exp %198 : vector<8x128xf32>
    %cst_72 = arith.constant 1.000000e+00 : f32
    %200 = vector.broadcast %cst_72 : f32 to vector<8x128xf32>
    %201 = arith.addf %200, %199 : vector<8x128xf32>
    %202 = arith.divf %200, %201 : vector<8x128xf32>
    %203 = vector.extract_strided_slice %184 {offsets = [0, 256], sizes = [8, 128], strides = [1, 1]} : vector<8x384xf32> to vector<8x128xf32>
    %204 = vector.extract_strided_slice %186 {offsets = [0, 256], sizes = [8, 128], strides = [1, 1]} : vector<8x384xf32> to vector<8x128xf32>
    %205 = arith.addf %204, %15 : vector<8x128xf32>
    %206 = arith.mulf %194, %205 : vector<8x128xf32>
    %207 = arith.addf %203, %206 : vector<8x128xf32>
    %208 = math.tanh %207 : vector<8x128xf32>
    %cst_73 = arith.constant 1.000000e+00 : f32
    %209 = vector.broadcast %cst_73 : f32 to vector<8x128xf32>
    %210 = arith.subf %209, %202 : vector<8x128xf32>
    %211 = arith.mulf %210, %208 : vector<8x128xf32>
    %212 = arith.mulf %202, %180 : vector<8x128xf32>
    %213 = arith.addf %211, %212 : vector<8x128xf32>
    %c40_74 = arith.constant 40 : index
    %c0_75 = arith.constant 0 : index
    %214 = vector.load %arg12[%c40_74, %c0_75] : memref<64x128xf32, #tpu.memory_space<vmem>>, vector<8x128xf32>
    tpu.vector_store %arg12[%c40_74, %c0_75], %213 {strides = array<i32>} : memref<64x128xf32, #tpu.memory_space<vmem>>, vector<8x128xf32>,
    %c48_76 = arith.constant 48 : index
    %c0_77 = arith.constant 0 : index
    %215 = vector.load %arg11[%c48_76, %c0_77] : memref<64x384xf32, #tpu.memory_space<vmem>>, vector<8x384xf32>
    %c8_78 = arith.constant 8 : index
    %c0_79 = arith.constant 0 : index
    %216 = vector.load %arg11[%c8_78, %c0_79] : memref<64x384xf32, #tpu.memory_space<vmem>>, vector<8x384xf32>
    %217 = arith.select %5, %215, %216 : vector<8x384xi1>, vector<8x384xf32>
    %c0_80 = arith.constant 0 : index
    %c0_81 = arith.constant 0 : index
    %218 = vector.load %arg4[%c0_80, %c0_81] : memref<128x384xf32, #tpu.memory_space<vmem>>, vector<128x384xf32>
    %cst_82 = arith.constant dense<0.000000e+00> : vector<8x384xf32>
    %219 = tpu.matmul %213, %218, %cst_82 {dimension_numbers = #tpu.dot_dimension_numbers<[1], [0], [0], [1], [0, 0, 1, 1], [], []>} : vector<8x128xf32>, vector<128x384xf32>, vector<8x384xf32> -> vector<8x384xf32>
    %220 = vector.extract_strided_slice %217 {offsets = [0, 0], sizes = [8, 128], strides = [1, 1]} : vector<8x384xf32> to vector<8x128xf32>
    %221 = vector.extract_strided_slice %219 {offsets = [0, 0], sizes = [8, 128], strides = [1, 1]} : vector<8x384xf32> to vector<8x128xf32>
    %222 = arith.addf %220, %221 : vector<8x128xf32>
    %223 = arith.negf %222 : vector<8x128xf32>
    %224 = math.exp %223 : vector<8x128xf32>
    %cst_83 = arith.constant 1.000000e+00 : f32
    %225 = vector.broadcast %cst_83 : f32 to vector<8x128xf32>
    %226 = arith.addf %225, %224 : vector<8x128xf32>
    %227 = arith.divf %225, %226 : vector<8x128xf32>
    %228 = vector.extract_strided_slice %217 {offsets = [0, 128], sizes = [8, 128], strides = [1, 1]} : vector<8x384xf32> to vector<8x128xf32>
    %229 = vector.extract_strided_slice %219 {offsets = [0, 128], sizes = [8, 128], strides = [1, 1]} : vector<8x384xf32> to vector<8x128xf32>
    %230 = arith.addf %228, %229 : vector<8x128xf32>
    %231 = arith.negf %230 : vector<8x128xf32>
    %232 = math.exp %231 : vector<8x128xf32>
    %cst_84 = arith.constant 1.000000e+00 : f32
    %233 = vector.broadcast %cst_84 : f32 to vector<8x128xf32>
    %234 = arith.addf %233, %232 : vector<8x128xf32>
    %235 = arith.divf %233, %234 : vector<8x128xf32>
    %236 = vector.extract_strided_slice %217 {offsets = [0, 256], sizes = [8, 128], strides = [1, 1]} : vector<8x384xf32> to vector<8x128xf32>
    %237 = vector.extract_strided_slice %219 {offsets = [0, 256], sizes = [8, 128], strides = [1, 1]} : vector<8x384xf32> to vector<8x128xf32>
    %238 = arith.addf %237, %15 : vector<8x128xf32>
    %239 = arith.mulf %227, %238 : vector<8x128xf32>
    %240 = arith.addf %236, %239 : vector<8x128xf32>
    %241 = math.tanh %240 : vector<8x128xf32>
    %cst_85 = arith.constant 1.000000e+00 : f32
    %242 = vector.broadcast %cst_85 : f32 to vector<8x128xf32>
    %243 = arith.subf %242, %235 : vector<8x128xf32>
    %244 = arith.mulf %243, %241 : vector<8x128xf32>
    %245 = arith.mulf %235, %213 : vector<8x128xf32>
    %246 = arith.addf %244, %245 : vector<8x128xf32>
    %c48_86 = arith.constant 48 : index
    %c0_87 = arith.constant 0 : index
    %247 = vector.load %arg12[%c48_86, %c0_87] : memref<64x128xf32, #tpu.memory_space<vmem>>, vector<8x128xf32>
    tpu.vector_store %arg12[%c48_86, %c0_87], %246 {strides = array<i32>} : memref<64x128xf32, #tpu.memory_space<vmem>>, vector<8x128xf32>,
    %c56_88 = arith.constant 56 : index
    %c0_89 = arith.constant 0 : index
    %248 = vector.load %arg11[%c56_88, %c0_89] : memref<64x384xf32, #tpu.memory_space<vmem>>, vector<8x384xf32>
    %c0_90 = arith.constant 0 : index
    %c0_91 = arith.constant 0 : index
    %249 = vector.load %arg11[%c0_90, %c0_91] : memref<64x384xf32, #tpu.memory_space<vmem>>, vector<8x384xf32>
    %250 = arith.select %5, %248, %249 : vector<8x384xi1>, vector<8x384xf32>
    %c0_92 = arith.constant 0 : index
    %c0_93 = arith.constant 0 : index
    %251 = vector.load %arg4[%c0_92, %c0_93] : memref<128x384xf32, #tpu.memory_space<vmem>>, vector<128x384xf32>
    %cst_94 = arith.constant dense<0.000000e+00> : vector<8x384xf32>
    %252 = tpu.matmul %246, %251, %cst_94 {dimension_numbers = #tpu.dot_dimension_numbers<[1], [0], [0], [1], [0, 0, 1, 1], [], []>} : vector<8x128xf32>, vector<128x384xf32>, vector<8x384xf32> -> vector<8x384xf32>
    %253 = vector.extract_strided_slice %250 {offsets = [0, 0], sizes = [8, 128], strides = [1, 1]} : vector<8x384xf32> to vector<8x128xf32>
    %254 = vector.extract_strided_slice %252 {offsets = [0, 0], sizes = [8, 128], strides = [1, 1]} : vector<8x384xf32> to vector<8x128xf32>
    %255 = arith.addf %253, %254 : vector<8x128xf32>
    %256 = arith.negf %255 : vector<8x128xf32>
    %257 = math.exp %256 : vector<8x128xf32>
    %cst_95 = arith.constant 1.000000e+00 : f32
    %258 = vector.broadcast %cst_95 : f32 to vector<8x128xf32>
    %259 = arith.addf %258, %257 : vector<8x128xf32>
    %260 = arith.divf %258, %259 : vector<8x128xf32>
    %261 = vector.extract_strided_slice %250 {offsets = [0, 128], sizes = [8, 128], strides = [1, 1]} : vector<8x384xf32> to vector<8x128xf32>
    %262 = vector.extract_strided_slice %252 {offsets = [0, 128], sizes = [8, 128], strides = [1, 1]} : vector<8x384xf32> to vector<8x128xf32>
    %263 = arith.addf %261, %262 : vector<8x128xf32>
    %264 = arith.negf %263 : vector<8x128xf32>
    %265 = math.exp %264 : vector<8x128xf32>
    %cst_96 = arith.constant 1.000000e+00 : f32
    %266 = vector.broadcast %cst_96 : f32 to vector<8x128xf32>
    %267 = arith.addf %266, %265 : vector<8x128xf32>
    %268 = arith.divf %266, %267 : vector<8x128xf32>
    %269 = vector.extract_strided_slice %250 {offsets = [0, 256], sizes = [8, 128], strides = [1, 1]} : vector<8x384xf32> to vector<8x128xf32>
    %270 = vector.extract_strided_slice %252 {offsets = [0, 256], sizes = [8, 128], strides = [1, 1]} : vector<8x384xf32> to vector<8x128xf32>
    %271 = arith.addf %270, %15 : vector<8x128xf32>
    %272 = arith.mulf %260, %271 : vector<8x128xf32>
    %273 = arith.addf %269, %272 : vector<8x128xf32>
    %274 = math.tanh %273 : vector<8x128xf32>
    %cst_97 = arith.constant 1.000000e+00 : f32
    %275 = vector.broadcast %cst_97 : f32 to vector<8x128xf32>
    %276 = arith.subf %275, %268 : vector<8x128xf32>
    %277 = arith.mulf %276, %274 : vector<8x128xf32>
    %278 = arith.mulf %268, %246 : vector<8x128xf32>
    %279 = arith.addf %277, %278 : vector<8x128xf32>
    %c56_98 = arith.constant 56 : index
    %c0_99 = arith.constant 0 : index
    %280 = vector.load %arg12[%c56_98, %c0_99] : memref<64x128xf32, #tpu.memory_space<vmem>>, vector<8x128xf32>
    tpu.vector_store %arg12[%c56_98, %c0_99], %279 {strides = array<i32>} : memref<64x128xf32, #tpu.memory_space<vmem>>, vector<8x128xf32>,
    %c0_100 = arith.constant 0 : index
    %c0_101 = arith.constant 0 : index
    %281 = vector.load %arg12[%c0_100, %c0_101] : memref<64x128xf32, #tpu.memory_space<vmem>>, vector<8x128xf32>
    %c56_102 = arith.constant 56 : index
    %c0_103 = arith.constant 0 : index
    %282 = vector.load %arg12[%c56_102, %c0_103] : memref<64x128xf32, #tpu.memory_space<vmem>>, vector<8x128xf32>
    %283 = arith.select %2, %281, %282 : vector<8x128xi1>, vector<8x128xf32>
    %c0_104 = arith.constant 0 : index
    %c0_105 = arith.constant 0 : index
    %284 = vector.load %arg13[%c0_104, %c0_105] : memref<64x128xf32, #tpu.memory_space<vmem>>, vector<8x128xf32>
    tpu.vector_store %arg13[%c0_104, %c0_105], %283 {strides = array<i32>} : memref<64x128xf32, #tpu.memory_space<vmem>>, vector<8x128xf32>,
    %c0_106 = arith.constant 0 : index
    %c0_107 = arith.constant 0 : index
    %285 = vector.load %arg10[%c0_106, %c0_107] : memref<64x256xf32, #tpu.memory_space<vmem>>, vector<8x128xf32>
    tpu.vector_store %arg10[%c0_106, %c0_107], %283 {strides = array<i32>} : memref<64x256xf32, #tpu.memory_space<vmem>>, vector<8x128xf32>,
    %c8_108 = arith.constant 8 : index
    %c0_109 = arith.constant 0 : index
    %286 = vector.load %arg12[%c8_108, %c0_109] : memref<64x128xf32, #tpu.memory_space<vmem>>, vector<8x128xf32>
    %c48_110 = arith.constant 48 : index
    %c0_111 = arith.constant 0 : index
    %287 = vector.load %arg12[%c48_110, %c0_111] : memref<64x128xf32, #tpu.memory_space<vmem>>, vector<8x128xf32>
    %288 = arith.select %2, %286, %287 : vector<8x128xi1>, vector<8x128xf32>
    %c8_112 = arith.constant 8 : index
    %c0_113 = arith.constant 0 : index
    %289 = vector.load %arg13[%c8_112, %c0_113] : memref<64x128xf32, #tpu.memory_space<vmem>>, vector<8x128xf32>
    tpu.vector_store %arg13[%c8_112, %c0_113], %288 {strides = array<i32>} : memref<64x128xf32, #tpu.memory_space<vmem>>, vector<8x128xf32>,
    %c8_114 = arith.constant 8 : index
    %c0_115 = arith.constant 0 : index
    %290 = vector.load %arg10[%c8_114, %c0_115] : memref<64x256xf32, #tpu.memory_space<vmem>>, vector<8x128xf32>
    tpu.vector_store %arg10[%c8_114, %c0_115], %288 {strides = array<i32>} : memref<64x256xf32, #tpu.memory_space<vmem>>, vector<8x128xf32>,
    %c16_116 = arith.constant 16 : index
    %c0_117 = arith.constant 0 : index
    %291 = vector.load %arg12[%c16_116, %c0_117] : memref<64x128xf32, #tpu.memory_space<vmem>>, vector<8x128xf32>
    %c40_118 = arith.constant 40 : index
    %c0_119 = arith.constant 0 : index
    %292 = vector.load %arg12[%c40_118, %c0_119] : memref<64x128xf32, #tpu.memory_space<vmem>>, vector<8x128xf32>
    %293 = arith.select %2, %291, %292 : vector<8x128xi1>, vector<8x128xf32>
    %c16_120 = arith.constant 16 : index
    %c0_121 = arith.constant 0 : index
    %294 = vector.load %arg13[%c16_120, %c0_121] : memref<64x128xf32, #tpu.memory_space<vmem>>, vector<8x128xf32>
    tpu.vector_store %arg13[%c16_120, %c0_121], %293 {strides = array<i32>} : memref<64x128xf32, #tpu.memory_space<vmem>>, vector<8x128xf32>,
    %c16_122 = arith.constant 16 : index
    %c0_123 = arith.constant 0 : index
    %295 = vector.load %arg10[%c16_122, %c0_123] : memref<64x256xf32, #tpu.memory_space<vmem>>, vector<8x128xf32>
    tpu.vector_store %arg10[%c16_122, %c0_123], %293 {strides = array<i32>} : memref<64x256xf32, #tpu.memory_space<vmem>>, vector<8x128xf32>,
    %c24_124 = arith.constant 24 : index
    %c0_125 = arith.constant 0 : index
    %296 = vector.load %arg12[%c24_124, %c0_125] : memref<64x128xf32, #tpu.memory_space<vmem>>, vector<8x128xf32>
    %c32_126 = arith.constant 32 : index
    %c0_127 = arith.constant 0 : index
    %297 = vector.load %arg12[%c32_126, %c0_127] : memref<64x128xf32, #tpu.memory_space<vmem>>, vector<8x128xf32>
    %298 = arith.select %2, %296, %297 : vector<8x128xi1>, vector<8x128xf32>
    %c24_128 = arith.constant 24 : index
    %c0_129 = arith.constant 0 : index
    %299 = vector.load %arg13[%c24_128, %c0_129] : memref<64x128xf32, #tpu.memory_space<vmem>>, vector<8x128xf32>
    tpu.vector_store %arg13[%c24_128, %c0_129], %298 {strides = array<i32>} : memref<64x128xf32, #tpu.memory_space<vmem>>, vector<8x128xf32>,
    %c24_130 = arith.constant 24 : index
    %c0_131 = arith.constant 0 : index
    %300 = vector.load %arg10[%c24_130, %c0_131] : memref<64x256xf32, #tpu.memory_space<vmem>>, vector<8x128xf32>
    tpu.vector_store %arg10[%c24_130, %c0_131], %298 {strides = array<i32>} : memref<64x256xf32, #tpu.memory_space<vmem>>, vector<8x128xf32>,
    %c32_132 = arith.constant 32 : index
    %c0_133 = arith.constant 0 : index
    %301 = vector.load %arg12[%c32_132, %c0_133] : memref<64x128xf32, #tpu.memory_space<vmem>>, vector<8x128xf32>
    %c24_134 = arith.constant 24 : index
    %c0_135 = arith.constant 0 : index
    %302 = vector.load %arg12[%c24_134, %c0_135] : memref<64x128xf32, #tpu.memory_space<vmem>>, vector<8x128xf32>
    %303 = arith.select %2, %301, %302 : vector<8x128xi1>, vector<8x128xf32>
    %c32_136 = arith.constant 32 : index
    %c0_137 = arith.constant 0 : index
    %304 = vector.load %arg13[%c32_136, %c0_137] : memref<64x128xf32, #tpu.memory_space<vmem>>, vector<8x128xf32>
    tpu.vector_store %arg13[%c32_136, %c0_137], %303 {strides = array<i32>} : memref<64x128xf32, #tpu.memory_space<vmem>>, vector<8x128xf32>,
    %c32_138 = arith.constant 32 : index
    %c0_139 = arith.constant 0 : index
    %305 = vector.load %arg10[%c32_138, %c0_139] : memref<64x256xf32, #tpu.memory_space<vmem>>, vector<8x128xf32>
    tpu.vector_store %arg10[%c32_138, %c0_139], %303 {strides = array<i32>} : memref<64x256xf32, #tpu.memory_space<vmem>>, vector<8x128xf32>,
    %c40_140 = arith.constant 40 : index
    %c0_141 = arith.constant 0 : index
    %306 = vector.load %arg12[%c40_140, %c0_141] : memref<64x128xf32, #tpu.memory_space<vmem>>, vector<8x128xf32>
    %c16_142 = arith.constant 16 : index
    %c0_143 = arith.constant 0 : index
    %307 = vector.load %arg12[%c16_142, %c0_143] : memref<64x128xf32, #tpu.memory_space<vmem>>, vector<8x128xf32>
    %308 = arith.select %2, %306, %307 : vector<8x128xi1>, vector<8x128xf32>
    %c40_144 = arith.constant 40 : index
    %c0_145 = arith.constant 0 : index
    %309 = vector.load %arg13[%c40_144, %c0_145] : memref<64x128xf32, #tpu.memory_space<vmem>>, vector<8x128xf32>
    tpu.vector_store %arg13[%c40_144, %c0_145], %308 {strides = array<i32>} : memref<64x128xf32, #tpu.memory_space<vmem>>, vector<8x128xf32>,
    %c40_146 = arith.constant 40 : index
    %c0_147 = arith.constant 0 : index
    %310 = vector.load %arg10[%c40_146, %c0_147] : memref<64x256xf32, #tpu.memory_space<vmem>>, vector<8x128xf32>
    tpu.vector_store %arg10[%c40_146, %c0_147], %308 {strides = array<i32>} : memref<64x256xf32, #tpu.memory_space<vmem>>, vector<8x128xf32>,
    %c48_148 = arith.constant 48 : index
    %c0_149 = arith.constant 0 : index
    %311 = vector.load %arg12[%c48_148, %c0_149] : memref<64x128xf32, #tpu.memory_space<vmem>>, vector<8x128xf32>
    %c8_150 = arith.constant 8 : index
    %c0_151 = arith.constant 0 : index
    %312 = vector.load %arg12[%c8_150, %c0_151] : memref<64x128xf32, #tpu.memory_space<vmem>>, vector<8x128xf32>
    %313 = arith.select %2, %311, %312 : vector<8x128xi1>, vector<8x128xf32>
    %c48_152 = arith.constant 48 : index
    %c0_153 = arith.constant 0 : index
    %314 = vector.load %arg13[%c48_152, %c0_153] : memref<64x128xf32, #tpu.memory_space<vmem>>, vector<8x128xf32>
    tpu.vector_store %arg13[%c48_152, %c0_153], %313 {strides = array<i32>} : memref<64x128xf32, #tpu.memory_space<vmem>>, vector<8x128xf32>,
    %c48_154 = arith.constant 48 : index
    %c0_155 = arith.constant 0 : index
    %315 = vector.load %arg10[%c48_154, %c0_155] : memref<64x256xf32, #tpu.memory_space<vmem>>, vector<8x128xf32>
    tpu.vector_store %arg10[%c48_154, %c0_155], %313 {strides = array<i32>} : memref<64x256xf32, #tpu.memory_space<vmem>>, vector<8x128xf32>,
    %c56_156 = arith.constant 56 : index
    %c0_157 = arith.constant 0 : index
    %316 = vector.load %arg12[%c56_156, %c0_157] : memref<64x128xf32, #tpu.memory_space<vmem>>, vector<8x128xf32>
    %c0_158 = arith.constant 0 : index
    %c0_159 = arith.constant 0 : index
    %317 = vector.load %arg12[%c0_158, %c0_159] : memref<64x128xf32, #tpu.memory_space<vmem>>, vector<8x128xf32>
    %318 = arith.select %2, %316, %317 : vector<8x128xi1>, vector<8x128xf32>
    %c56_160 = arith.constant 56 : index
    %c0_161 = arith.constant 0 : index
    %319 = vector.load %arg13[%c56_160, %c0_161] : memref<64x128xf32, #tpu.memory_space<vmem>>, vector<8x128xf32>
    tpu.vector_store %arg13[%c56_160, %c0_161], %318 {strides = array<i32>} : memref<64x128xf32, #tpu.memory_space<vmem>>, vector<8x128xf32>,
    %c56_162 = arith.constant 56 : index
    %c0_163 = arith.constant 0 : index
    %320 = vector.load %arg10[%c56_162, %c0_163] : memref<64x256xf32, #tpu.memory_space<vmem>>, vector<8x128xf32>
    tpu.vector_store %arg10[%c56_162, %c0_163], %318 {strides = array<i32>} : memref<64x256xf32, #tpu.memory_space<vmem>>, vector<8x128xf32>,
    %c0_164 = arith.constant 0 : index
    %c0_165 = arith.constant 0 : index
    %321 = vector.load %arg13[%c0_164, %c0_165] : memref<64x128xf32, #tpu.memory_space<vmem>>, vector<64x128xf32>
    %c0_166 = arith.constant 0 : index
    %c0_167 = arith.constant 0 : index
    %322 = vector.load %arg6[%c0_166, %c0_167] : memref<128x384xf32, #tpu.memory_space<vmem>>, vector<128x384xf32>
    %cst_168 = arith.constant dense<0.000000e+00> : vector<64x384xf32>
    %323 = tpu.matmul %321, %322, %cst_168 {dimension_numbers = #tpu.dot_dimension_numbers<[1], [0], [0], [1], [0, 0, 1, 1], [], []>} : vector<64x128xf32>, vector<128x384xf32>, vector<64x384xf32> -> vector<64x384xf32>
    %c0_169 = arith.constant 0 : index
    %c0_170 = arith.constant 0 : index
    %324 = vector.load %arg7[%c0_169, %c0_170] : memref<1x384xf32, #tpu.memory_space<vmem>>, vector<1x384xf32>
    %325 = vector.broadcast %324 : vector<1x384xf32> to vector<64x384xf32>
    %326 = arith.addf %323, %325 : vector<64x384xf32>
    %c0_171 = arith.constant 0 : index
    %c0_172 = arith.constant 0 : index
    %327 = vector.load %arg11[%c0_171, %c0_172] : memref<64x384xf32, #tpu.memory_space<vmem>>, vector<64x384xf32>
    tpu.vector_store %arg11[%c0_171, %c0_172], %326 {strides = array<i32>} : memref<64x384xf32, #tpu.memory_space<vmem>>, vector<64x384xf32>,
    %c0_173 = arith.constant 0 : index
    %c0_174 = arith.constant 0 : index
    %328 = vector.load %arg9[%c0_173, %c0_174] : memref<1x128xf32, #tpu.memory_space<vmem>>, vector<1x128xf32>
    %329 = vector.shape_cast %328 : vector<1x128xf32> to vector<1x128xf32>
    %330 = vector.broadcast %329 : vector<1x128xf32> to vector<8x128xf32>
    %cst_175 = arith.constant 0.000000e+00 : f32
    %331 = vector.broadcast %cst_175 : f32 to vector<8x128xf32>
    %c0_176 = arith.constant 0 : index
    %c0_177 = arith.constant 0 : index
    %332 = vector.load %arg11[%c0_176, %c0_177] : memref<64x384xf32, #tpu.memory_space<vmem>>, vector<8x384xf32>
    %c56_178 = arith.constant 56 : index
    %c0_179 = arith.constant 0 : index
    %333 = vector.load %arg11[%c56_178, %c0_179] : memref<64x384xf32, #tpu.memory_space<vmem>>, vector<8x384xf32>
    %334 = arith.select %5, %332, %333 : vector<8x384xi1>, vector<8x384xf32>
    %c0_180 = arith.constant 0 : index
    %c0_181 = arith.constant 0 : index
    %335 = vector.load %arg8[%c0_180, %c0_181] : memref<128x384xf32, #tpu.memory_space<vmem>>, vector<128x384xf32>
    %cst_182 = arith.constant dense<0.000000e+00> : vector<8x384xf32>
    %336 = tpu.matmul %331, %335, %cst_182 {dimension_numbers = #tpu.dot_dimension_numbers<[1], [0], [0], [1], [0, 0, 1, 1], [], []>} : vector<8x128xf32>, vector<128x384xf32>, vector<8x384xf32> -> vector<8x384xf32>
    %337 = vector.extract_strided_slice %334 {offsets = [0, 0], sizes = [8, 128], strides = [1, 1]} : vector<8x384xf32> to vector<8x128xf32>
    %338 = vector.extract_strided_slice %336 {offsets = [0, 0], sizes = [8, 128], strides = [1, 1]} : vector<8x384xf32> to vector<8x128xf32>
    %339 = arith.addf %337, %338 : vector<8x128xf32>
    %340 = arith.negf %339 : vector<8x128xf32>
    %341 = math.exp %340 : vector<8x128xf32>
    %cst_183 = arith.constant 1.000000e+00 : f32
    %342 = vector.broadcast %cst_183 : f32 to vector<8x128xf32>
    %343 = arith.addf %342, %341 : vector<8x128xf32>
    %344 = arith.divf %342, %343 : vector<8x128xf32>
    %345 = vector.extract_strided_slice %334 {offsets = [0, 128], sizes = [8, 128], strides = [1, 1]} : vector<8x384xf32> to vector<8x128xf32>
    %346 = vector.extract_strided_slice %336 {offsets = [0, 128], sizes = [8, 128], strides = [1, 1]} : vector<8x384xf32> to vector<8x128xf32>
    %347 = arith.addf %345, %346 : vector<8x128xf32>
    %348 = arith.negf %347 : vector<8x128xf32>
    %349 = math.exp %348 : vector<8x128xf32>
    %cst_184 = arith.constant 1.000000e+00 : f32
    %350 = vector.broadcast %cst_184 : f32 to vector<8x128xf32>
    %351 = arith.addf %350, %349 : vector<8x128xf32>
    %352 = arith.divf %350, %351 : vector<8x128xf32>
    %353 = vector.extract_strided_slice %334 {offsets = [0, 256], sizes = [8, 128], strides = [1, 1]} : vector<8x384xf32> to vector<8x128xf32>
    %354 = vector.extract_strided_slice %336 {offsets = [0, 256], sizes = [8, 128], strides = [1, 1]} : vector<8x384xf32> to vector<8x128xf32>
    %355 = arith.addf %354, %330 : vector<8x128xf32>
    %356 = arith.mulf %344, %355 : vector<8x128xf32>
    %357 = arith.addf %353, %356 : vector<8x128xf32>
    %358 = math.tanh %357 : vector<8x128xf32>
    %cst_185 = arith.constant 1.000000e+00 : f32
    %359 = vector.broadcast %cst_185 : f32 to vector<8x128xf32>
    %360 = arith.subf %359, %352 : vector<8x128xf32>
    %361 = arith.mulf %360, %358 : vector<8x128xf32>
    %362 = arith.mulf %352, %331 : vector<8x128xf32>
    %363 = arith.addf %361, %362 : vector<8x128xf32>
    %c0_186 = arith.constant 0 : index
    %c0_187 = arith.constant 0 : index
    %364 = vector.load %arg12[%c0_186, %c0_187] : memref<64x128xf32, #tpu.memory_space<vmem>>, vector<8x128xf32>
    tpu.vector_store %arg12[%c0_186, %c0_187], %363 {strides = array<i32>} : memref<64x128xf32, #tpu.memory_space<vmem>>, vector<8x128xf32>,
    %c8_188 = arith.constant 8 : index
    %c0_189 = arith.constant 0 : index
    %365 = vector.load %arg11[%c8_188, %c0_189] : memref<64x384xf32, #tpu.memory_space<vmem>>, vector<8x384xf32>
    %c48_190 = arith.constant 48 : index
    %c0_191 = arith.constant 0 : index
    %366 = vector.load %arg11[%c48_190, %c0_191] : memref<64x384xf32, #tpu.memory_space<vmem>>, vector<8x384xf32>
    %367 = arith.select %5, %365, %366 : vector<8x384xi1>, vector<8x384xf32>
    %c0_192 = arith.constant 0 : index
    %c0_193 = arith.constant 0 : index
    %368 = vector.load %arg8[%c0_192, %c0_193] : memref<128x384xf32, #tpu.memory_space<vmem>>, vector<128x384xf32>
    %cst_194 = arith.constant dense<0.000000e+00> : vector<8x384xf32>
    %369 = tpu.matmul %363, %368, %cst_194 {dimension_numbers = #tpu.dot_dimension_numbers<[1], [0], [0], [1], [0, 0, 1, 1], [], []>} : vector<8x128xf32>, vector<128x384xf32>, vector<8x384xf32> -> vector<8x384xf32>
    %370 = vector.extract_strided_slice %367 {offsets = [0, 0], sizes = [8, 128], strides = [1, 1]} : vector<8x384xf32> to vector<8x128xf32>
    %371 = vector.extract_strided_slice %369 {offsets = [0, 0], sizes = [8, 128], strides = [1, 1]} : vector<8x384xf32> to vector<8x128xf32>
    %372 = arith.addf %370, %371 : vector<8x128xf32>
    %373 = arith.negf %372 : vector<8x128xf32>
    %374 = math.exp %373 : vector<8x128xf32>
    %cst_195 = arith.constant 1.000000e+00 : f32
    %375 = vector.broadcast %cst_195 : f32 to vector<8x128xf32>
    %376 = arith.addf %375, %374 : vector<8x128xf32>
    %377 = arith.divf %375, %376 : vector<8x128xf32>
    %378 = vector.extract_strided_slice %367 {offsets = [0, 128], sizes = [8, 128], strides = [1, 1]} : vector<8x384xf32> to vector<8x128xf32>
    %379 = vector.extract_strided_slice %369 {offsets = [0, 128], sizes = [8, 128], strides = [1, 1]} : vector<8x384xf32> to vector<8x128xf32>
    %380 = arith.addf %378, %379 : vector<8x128xf32>
    %381 = arith.negf %380 : vector<8x128xf32>
    %382 = math.exp %381 : vector<8x128xf32>
    %cst_196 = arith.constant 1.000000e+00 : f32
    %383 = vector.broadcast %cst_196 : f32 to vector<8x128xf32>
    %384 = arith.addf %383, %382 : vector<8x128xf32>
    %385 = arith.divf %383, %384 : vector<8x128xf32>
    %386 = vector.extract_strided_slice %367 {offsets = [0, 256], sizes = [8, 128], strides = [1, 1]} : vector<8x384xf32> to vector<8x128xf32>
    %387 = vector.extract_strided_slice %369 {offsets = [0, 256], sizes = [8, 128], strides = [1, 1]} : vector<8x384xf32> to vector<8x128xf32>
    %388 = arith.addf %387, %330 : vector<8x128xf32>
    %389 = arith.mulf %377, %388 : vector<8x128xf32>
    %390 = arith.addf %386, %389 : vector<8x128xf32>
    %391 = math.tanh %390 : vector<8x128xf32>
    %cst_197 = arith.constant 1.000000e+00 : f32
    %392 = vector.broadcast %cst_197 : f32 to vector<8x128xf32>
    %393 = arith.subf %392, %385 : vector<8x128xf32>
    %394 = arith.mulf %393, %391 : vector<8x128xf32>
    %395 = arith.mulf %385, %363 : vector<8x128xf32>
    %396 = arith.addf %394, %395 : vector<8x128xf32>
    %c8_198 = arith.constant 8 : index
    %c0_199 = arith.constant 0 : index
    %397 = vector.load %arg12[%c8_198, %c0_199] : memref<64x128xf32, #tpu.memory_space<vmem>>, vector<8x128xf32>
    tpu.vector_store %arg12[%c8_198, %c0_199], %396 {strides = array<i32>} : memref<64x128xf32, #tpu.memory_space<vmem>>, vector<8x128xf32>,
    %c16_200 = arith.constant 16 : index
    %c0_201 = arith.constant 0 : index
    %398 = vector.load %arg11[%c16_200, %c0_201] : memref<64x384xf32, #tpu.memory_space<vmem>>, vector<8x384xf32>
    %c40_202 = arith.constant 40 : index
    %c0_203 = arith.constant 0 : index
    %399 = vector.load %arg11[%c40_202, %c0_203] : memref<64x384xf32, #tpu.memory_space<vmem>>, vector<8x384xf32>
    %400 = arith.select %5, %398, %399 : vector<8x384xi1>, vector<8x384xf32>
    %c0_204 = arith.constant 0 : index
    %c0_205 = arith.constant 0 : index
    %401 = vector.load %arg8[%c0_204, %c0_205] : memref<128x384xf32, #tpu.memory_space<vmem>>, vector<128x384xf32>
    %cst_206 = arith.constant dense<0.000000e+00> : vector<8x384xf32>
    %402 = tpu.matmul %396, %401, %cst_206 {dimension_numbers = #tpu.dot_dimension_numbers<[1], [0], [0], [1], [0, 0, 1, 1], [], []>} : vector<8x128xf32>, vector<128x384xf32>, vector<8x384xf32> -> vector<8x384xf32>
    %403 = vector.extract_strided_slice %400 {offsets = [0, 0], sizes = [8, 128], strides = [1, 1]} : vector<8x384xf32> to vector<8x128xf32>
    %404 = vector.extract_strided_slice %402 {offsets = [0, 0], sizes = [8, 128], strides = [1, 1]} : vector<8x384xf32> to vector<8x128xf32>
    %405 = arith.addf %403, %404 : vector<8x128xf32>
    %406 = arith.negf %405 : vector<8x128xf32>
    %407 = math.exp %406 : vector<8x128xf32>
    %cst_207 = arith.constant 1.000000e+00 : f32
    %408 = vector.broadcast %cst_207 : f32 to vector<8x128xf32>
    %409 = arith.addf %408, %407 : vector<8x128xf32>
    %410 = arith.divf %408, %409 : vector<8x128xf32>
    %411 = vector.extract_strided_slice %400 {offsets = [0, 128], sizes = [8, 128], strides = [1, 1]} : vector<8x384xf32> to vector<8x128xf32>
    %412 = vector.extract_strided_slice %402 {offsets = [0, 128], sizes = [8, 128], strides = [1, 1]} : vector<8x384xf32> to vector<8x128xf32>
    %413 = arith.addf %411, %412 : vector<8x128xf32>
    %414 = arith.negf %413 : vector<8x128xf32>
    %415 = math.exp %414 : vector<8x128xf32>
    %cst_208 = arith.constant 1.000000e+00 : f32
    %416 = vector.broadcast %cst_208 : f32 to vector<8x128xf32>
    %417 = arith.addf %416, %415 : vector<8x128xf32>
    %418 = arith.divf %416, %417 : vector<8x128xf32>
    %419 = vector.extract_strided_slice %400 {offsets = [0, 256], sizes = [8, 128], strides = [1, 1]} : vector<8x384xf32> to vector<8x128xf32>
    %420 = vector.extract_strided_slice %402 {offsets = [0, 256], sizes = [8, 128], strides = [1, 1]} : vector<8x384xf32> to vector<8x128xf32>
    %421 = arith.addf %420, %330 : vector<8x128xf32>
    %422 = arith.mulf %410, %421 : vector<8x128xf32>
    %423 = arith.addf %419, %422 : vector<8x128xf32>
    %424 = math.tanh %423 : vector<8x128xf32>
    %cst_209 = arith.constant 1.000000e+00 : f32
    %425 = vector.broadcast %cst_209 : f32 to vector<8x128xf32>
    %426 = arith.subf %425, %418 : vector<8x128xf32>
    %427 = arith.mulf %426, %424 : vector<8x128xf32>
    %428 = arith.mulf %418, %396 : vector<8x128xf32>
    %429 = arith.addf %427, %428 : vector<8x128xf32>
    %c16_210 = arith.constant 16 : index
    %c0_211 = arith.constant 0 : index
    %430 = vector.load %arg12[%c16_210, %c0_211] : memref<64x128xf32, #tpu.memory_space<vmem>>, vector<8x128xf32>
    tpu.vector_store %arg12[%c16_210, %c0_211], %429 {strides = array<i32>} : memref<64x128xf32, #tpu.memory_space<vmem>>, vector<8x128xf32>,
    %c24_212 = arith.constant 24 : index
    %c0_213 = arith.constant 0 : index
    %431 = vector.load %arg11[%c24_212, %c0_213] : memref<64x384xf32, #tpu.memory_space<vmem>>, vector<8x384xf32>
    %c32_214 = arith.constant 32 : index
    %c0_215 = arith.constant 0 : index
    %432 = vector.load %arg11[%c32_214, %c0_215] : memref<64x384xf32, #tpu.memory_space<vmem>>, vector<8x384xf32>
    %433 = arith.select %5, %431, %432 : vector<8x384xi1>, vector<8x384xf32>
    %c0_216 = arith.constant 0 : index
    %c0_217 = arith.constant 0 : index
    %434 = vector.load %arg8[%c0_216, %c0_217] : memref<128x384xf32, #tpu.memory_space<vmem>>, vector<128x384xf32>
    %cst_218 = arith.constant dense<0.000000e+00> : vector<8x384xf32>
    %435 = tpu.matmul %429, %434, %cst_218 {dimension_numbers = #tpu.dot_dimension_numbers<[1], [0], [0], [1], [0, 0, 1, 1], [], []>} : vector<8x128xf32>, vector<128x384xf32>, vector<8x384xf32> -> vector<8x384xf32>
    %436 = vector.extract_strided_slice %433 {offsets = [0, 0], sizes = [8, 128], strides = [1, 1]} : vector<8x384xf32> to vector<8x128xf32>
    %437 = vector.extract_strided_slice %435 {offsets = [0, 0], sizes = [8, 128], strides = [1, 1]} : vector<8x384xf32> to vector<8x128xf32>
    %438 = arith.addf %436, %437 : vector<8x128xf32>
    %439 = arith.negf %438 : vector<8x128xf32>
    %440 = math.exp %439 : vector<8x128xf32>
    %cst_219 = arith.constant 1.000000e+00 : f32
    %441 = vector.broadcast %cst_219 : f32 to vector<8x128xf32>
    %442 = arith.addf %441, %440 : vector<8x128xf32>
    %443 = arith.divf %441, %442 : vector<8x128xf32>
    %444 = vector.extract_strided_slice %433 {offsets = [0, 128], sizes = [8, 128], strides = [1, 1]} : vector<8x384xf32> to vector<8x128xf32>
    %445 = vector.extract_strided_slice %435 {offsets = [0, 128], sizes = [8, 128], strides = [1, 1]} : vector<8x384xf32> to vector<8x128xf32>
    %446 = arith.addf %444, %445 : vector<8x128xf32>
    %447 = arith.negf %446 : vector<8x128xf32>
    %448 = math.exp %447 : vector<8x128xf32>
    %cst_220 = arith.constant 1.000000e+00 : f32
    %449 = vector.broadcast %cst_220 : f32 to vector<8x128xf32>
    %450 = arith.addf %449, %448 : vector<8x128xf32>
    %451 = arith.divf %449, %450 : vector<8x128xf32>
    %452 = vector.extract_strided_slice %433 {offsets = [0, 256], sizes = [8, 128], strides = [1, 1]} : vector<8x384xf32> to vector<8x128xf32>
    %453 = vector.extract_strided_slice %435 {offsets = [0, 256], sizes = [8, 128], strides = [1, 1]} : vector<8x384xf32> to vector<8x128xf32>
    %454 = arith.addf %453, %330 : vector<8x128xf32>
    %455 = arith.mulf %443, %454 : vector<8x128xf32>
    %456 = arith.addf %452, %455 : vector<8x128xf32>
    %457 = math.tanh %456 : vector<8x128xf32>
    %cst_221 = arith.constant 1.000000e+00 : f32
    %458 = vector.broadcast %cst_221 : f32 to vector<8x128xf32>
    %459 = arith.subf %458, %451 : vector<8x128xf32>
    %460 = arith.mulf %459, %457 : vector<8x128xf32>
    %461 = arith.mulf %451, %429 : vector<8x128xf32>
    %462 = arith.addf %460, %461 : vector<8x128xf32>
    %c24_222 = arith.constant 24 : index
    %c0_223 = arith.constant 0 : index
    %463 = vector.load %arg12[%c24_222, %c0_223] : memref<64x128xf32, #tpu.memory_space<vmem>>, vector<8x128xf32>
    tpu.vector_store %arg12[%c24_222, %c0_223], %462 {strides = array<i32>} : memref<64x128xf32, #tpu.memory_space<vmem>>, vector<8x128xf32>,
    %c32_224 = arith.constant 32 : index
    %c0_225 = arith.constant 0 : index
    %464 = vector.load %arg11[%c32_224, %c0_225] : memref<64x384xf32, #tpu.memory_space<vmem>>, vector<8x384xf32>
    %c24_226 = arith.constant 24 : index
    %c0_227 = arith.constant 0 : index
    %465 = vector.load %arg11[%c24_226, %c0_227] : memref<64x384xf32, #tpu.memory_space<vmem>>, vector<8x384xf32>
    %466 = arith.select %5, %464, %465 : vector<8x384xi1>, vector<8x384xf32>
    %c0_228 = arith.constant 0 : index
    %c0_229 = arith.constant 0 : index
    %467 = vector.load %arg8[%c0_228, %c0_229] : memref<128x384xf32, #tpu.memory_space<vmem>>, vector<128x384xf32>
    %cst_230 = arith.constant dense<0.000000e+00> : vector<8x384xf32>
    %468 = tpu.matmul %462, %467, %cst_230 {dimension_numbers = #tpu.dot_dimension_numbers<[1], [0], [0], [1], [0, 0, 1, 1], [], []>} : vector<8x128xf32>, vector<128x384xf32>, vector<8x384xf32> -> vector<8x384xf32>
    %469 = vector.extract_strided_slice %466 {offsets = [0, 0], sizes = [8, 128], strides = [1, 1]} : vector<8x384xf32> to vector<8x128xf32>
    %470 = vector.extract_strided_slice %468 {offsets = [0, 0], sizes = [8, 128], strides = [1, 1]} : vector<8x384xf32> to vector<8x128xf32>
    %471 = arith.addf %469, %470 : vector<8x128xf32>
    %472 = arith.negf %471 : vector<8x128xf32>
    %473 = math.exp %472 : vector<8x128xf32>
    %cst_231 = arith.constant 1.000000e+00 : f32
    %474 = vector.broadcast %cst_231 : f32 to vector<8x128xf32>
    %475 = arith.addf %474, %473 : vector<8x128xf32>
    %476 = arith.divf %474, %475 : vector<8x128xf32>
    %477 = vector.extract_strided_slice %466 {offsets = [0, 128], sizes = [8, 128], strides = [1, 1]} : vector<8x384xf32> to vector<8x128xf32>
    %478 = vector.extract_strided_slice %468 {offsets = [0, 128], sizes = [8, 128], strides = [1, 1]} : vector<8x384xf32> to vector<8x128xf32>
    %479 = arith.addf %477, %478 : vector<8x128xf32>
    %480 = arith.negf %479 : vector<8x128xf32>
    %481 = math.exp %480 : vector<8x128xf32>
    %cst_232 = arith.constant 1.000000e+00 : f32
    %482 = vector.broadcast %cst_232 : f32 to vector<8x128xf32>
    %483 = arith.addf %482, %481 : vector<8x128xf32>
    %484 = arith.divf %482, %483 : vector<8x128xf32>
    %485 = vector.extract_strided_slice %466 {offsets = [0, 256], sizes = [8, 128], strides = [1, 1]} : vector<8x384xf32> to vector<8x128xf32>
    %486 = vector.extract_strided_slice %468 {offsets = [0, 256], sizes = [8, 128], strides = [1, 1]} : vector<8x384xf32> to vector<8x128xf32>
    %487 = arith.addf %486, %330 : vector<8x128xf32>
    %488 = arith.mulf %476, %487 : vector<8x128xf32>
    %489 = arith.addf %485, %488 : vector<8x128xf32>
    %490 = math.tanh %489 : vector<8x128xf32>
    %cst_233 = arith.constant 1.000000e+00 : f32
    %491 = vector.broadcast %cst_233 : f32 to vector<8x128xf32>
    %492 = arith.subf %491, %484 : vector<8x128xf32>
    %493 = arith.mulf %492, %490 : vector<8x128xf32>
    %494 = arith.mulf %484, %462 : vector<8x128xf32>
    %495 = arith.addf %493, %494 : vector<8x128xf32>
    %c32_234 = arith.constant 32 : index
    %c0_235 = arith.constant 0 : index
    %496 = vector.load %arg12[%c32_234, %c0_235] : memref<64x128xf32, #tpu.memory_space<vmem>>, vector<8x128xf32>
    tpu.vector_store %arg12[%c32_234, %c0_235], %495 {strides = array<i32>} : memref<64x128xf32, #tpu.memory_space<vmem>>, vector<8x128xf32>,
    %c40_236 = arith.constant 40 : index
    %c0_237 = arith.constant 0 : index
    %497 = vector.load %arg11[%c40_236, %c0_237] : memref<64x384xf32, #tpu.memory_space<vmem>>, vector<8x384xf32>
    %c16_238 = arith.constant 16 : index
    %c0_239 = arith.constant 0 : index
    %498 = vector.load %arg11[%c16_238, %c0_239] : memref<64x384xf32, #tpu.memory_space<vmem>>, vector<8x384xf32>
    %499 = arith.select %5, %497, %498 : vector<8x384xi1>, vector<8x384xf32>
    %c0_240 = arith.constant 0 : index
    %c0_241 = arith.constant 0 : index
    %500 = vector.load %arg8[%c0_240, %c0_241] : memref<128x384xf32, #tpu.memory_space<vmem>>, vector<128x384xf32>
    %cst_242 = arith.constant dense<0.000000e+00> : vector<8x384xf32>
    %501 = tpu.matmul %495, %500, %cst_242 {dimension_numbers = #tpu.dot_dimension_numbers<[1], [0], [0], [1], [0, 0, 1, 1], [], []>} : vector<8x128xf32>, vector<128x384xf32>, vector<8x384xf32> -> vector<8x384xf32>
    %502 = vector.extract_strided_slice %499 {offsets = [0, 0], sizes = [8, 128], strides = [1, 1]} : vector<8x384xf32> to vector<8x128xf32>
    %503 = vector.extract_strided_slice %501 {offsets = [0, 0], sizes = [8, 128], strides = [1, 1]} : vector<8x384xf32> to vector<8x128xf32>
    %504 = arith.addf %502, %503 : vector<8x128xf32>
    %505 = arith.negf %504 : vector<8x128xf32>
    %506 = math.exp %505 : vector<8x128xf32>
    %cst_243 = arith.constant 1.000000e+00 : f32
    %507 = vector.broadcast %cst_243 : f32 to vector<8x128xf32>
    %508 = arith.addf %507, %506 : vector<8x128xf32>
    %509 = arith.divf %507, %508 : vector<8x128xf32>
    %510 = vector.extract_strided_slice %499 {offsets = [0, 128], sizes = [8, 128], strides = [1, 1]} : vector<8x384xf32> to vector<8x128xf32>
    %511 = vector.extract_strided_slice %501 {offsets = [0, 128], sizes = [8, 128], strides = [1, 1]} : vector<8x384xf32> to vector<8x128xf32>
    %512 = arith.addf %510, %511 : vector<8x128xf32>
    %513 = arith.negf %512 : vector<8x128xf32>
    %514 = math.exp %513 : vector<8x128xf32>
    %cst_244 = arith.constant 1.000000e+00 : f32
    %515 = vector.broadcast %cst_244 : f32 to vector<8x128xf32>
    %516 = arith.addf %515, %514 : vector<8x128xf32>
    %517 = arith.divf %515, %516 : vector<8x128xf32>
    %518 = vector.extract_strided_slice %499 {offsets = [0, 256], sizes = [8, 128], strides = [1, 1]} : vector<8x384xf32> to vector<8x128xf32>
    %519 = vector.extract_strided_slice %501 {offsets = [0, 256], sizes = [8, 128], strides = [1, 1]} : vector<8x384xf32> to vector<8x128xf32>
    %520 = arith.addf %519, %330 : vector<8x128xf32>
    %521 = arith.mulf %509, %520 : vector<8x128xf32>
    %522 = arith.addf %518, %521 : vector<8x128xf32>
    %523 = math.tanh %522 : vector<8x128xf32>
    %cst_245 = arith.constant 1.000000e+00 : f32
    %524 = vector.broadcast %cst_245 : f32 to vector<8x128xf32>
    %525 = arith.subf %524, %517 : vector<8x128xf32>
    %526 = arith.mulf %525, %523 : vector<8x128xf32>
    %527 = arith.mulf %517, %495 : vector<8x128xf32>
    %528 = arith.addf %526, %527 : vector<8x128xf32>
    %c40_246 = arith.constant 40 : index
    %c0_247 = arith.constant 0 : index
    %529 = vector.load %arg12[%c40_246, %c0_247] : memref<64x128xf32, #tpu.memory_space<vmem>>, vector<8x128xf32>
    tpu.vector_store %arg12[%c40_246, %c0_247], %528 {strides = array<i32>} : memref<64x128xf32, #tpu.memory_space<vmem>>, vector<8x128xf32>,
    %c48_248 = arith.constant 48 : index
    %c0_249 = arith.constant 0 : index
    %530 = vector.load %arg11[%c48_248, %c0_249] : memref<64x384xf32, #tpu.memory_space<vmem>>, vector<8x384xf32>
    %c8_250 = arith.constant 8 : index
    %c0_251 = arith.constant 0 : index
    %531 = vector.load %arg11[%c8_250, %c0_251] : memref<64x384xf32, #tpu.memory_space<vmem>>, vector<8x384xf32>
    %532 = arith.select %5, %530, %531 : vector<8x384xi1>, vector<8x384xf32>
    %c0_252 = arith.constant 0 : index
    %c0_253 = arith.constant 0 : index
    %533 = vector.load %arg8[%c0_252, %c0_253] : memref<128x384xf32, #tpu.memory_space<vmem>>, vector<128x384xf32>
    %cst_254 = arith.constant dense<0.000000e+00> : vector<8x384xf32>
    %534 = tpu.matmul %528, %533, %cst_254 {dimension_numbers = #tpu.dot_dimension_numbers<[1], [0], [0], [1], [0, 0, 1, 1], [], []>} : vector<8x128xf32>, vector<128x384xf32>, vector<8x384xf32> -> vector<8x384xf32>
    %535 = vector.extract_strided_slice %532 {offsets = [0, 0], sizes = [8, 128], strides = [1, 1]} : vector<8x384xf32> to vector<8x128xf32>
    %536 = vector.extract_strided_slice %534 {offsets = [0, 0], sizes = [8, 128], strides = [1, 1]} : vector<8x384xf32> to vector<8x128xf32>
    %537 = arith.addf %535, %536 : vector<8x128xf32>
    %538 = arith.negf %537 : vector<8x128xf32>
    %539 = math.exp %538 : vector<8x128xf32>
    %cst_255 = arith.constant 1.000000e+00 : f32
    %540 = vector.broadcast %cst_255 : f32 to vector<8x128xf32>
    %541 = arith.addf %540, %539 : vector<8x128xf32>
    %542 = arith.divf %540, %541 : vector<8x128xf32>
    %543 = vector.extract_strided_slice %532 {offsets = [0, 128], sizes = [8, 128], strides = [1, 1]} : vector<8x384xf32> to vector<8x128xf32>
    %544 = vector.extract_strided_slice %534 {offsets = [0, 128], sizes = [8, 128], strides = [1, 1]} : vector<8x384xf32> to vector<8x128xf32>
    %545 = arith.addf %543, %544 : vector<8x128xf32>
    %546 = arith.negf %545 : vector<8x128xf32>
    %547 = math.exp %546 : vector<8x128xf32>
    %cst_256 = arith.constant 1.000000e+00 : f32
    %548 = vector.broadcast %cst_256 : f32 to vector<8x128xf32>
    %549 = arith.addf %548, %547 : vector<8x128xf32>
    %550 = arith.divf %548, %549 : vector<8x128xf32>
    %551 = vector.extract_strided_slice %532 {offsets = [0, 256], sizes = [8, 128], strides = [1, 1]} : vector<8x384xf32> to vector<8x128xf32>
    %552 = vector.extract_strided_slice %534 {offsets = [0, 256], sizes = [8, 128], strides = [1, 1]} : vector<8x384xf32> to vector<8x128xf32>
    %553 = arith.addf %552, %330 : vector<8x128xf32>
    %554 = arith.mulf %542, %553 : vector<8x128xf32>
    %555 = arith.addf %551, %554 : vector<8x128xf32>
    %556 = math.tanh %555 : vector<8x128xf32>
    %cst_257 = arith.constant 1.000000e+00 : f32
    %557 = vector.broadcast %cst_257 : f32 to vector<8x128xf32>
    %558 = arith.subf %557, %550 : vector<8x128xf32>
    %559 = arith.mulf %558, %556 : vector<8x128xf32>
    %560 = arith.mulf %550, %528 : vector<8x128xf32>
    %561 = arith.addf %559, %560 : vector<8x128xf32>
    %c48_258 = arith.constant 48 : index
    %c0_259 = arith.constant 0 : index
    %562 = vector.load %arg12[%c48_258, %c0_259] : memref<64x128xf32, #tpu.memory_space<vmem>>, vector<8x128xf32>
    tpu.vector_store %arg12[%c48_258, %c0_259], %561 {strides = array<i32>} : memref<64x128xf32, #tpu.memory_space<vmem>>, vector<8x128xf32>,
    %c56_260 = arith.constant 56 : index
    %c0_261 = arith.constant 0 : index
    %563 = vector.load %arg11[%c56_260, %c0_261] : memref<64x384xf32, #tpu.memory_space<vmem>>, vector<8x384xf32>
    %c0_262 = arith.constant 0 : index
    %c0_263 = arith.constant 0 : index
    %564 = vector.load %arg11[%c0_262, %c0_263] : memref<64x384xf32, #tpu.memory_space<vmem>>, vector<8x384xf32>
    %565 = arith.select %5, %563, %564 : vector<8x384xi1>, vector<8x384xf32>
    %c0_264 = arith.constant 0 : index
    %c0_265 = arith.constant 0 : index
    %566 = vector.load %arg8[%c0_264, %c0_265] : memref<128x384xf32, #tpu.memory_space<vmem>>, vector<128x384xf32>
    %cst_266 = arith.constant dense<0.000000e+00> : vector<8x384xf32>
    %567 = tpu.matmul %561, %566, %cst_266 {dimension_numbers = #tpu.dot_dimension_numbers<[1], [0], [0], [1], [0, 0, 1, 1], [], []>} : vector<8x128xf32>, vector<128x384xf32>, vector<8x384xf32> -> vector<8x384xf32>
    %568 = vector.extract_strided_slice %565 {offsets = [0, 0], sizes = [8, 128], strides = [1, 1]} : vector<8x384xf32> to vector<8x128xf32>
    %569 = vector.extract_strided_slice %567 {offsets = [0, 0], sizes = [8, 128], strides = [1, 1]} : vector<8x384xf32> to vector<8x128xf32>
    %570 = arith.addf %568, %569 : vector<8x128xf32>
    %571 = arith.negf %570 : vector<8x128xf32>
    %572 = math.exp %571 : vector<8x128xf32>
    %cst_267 = arith.constant 1.000000e+00 : f32
    %573 = vector.broadcast %cst_267 : f32 to vector<8x128xf32>
    %574 = arith.addf %573, %572 : vector<8x128xf32>
    %575 = arith.divf %573, %574 : vector<8x128xf32>
    %576 = vector.extract_strided_slice %565 {offsets = [0, 128], sizes = [8, 128], strides = [1, 1]} : vector<8x384xf32> to vector<8x128xf32>
    %577 = vector.extract_strided_slice %567 {offsets = [0, 128], sizes = [8, 128], strides = [1, 1]} : vector<8x384xf32> to vector<8x128xf32>
    %578 = arith.addf %576, %577 : vector<8x128xf32>
    %579 = arith.negf %578 : vector<8x128xf32>
    %580 = math.exp %579 : vector<8x128xf32>
    %cst_268 = arith.constant 1.000000e+00 : f32
    %581 = vector.broadcast %cst_268 : f32 to vector<8x128xf32>
    %582 = arith.addf %581, %580 : vector<8x128xf32>
    %583 = arith.divf %581, %582 : vector<8x128xf32>
    %584 = vector.extract_strided_slice %565 {offsets = [0, 256], sizes = [8, 128], strides = [1, 1]} : vector<8x384xf32> to vector<8x128xf32>
    %585 = vector.extract_strided_slice %567 {offsets = [0, 256], sizes = [8, 128], strides = [1, 1]} : vector<8x384xf32> to vector<8x128xf32>
    %586 = arith.addf %585, %330 : vector<8x128xf32>
    %587 = arith.mulf %575, %586 : vector<8x128xf32>
    %588 = arith.addf %584, %587 : vector<8x128xf32>
    %589 = math.tanh %588 : vector<8x128xf32>
    %cst_269 = arith.constant 1.000000e+00 : f32
    %590 = vector.broadcast %cst_269 : f32 to vector<8x128xf32>
    %591 = arith.subf %590, %583 : vector<8x128xf32>
    %592 = arith.mulf %591, %589 : vector<8x128xf32>
    %593 = arith.mulf %583, %561 : vector<8x128xf32>
    %594 = arith.addf %592, %593 : vector<8x128xf32>
    %c56_270 = arith.constant 56 : index
    %c0_271 = arith.constant 0 : index
    %595 = vector.load %arg12[%c56_270, %c0_271] : memref<64x128xf32, #tpu.memory_space<vmem>>, vector<8x128xf32>
    tpu.vector_store %arg12[%c56_270, %c0_271], %594 {strides = array<i32>} : memref<64x128xf32, #tpu.memory_space<vmem>>, vector<8x128xf32>,
    %c0_272 = arith.constant 0 : index
    %c0_273 = arith.constant 0 : index
    %596 = vector.load %arg12[%c0_272, %c0_273] : memref<64x128xf32, #tpu.memory_space<vmem>>, vector<8x128xf32>
    %c56_274 = arith.constant 56 : index
    %c0_275 = arith.constant 0 : index
    %597 = vector.load %arg12[%c56_274, %c0_275] : memref<64x128xf32, #tpu.memory_space<vmem>>, vector<8x128xf32>
    %598 = arith.select %2, %596, %597 : vector<8x128xi1>, vector<8x128xf32>
    %c0_276 = arith.constant 0 : index
    %c128 = arith.constant 128 : index
    %599 = vector.load %arg10[%c0_276, %c128] : memref<64x256xf32, #tpu.memory_space<vmem>>, vector<8x128xf32>
    tpu.vector_store %arg10[%c0_276, %c128], %598 {strides = array<i32>} : memref<64x256xf32, #tpu.memory_space<vmem>>, vector<8x128xf32>,
    %c8_277 = arith.constant 8 : index
    %c0_278 = arith.constant 0 : index
    %600 = vector.load %arg12[%c8_277, %c0_278] : memref<64x128xf32, #tpu.memory_space<vmem>>, vector<8x128xf32>
    %c48_279 = arith.constant 48 : index
    %c0_280 = arith.constant 0 : index
    %601 = vector.load %arg12[%c48_279, %c0_280] : memref<64x128xf32, #tpu.memory_space<vmem>>, vector<8x128xf32>
    %602 = arith.select %2, %600, %601 : vector<8x128xi1>, vector<8x128xf32>
    %c8_281 = arith.constant 8 : index
    %c128_282 = arith.constant 128 : index
    %603 = vector.load %arg10[%c8_281, %c128_282] : memref<64x256xf32, #tpu.memory_space<vmem>>, vector<8x128xf32>
    tpu.vector_store %arg10[%c8_281, %c128_282], %602 {strides = array<i32>} : memref<64x256xf32, #tpu.memory_space<vmem>>, vector<8x128xf32>,
    %c16_283 = arith.constant 16 : index
    %c0_284 = arith.constant 0 : index
    %604 = vector.load %arg12[%c16_283, %c0_284] : memref<64x128xf32, #tpu.memory_space<vmem>>, vector<8x128xf32>
    %c40_285 = arith.constant 40 : index
    %c0_286 = arith.constant 0 : index
    %605 = vector.load %arg12[%c40_285, %c0_286] : memref<64x128xf32, #tpu.memory_space<vmem>>, vector<8x128xf32>
    %606 = arith.select %2, %604, %605 : vector<8x128xi1>, vector<8x128xf32>
    %c16_287 = arith.constant 16 : index
    %c128_288 = arith.constant 128 : index
    %607 = vector.load %arg10[%c16_287, %c128_288] : memref<64x256xf32, #tpu.memory_space<vmem>>, vector<8x128xf32>
    tpu.vector_store %arg10[%c16_287, %c128_288], %606 {strides = array<i32>} : memref<64x256xf32, #tpu.memory_space<vmem>>, vector<8x128xf32>,
    %c24_289 = arith.constant 24 : index
    %c0_290 = arith.constant 0 : index
    %608 = vector.load %arg12[%c24_289, %c0_290] : memref<64x128xf32, #tpu.memory_space<vmem>>, vector<8x128xf32>
    %c32_291 = arith.constant 32 : index
    %c0_292 = arith.constant 0 : index
    %609 = vector.load %arg12[%c32_291, %c0_292] : memref<64x128xf32, #tpu.memory_space<vmem>>, vector<8x128xf32>
    %610 = arith.select %2, %608, %609 : vector<8x128xi1>, vector<8x128xf32>
    %c24_293 = arith.constant 24 : index
    %c128_294 = arith.constant 128 : index
    %611 = vector.load %arg10[%c24_293, %c128_294] : memref<64x256xf32, #tpu.memory_space<vmem>>, vector<8x128xf32>
    tpu.vector_store %arg10[%c24_293, %c128_294], %610 {strides = array<i32>} : memref<64x256xf32, #tpu.memory_space<vmem>>, vector<8x128xf32>,
    %c32_295 = arith.constant 32 : index
    %c0_296 = arith.constant 0 : index
    %612 = vector.load %arg12[%c32_295, %c0_296] : memref<64x128xf32, #tpu.memory_space<vmem>>, vector<8x128xf32>
    %c24_297 = arith.constant 24 : index
    %c0_298 = arith.constant 0 : index
    %613 = vector.load %arg12[%c24_297, %c0_298] : memref<64x128xf32, #tpu.memory_space<vmem>>, vector<8x128xf32>
    %614 = arith.select %2, %612, %613 : vector<8x128xi1>, vector<8x128xf32>
    %c32_299 = arith.constant 32 : index
    %c128_300 = arith.constant 128 : index
    %615 = vector.load %arg10[%c32_299, %c128_300] : memref<64x256xf32, #tpu.memory_space<vmem>>, vector<8x128xf32>
    tpu.vector_store %arg10[%c32_299, %c128_300], %614 {strides = array<i32>} : memref<64x256xf32, #tpu.memory_space<vmem>>, vector<8x128xf32>,
    %c40_301 = arith.constant 40 : index
    %c0_302 = arith.constant 0 : index
    %616 = vector.load %arg12[%c40_301, %c0_302] : memref<64x128xf32, #tpu.memory_space<vmem>>, vector<8x128xf32>
    %c16_303 = arith.constant 16 : index
    %c0_304 = arith.constant 0 : index
    %617 = vector.load %arg12[%c16_303, %c0_304] : memref<64x128xf32, #tpu.memory_space<vmem>>, vector<8x128xf32>
    %618 = arith.select %2, %616, %617 : vector<8x128xi1>, vector<8x128xf32>
    %c40_305 = arith.constant 40 : index
    %c128_306 = arith.constant 128 : index
    %619 = vector.load %arg10[%c40_305, %c128_306] : memref<64x256xf32, #tpu.memory_space<vmem>>, vector<8x128xf32>
    tpu.vector_store %arg10[%c40_305, %c128_306], %618 {strides = array<i32>} : memref<64x256xf32, #tpu.memory_space<vmem>>, vector<8x128xf32>,
    %c48_307 = arith.constant 48 : index
    %c0_308 = arith.constant 0 : index
    %620 = vector.load %arg12[%c48_307, %c0_308] : memref<64x128xf32, #tpu.memory_space<vmem>>, vector<8x128xf32>
    %c8_309 = arith.constant 8 : index
    %c0_310 = arith.constant 0 : index
    %621 = vector.load %arg12[%c8_309, %c0_310] : memref<64x128xf32, #tpu.memory_space<vmem>>, vector<8x128xf32>
    %622 = arith.select %2, %620, %621 : vector<8x128xi1>, vector<8x128xf32>
    %c48_311 = arith.constant 48 : index
    %c128_312 = arith.constant 128 : index
    %623 = vector.load %arg10[%c48_311, %c128_312] : memref<64x256xf32, #tpu.memory_space<vmem>>, vector<8x128xf32>
    tpu.vector_store %arg10[%c48_311, %c128_312], %622 {strides = array<i32>} : memref<64x256xf32, #tpu.memory_space<vmem>>, vector<8x128xf32>,
    %c56_313 = arith.constant 56 : index
    %c0_314 = arith.constant 0 : index
    %624 = vector.load %arg12[%c56_313, %c0_314] : memref<64x128xf32, #tpu.memory_space<vmem>>, vector<8x128xf32>
    %c0_315 = arith.constant 0 : index
    %c0_316 = arith.constant 0 : index
    %625 = vector.load %arg12[%c0_315, %c0_316] : memref<64x128xf32, #tpu.memory_space<vmem>>, vector<8x128xf32>
    %626 = arith.select %2, %624, %625 : vector<8x128xi1>, vector<8x128xf32>
    %c56_317 = arith.constant 56 : index
    %c128_318 = arith.constant 128 : index
    %627 = vector.load %arg10[%c56_317, %c128_318] : memref<64x256xf32, #tpu.memory_space<vmem>>, vector<8x128xf32>
    tpu.vector_store %arg10[%c56_317, %c128_318], %626 {strides = array<i32>} : memref<64x256xf32, #tpu.memory_space<vmem>>, vector<8x128xf32>,
    return
  }
  func.func @transform_0(%arg0: i32) -> (i32, i32) {
    %c0_i32 = arith.constant 0 : i32
    %c0_i32_0 = arith.constant 0 : i32
    %c0_i32_1 = arith.constant 0 : i32
    return %c0_i32, %c0_i32_0 : i32, i32
  }
  func.func @transform_1(%arg0: i32) -> (i32, i32) {
    %c0_i32 = arith.constant 0 : i32
    %c0_i32_0 = arith.constant 0 : i32
    %c0_i32_1 = arith.constant 0 : i32
    return %c0_i32, %c0_i32_0 : i32, i32
  }
  func.func @transform_2(%arg0: i32) -> (i32, i32) {
    %c0_i32 = arith.constant 0 : i32
    %c0_i32_0 = arith.constant 0 : i32
    %c0_i32_1 = arith.constant 0 : i32
    return %c0_i32, %c0_i32_0 : i32, i32
  }
  func.func @transform_3(%arg0: i32) -> (i32, i32) {
    %c0_i32 = arith.constant 0 : i32
    %c0_i32_0 = arith.constant 0 : i32
    %c0_i32_1 = arith.constant 0 : i32
    return %c0_i32, %c0_i32_0 : i32, i32
  }
  func.func @transform_4(%arg0: i32) -> (i32, i32) {
    %c0_i32 = arith.constant 0 : i32
    %c0_i32_0 = arith.constant 0 : i32
    %c0_i32_1 = arith.constant 0 : i32
    return %c0_i32, %c0_i32_0 : i32, i32
  }
  func.func @transform_5(%arg0: i32) -> (i32, i32) {
    %c0_i32 = arith.constant 0 : i32
    %c0_i32_0 = arith.constant 0 : i32
    %c0_i32_1 = arith.constant 0 : i32
    return %c0_i32, %c0_i32_0 : i32, i32
  }
  func.func @transform_6(%arg0: i32) -> (i32, i32) {
    %c0_i32 = arith.constant 0 : i32
    %c0_i32_0 = arith.constant 0 : i32
    %c0_i32_1 = arith.constant 0 : i32
    return %c0_i32, %c0_i32_0 : i32, i32
  }
  func.func @transform_7(%arg0: i32) -> (i32, i32) {
    %c0_i32 = arith.constant 0 : i32
    %c0_i32_0 = arith.constant 0 : i32
    %c0_i32_1 = arith.constant 0 : i32
    return %c0_i32, %c0_i32_0 : i32, i32
  }
  func.func @transform_8(%arg0: i32) -> (i32, i32) {
    %c0_i32 = arith.constant 0 : i32
    %c0_i32_0 = arith.constant 0 : i32
    %c0_i32_1 = arith.constant 0 : i32
    return %c0_i32, %c0_i32_0 : i32, i32
  }
  func.func @transform_9(%arg0: i32) -> (i32, i32) {
    %c0_i32 = arith.constant 0 : i32
    %c0_i32_0 = arith.constant 0 : i32
    %c0_i32_1 = arith.constant 0 : i32
    return %c0_i32, %c0_i32_0 : i32, i32
  }
}

</mosaic_0001>

<bundles_post_ra>
// kernel: tpu_custom_call.1
= control target key start
LH: loop header
LB: loop body
LE: loop exit
PB: predicated region body
PF: predicated region fallthrough
CT: control target
= control target key end

     0   :  { %14 = vsyncpa [#allocation6], 0  ;;  %s7971_s0 = inlined_call_operand.vmem [shape: f32[64,16], index: 0, kind: input, shape index: {}]   ;;  %s7972_s1 = inlined_call_operand.vmem [shape: f32[16,384], index: 1, kind: input, shape index: {}]   ;;  %s7973_s2 = inlined_call_operand.vmem [shape: f32[1,384], index: 2, kind: input, shape index: {}]   ;;  %s7974_s3 = inlined_call_operand.hbm [shape: f32[128,384], index: 3, kind: input, shape index: {}]   ;;  %s7975_s4 = inlined_call_operand.vmem [shape: f32[1,128], index: 4, kind: input, shape index: {}]   ;;  %s7976_s5 = inlined_call_operand.hbm [shape: f32[128,384], index: 5, kind: input, shape index: {}]   ;;  %s7977_s6 = inlined_call_operand.vmem [shape: f32[1,384], index: 6, kind: input, shape index: {}]   ;;  %s7978_s7 = inlined_call_operand.hbm [shape: f32[128,384], index: 7, kind: input, shape index: {}]   ;;  %s7979_s8 = inlined_call_operand.vmem [shape: f32[1,128], index: 8, kind: input, shape index: {}]   ;;  %s7980_s9 = inlined_call_operand.hbm [shape: f32[64,256], index: 9, kind: output, shape index: {}]  }
   0x1   :  { %15 = vsyncpa [#allocation9], 0 }
   0x2   :  { %16 = vsyncpa [#allocation7], 0  ;;  %s6540_s30 = smov [#allocation8]   ;;  %s6541_s11 = smov [#allocation5]  }
   0x3   :  { %s42_s10 = sshll.u32 %s6540_s30, 4  ;;  %s28_s12 = sshll.u32 %s6541_s11, 4  ;;  %s43_s10 = int_to_ptr.vmem [resolvable:$true] %s42_s10  ;;  %s6601_s12 = int_to_ptr.vmem [resolvable:$true] %s28_s12 }
   0x4   :  { %s6446_s15 = scalar_lea.hbm %s7976_s5, 6144 }
   0x5   :  { %p6447_p0 = scmp.ne.s32.totalorder %s7976_s5, %s6446_s15  ;;  %p6450_p1 = scmp.lt.u32.totalorder %s6446_s15, %s7976_s5 }
   0x7   :  { %p6452_p2 = pnand %p6450_p1, %p6447_p0 }
   0x9   :  { %6455 = shalt.err (!%p6452_p2)
}
   0xa   :  { %s6456_s20 = scalar_lea.vmem %s43_s10, 6144  ;;  %p6461_p4 = scmp.lt.s32.totalorder %s43_s10, %s43_s10 }
   0xb   :  { %p6457_p3 = scmp.ne.s32.totalorder %s43_s10, %s6456_s20  ;;  %p6462_p5 = scmp.lt.s32.totalorder %s6456_s20, %s6456_s20 }
   0xd   :  { %p6463_p6 = por %p6462_p5, %p6461_p4 }
   0xf   :  { %p6464_p7 = pnand %p6463_p6, %p6457_p3 }
  0x11   :  { %6467 = shalt.err (!%p6464_p7)
}
  0x12   :  { %s6542_s21 = smov 384   ;;  %s6543_s22 = smov 24  }
  0x13   :  { %48 = dma.hbm_to_vmem [thread:$0]  %s7976_s5, 6144, %s43_s10, [#allocation9], %s6542_s21, %s6542_s21, %s6543_s22  }
  0x14   :  { %s6468_s27 = scalar_lea.hbm %s7974_s3, 6144 }
  0x15   :  { %p6469_p8 = scmp.ne.s32.totalorder %s7974_s3, %s6468_s27  ;;  %p6472_p9 = scmp.lt.u32.totalorder %s6468_s27, %s7974_s3 }
  0x17   :  { %p6474_p10 = pnand %p6472_p9, %p6469_p8 }
  0x19   :  { %6477 = shalt.err (!%p6474_p10)
}
  0x1a   :  { %s6478_s13 = scalar_lea.vmem %s6601_s12, 6144  ;;  %p6483_p12 = scmp.lt.s32.totalorder %s6601_s12, %s6601_s12 }
  0x1b   :  { %p6479_p11 = scmp.ne.s32.totalorder %s6601_s12, %s6478_s13  ;;  %p6484_p13 = scmp.lt.s32.totalorder %s6478_s13, %s6478_s13 }
  0x1d   :  { %p6485_p0 = por %p6484_p13, %p6483_p12 }
  0x1f   :  { %p6486_p1 = pnand %p6485_p0, %p6479_p11 }
  0x21   :  { %6489 = shalt.err (!%p6486_p1)
}
  0x22   :  { %34 = dma.hbm_to_vmem [thread:$0]  %s7974_s3, 6144, %s6601_s12, [#allocation6], %s6542_s21, %s6542_s21, %s6543_s22  }
  0x23   :  { %s6544_s14 = smov [#allocation10]   ;;  %s6490_s18 = scalar_lea.hbm %s7978_s7, 6144 }
  0x24   :  { %s56_s15 = sshll.u32 %s6544_s14, 4  ;;  %p6491_p2 = scmp.ne.s32.totalorder %s7978_s7, %s6490_s18  ;;  %s57_s15 = int_to_ptr.vmem [resolvable:$true] %s56_s15 }
  0x25   :  { %p6494_p3 = scmp.lt.u32.totalorder %s6490_s18, %s7978_s7 }
  0x27   :  { %p6496_p4 = pnand %p6494_p3, %p6491_p2 }
  0x29   :  { %6499 = shalt.err (!%p6496_p4)
}
  0x2a   :  { %s6500_s25 = scalar_lea.vmem %s57_s15, 6144  ;;  %p6505_p6 = scmp.lt.s32.totalorder %s57_s15, %s57_s15 }
  0x2b   :  { %p6501_p5 = scmp.ne.s32.totalorder %s57_s15, %s6500_s25  ;;  %p6506_p7 = scmp.lt.s32.totalorder %s6500_s25, %s6500_s25 }
  0x2d   :  { %p6507_p8 = por %p6506_p7, %p6505_p6 }
  0x2f   :  { %p6508_p9 = pnand %p6507_p8, %p6501_p5 }
  0x31   :  { %6511 = shalt.err (!%p6508_p9)
}
  0x32   :  { %62 = dma.hbm_to_vmem [thread:$0]  %s7978_s7, 6144, %s57_s15, [#allocation9], %s6542_s21, %s6542_s21, %s6543_s22  }
  0x33   :  { %6534 = dma.done.wait [#allocation6], 6144  }
  0x34   :  { %6535 = vsyncadd [#allocation6], 4294961152 }
  0x35   :  { %6536 = dma.done.wait [#allocation9], 12288  }
  0x36   :  { %6537 = vsyncadd [#allocation9], 4294955008  ;;  %v7984_v0 = vmov 0.0   ;;  %v86_v1 = vld [vmem:[%s7972_s1 + $0x8] sm:$0xff]  ;;  %v89_v2 = vld [vmem:[%s7972_s1 + $0x20] sm:$0xff]  ;;  %vm108_vm0 = vcmask 130048  }
  0x37   :  { %197 = vmatprep.mubr.f32.mxu0 %v7984_v0  ;;  %v85_v3 = vld [vmem:[%s7972_s1] sm:$0xff]  ;;  %v5306_v4 = vpack.c.bf16 %v89_v2, %v86_v1  ;;  %v88_v5 = vld [vmem:[%s7972_s1 + $0x18] sm:$0xff]  ;;  %v395_v9 = vld [vmem:[#allocation5 + $0x20] sm:$0xff]  ;;  %v7986_v31 = vmov 0.0|0.0   ;;  %vm6547_vm1 = vmmov 0  }
  0x38   :  { %v77_v6 = vld [vmem:[%s7971_s0] sm:$0xff]  ;;  %v392_v7 = vld [vmem:[#allocation5 + $0x8] sm:$0xff]  ;;  %v5308_v8 = vpack.c.bf16 %v88_v5, %v85_v3  ;;  %v391_v10 = vld [vmem:[#allocation5] sm:$0xff] }
  0x39   :  { %v394_v11 = vld [vmem:[#allocation5 + $0x18] sm:$0xff]  ;;  %4690 = vmatprep.mubr.msk.f32.mxu1 %vm108_vm0, %v77_v6  ;;  %5307 = vmatprep.subr.bf16.mxu0 %v5306_v4  ;;  %v6670_v12 = vpack.c.bf16 %v395_v9, %v392_v7  ;;  %v401_v14 = vld [vmem:[#allocation5 + $0x50] sm:$0xff]  ;;  %v400_v18 = vld [vmem:[#allocation5 + $0x48] sm:$0xff] }
  0x3a   :  { %v398_v13 = vld [vmem:[#allocation5 + $0x38] sm:$0xff]  ;;  %5309 = vmatpush1.bf16.msra.mxu0 %v5308_v8  ;;  %v6672_v15 = vpack.c.bf16 %v394_v11, %v391_v10  ;;  %v397_v17 = vld [vmem:[#allocation5 + $0x30] sm:$0xff]  ;;  %v404_v19 = vld [vmem:[#allocation5 + $0x68] sm:$0xff] }
  0x3b   :  { %5315 = vmatprep.subr.bf16.mxu0 %v6670_v12  ;;  %v6675_v16 = vpack.c.bf16 %v401_v14, %v398_v13  ;;  %v407_v20 = vld [vmem:[#allocation5 + $0x80] sm:$0xff]  ;;  %v90_v22 = vld [vmem:[%s7972_s1 + $0x28] sm:$0xff]  ;;  %v6689_v25 = vpack.c.bf16 %v400_v18, %v397_v17  ;;  %v413_v30 = vld [vmem:[#allocation5 + $0xb0] sm:$0xff] }
  0x3c   :  { %v87_v21 = vld [vmem:[%s7972_s1 + $0x10] sm:$0xff]  ;;  %v78_v24 = vld [vmem:[%s7971_s0 + $0x8] sm:$0xff]  ;;  %v6692_v26 = vpack.c.bf16 %v407_v20, %v404_v19  ;;  %v409_v35 = vld [vmem:[#allocation5 + $0x90] sm:$0xff] }
  0x3d   :  { %4330 = vmatmul.mubr.msk.f32.vlgmr.msra.gmra.mrb[0].mxu0 %vm108_vm0, %v77_v6  ;;  %v5310_v23 = vpack.c.bf16 %v90_v22, %v87_v21  ;;  %v403_v27 = vld [vmem:[#allocation5 + $0x60] sm:$0xff]  ;;  %v406_v28 = vld [vmem:[#allocation5 + $0x78] sm:$0xff]  ;;  %v412_v36 = vld [vmem:[#allocation5 + $0xa8] sm:$0xff] }
  0x3e   :  { %5317 = vmatpush1.bf16.msra.mxu0 %v6672_v15  ;;  %203 = vmatprep.mubr.f32.mxu0 %v7984_v0  ;;  %v410_v29 = vld [vmem:[#allocation5 + $0x98] sm:$0xff]  ;;  %v79_v32 = vld [vmem:[%s7971_s0 + $0x10] sm:$0xff]  ;;  %v6701_v33 = vpack.c.bf16 %v406_v28, %v403_v27  ;;  %v416_v37 = vld [vmem:[#allocation5 + $0xc8] sm:$0xff]  ;;  %v6716_v43 = vpack.c.bf16 %v412_v36, %v409_v35  ;;  %v74_v36 = vlaneseq }
  0x3f   :  { %5319 = vmatprep.subr.bf16.mxu0 %v6675_v16  ;;  %5311 = vmatprep.subr.bf16.mxu1 %v5310_v23  ;;  %v6704_v34 = vpack.c.bf16 %v413_v30, %v410_v29  ;;  %v419_v38 = vld [vmem:[#allocation5 + $0xe0] sm:$0xff]  ;;  %v393_v39 = vld [vmem:[#allocation5 + $0x10] sm:$0xff]  ;;  %v396_v40 = vld [vmem:[#allocation5 + $0x28] sm:$0xff] }
  0x40   :  { %5313 = vmatpush3.bf16.msra.mxu1 %v5310_v23  ;;  %v6709_v41 = vpack.c.bf16 %v396_v40, %v393_v39  ;;  %v80_v42 = vld [vmem:[%s7971_s0 + $0x18] sm:$0xff]  ;;  %v399_v44 = vld [vmem:[#allocation5 + $0x40] sm:$0xff]  ;;  %v402_v45 = vld [vmem:[#allocation5 + $0x58] sm:$0xff]  ;;  %v6722_v47 = vpack.c.bf16 %v419_v38, %v416_v37  ;;  %v6841_v37 = vshrl.u32 %v74_v36, 7 }
  0x41   :  { %4331 = vmatmul.mubr.msk.f32.gmra.mrb[2].mxu0 %vm108_vm0, %v78_v24  ;;  %5346 = vmatprep.subr.bf16.mxu1 %v7986_v31  ;;  %v81_v46 = vld [vmem:[%s7971_s0 + $0x20] sm:$0xff]  ;;  %v415_v48 = vld [vmem:[#allocation5 + $0xc0] sm:$0xff]  ;;  %v418_v49 = vld [vmem:[#allocation5 + $0xd8] sm:$0xff]  ;;  %v6727_v52 = vpack.c.bf16 %v402_v45, %v399_v44 }
  0x42   :  { %5321 = vmatpush1.bf16.msra.mxu0 %v6689_v25  ;;  %209 = vmatprep.mubr.f32.mxu0 %v7984_v0  ;;  %v422_v50 = vld [vmem:[#allocation5 + $0xf8] sm:$0xff]  ;;  %v425_v51 = vld [vmem:[#allocation5 + $0x110] sm:$0xff]  ;;  %v83_v53 = vld [vmem:[%s7971_s0 + $0x30] sm:$0xff]  ;;  %v6736_v56 = vpack.c.bf16 %v418_v49, %v415_v48  ;;  %7990 = vst [vmem:[#allocation15_spill] sm:$0xff] %v6841_v37  ;;  %v7982_v38 = vsub.s32 0, %v6841_v37  ;;  %v7983_v39 = vsub.s32 2, %v6841_v37 }
  0x43   :  { %5323 = vmatprep.subr.bf16.mxu0 %v6692_v26  ;;  %4691 = vmatmul.mubr.msk.f32.vlgmr.msra.gmra.mrb[0].mxu1 %vm108_vm0, %v78_v24  ;;  %v405_v54 = vld [vmem:[#allocation5 + $0x70] sm:$0xff]  ;;  %v408_v55 = vld [vmem:[#allocation5 + $0x88] sm:$0xff]  ;;  %v82_v57 = vld [vmem:[%s7971_s0 + $0x28] sm:$0xff]  ;;  %v6742_v58 = vpack.c.bf16 %v425_v51, %v422_v50  ;;  %v7981_v44 = vsub.s32 1, %v6841_v37 }
  0x44   :  { %4693 = vmatprep.mubr.msk.f32.mxu1 %vm108_vm0, %v79_v32  ;;  %5348 = vmatpush3.bf16.msra.mxu1 %v6709_v41  ;;  %v421_v59 = vld [vmem:[#allocation5 + $0xf0] sm:$0xff]  ;;  %v424_v60 = vld [vmem:[#allocation5 + $0x108] sm:$0xff]  ;;  %v431_v62 = vld [vmem:[#allocation5 + $0x140] sm:$0xff]  ;;  %v6750_v1 = vpack.c.bf16 %v408_v55, %v405_v54 }
  0x45   :  { %4332 = vmatmul.mubr.msk.f32.gmra.mrb[4].mxu0 %vm108_vm0, %v79_v32  ;;  %5349 = vmatprep.subr.bf16.mxu1 %v7986_v31  ;;  %v428_v61 = vld [vmem:[#allocation5 + $0x128] sm:$0xff]  ;;  %v411_v2 = vld [vmem:[#allocation5 + $0xa0] sm:$0xff]  ;;  %v414_v3 = vld [vmem:[#allocation5 + $0xb8] sm:$0xff]  ;;  %v6756_v4 = vpack.c.bf16 %v424_v60, %v421_v59 }
  0x46   :  { %5325 = vmatpush1.bf16.msra.mxu0 %v6701_v33  ;;  %215 = vmatprep.mubr.f32.mxu0 %v7984_v0  ;;  %v84_v63 = vld [vmem:[%s7971_s0 + $0x38] sm:$0xff]  ;;  %v6759_v5 = vpack.c.bf16 %v431_v62, %v428_v61  ;;  %v427_v6 = vld [vmem:[#allocation5 + $0x120] sm:$0xff]  ;;  %v430_v7 = vld [vmem:[#allocation5 + $0x138] sm:$0xff]  ;;  %v6763_v10 = vpack.c.bf16 %v414_v3, %v411_v2 }
  0x47   :  { %5327 = vmatprep.subr.bf16.mxu0 %v6704_v34  ;;  %4694 = vmatmul.mubr.msk.f32.gmra.mrb[2].mxu1 %vm108_vm0, %v80_v42  ;;  %v434_v8 = vld [vmem:[#allocation5 + $0x158] sm:$0xff]  ;;  %v437_v9 = vld [vmem:[#allocation5 + $0x170] sm:$0xff]  ;;  %v420_v13 = vld [vmem:[#allocation5 + $0xe8] sm:$0xff]  ;;  %v6771_v14 = vpack.c.bf16 %v430_v7, %v427_v6  ;;  %v6867_v7 = vand.u32 127, %v74_v36 }
  0x48   :  { %4696 = vmatprep.mubr.msk.f32.mxu1 %vm108_vm0, %v81_v46  ;;  %5351 = vmatpush3.bf16.msra.mxu1 %v6727_v52  ;;  %v417_v11 = vld [vmem:[#allocation5 + $0xd0] sm:$0xff]  ;;  %v6774_v17 = vpack.c.bf16 %v437_v9, %v434_v8  ;;  %v436_v19 = vld [vmem:[#allocation5 + $0x168] sm:$0xff]  ;;  %v423_v21 = vld [vmem:[#allocation5 + $0x100] sm:$0xff] }
  0x49   :  { %4333 = vmatmul.mubr.msk.f32.gmra.mrb[6].mxu0 %vm108_vm0, %v80_v42  ;;  %5352 = vmatprep.subr.bf16.mxu1 %v7986_v31  ;;  %v433_v18 = vld [vmem:[#allocation5 + $0x150] sm:$0xff]  ;;  %v6777_v20 = vpack.c.bf16 %v420_v13, %v417_v11  ;;  %v426_v22 = vld [vmem:[#allocation5 + $0x118] sm:$0xff]  ;;  %v432_v28 = vld [vmem:[#allocation5 + $0x148] sm:$0xff]  ;;  %vm76_vm2 = vcmp.lt.s32.totalorder %v6867_v7, 64 }
  0x4a   :  { %5329 = vmatpush1.bf16.msra.mxu0 %v6716_v43  ;;  %221 = vmatprep.mubr.f32.mxu0 %v7984_v0  ;;  %v6783_v23 = vpack.c.bf16 %v436_v19, %v433_v18  ;;  %v6787_v24 = vpack.c.bf16 %v426_v22, %v423_v21  ;;  %v429_v27 = vld [vmem:[#allocation5 + $0x130] sm:$0xff]  ;;  %v435_v30 = vld [vmem:[#allocation5 + $0x160] sm:$0xff]  ;;  %v438_v32 = vld [vmem:[#allocation5 + $0x178] sm:$0xff] }
  0x4b   :  { %5331 = vmatprep.subr.bf16.mxu0 %v6722_v47  ;;  %4697 = vmatmul.mubr.msk.f32.gmra.mrb[4].mxu1 %vm108_vm0, %v82_v57  ;;  %v6795_v29 = vpack.c.bf16 %v432_v28, %v429_v27  ;;  %v6803_v35 = vpack.c.bf16 %v438_v32, %v435_v30  ;;  %v91_v40 = vld [vmem:[%s7973_s2] sm:$0x7] }
  0x4c   :  { %4699 = vmatprep.mubr.msk.f32.mxu1 %vm108_vm0, %v83_v53  ;;  %5354 = vmatpush3.bf16.msra.mxu1 %v6750_v1  ;;  %v104_v48 = vrot.slane %v91_v40, %v7983_v39  ;;  %v6861_v49 = vrot.slane %v91_v40, %v7981_v44 }
  0x4d   :  { %4334 = vmatmul.mubr.msk.f32.gmra.mrb[8].mxu0 %vm108_vm0, %v81_v46  ;;  %5355 = vmatprep.subr.bf16.mxu1 %v7986_v31  ;;  %v6855_v46 = vrot.slane %v91_v40, %v7982_v38 }
  0x4e   :  { %5333 = vmatpush1.bf16.msra.mxu0 %v6736_v56  ;;  %227 = vmatprep.mubr.f32.mxu0 %v7984_v0 }
  0x4f   :  { %5335 = vmatprep.subr.bf16.mxu0 %v6742_v58  ;;  %4700 = vmatmul.mubr.msk.f32.gmra.mrb[6].mxu1 %vm108_vm0, %v84_v63 }
  0x50   :  { %4734 = vmatprep.mubr.msk.f32.mxu1 %vm6547_vm1, %v7984_v0  ;;  %5357 = vmatpush3.bf16.msra.mxu1 %v6763_v10 }
  0x51   :  { %4335 = vmatmul.mubr.msk.f32.gmra.mrb[10].mxu0 %vm108_vm0, %v82_v57  ;;  %5358 = vmatprep.subr.bf16.mxu1 %v7986_v31 }
  0x52   :  { %5337 = vmatpush1.bf16.msra.mxu0 %v6756_v4  ;;  %233 = vmatprep.mubr.f32.mxu0 %v7984_v0 }
  0x53   :  { %5339 = vmatprep.subr.bf16.mxu0 %v6759_v5 }
  0x54   :  { %5360 = vmatpush3.bf16.msra.mxu1 %v6777_v20 }
  0x55   :  { %4336 = vmatmul.mubr.msk.f32.gmra.mrb[12].mxu0 %vm108_vm0, %v83_v53  ;;  %5361 = vmatprep.subr.bf16.mxu1 %v7986_v31 }
  0x56   :  { %5341 = vmatpush1.bf16.msra.mxu0 %v6771_v14  ;;  %239 = vmatprep.mubr.f32.mxu0 %v7984_v0 }
  0x57   :  { %5343 = vmatprep.subr.bf16.mxu0 %v6774_v17 }
  0x58   :  { %5363 = vmatpush3.bf16.msra.mxu1 %v6787_v24 }
  0x59   :  { %4337 = vmatmul.mubr.msk.f32.gmra.mrb[14].mxu0 %vm108_vm0, %v84_v63  ;;  %5364 = vmatprep.subr.bf16.mxu1 %v7986_v31 }
  0x5a   :  { %5345 = vmatpush1.bf16.msra.mxu0 %v6783_v23  ;;  %503 = vmatprep.mubr.f32.mxu0 %v7984_v0 }
  0x5b   :  { %5371 = vmatprep.subr.bf16.mxu0 %v6670_v12 }
  0x5c   :  { %5366 = vmatpush3.bf16.msra.mxu1 %v6795_v29 }
  0x5d   :  { %504 = vmatmul.mubr.f32.vlgmr.msra.gmra.mrb[16].mxu0 %v7984_v0  ;;  %5367 = vmatprep.subr.bf16.mxu1 %v7986_v31 }
  0x5e   :  { %5373 = vmatpush1.bf16.msra.mxu0 %v6672_v15  ;;  %724 = vmatprep.mubr.f32.mxu0 %v7984_v0 }
  0x5f   :  { %5375 = vmatprep.subr.bf16.mxu0 %v6675_v16 }
  0x60   :  { %5369 = vmatpush3.bf16.msra.mxu1 %v6803_v35 }
  0x61   :  { %5402 = vmatprep.subr.bf16.mxu1 %v7986_v31 }
  0x62   :  { %5377 = vmatpush1.bf16.msra.mxu0 %v6689_v25 }
  0x63   :  { %5379 = vmatprep.subr.bf16.mxu0 %v6692_v26  ;;  %4735 = vmatmul.mubr.f32.vlgmr.msra.gmra.mrb[8].mxu1 %v7984_v0 }
  0x64   :  { %5404 = vmatpush3.bf16.msra.mxu1 %v6709_v41  ;;  %4769 = vmatprep.mubr.msk.f32.mxu1 %vm6547_vm1, %v7984_v0 }
  0x65   :  { %5405 = vmatprep.subr.bf16.mxu1 %v7986_v31 }
  0x66   :  { %5381 = vmatpush1.bf16.msra.mxu0 %v6701_v33 }
  0x67   :  { %5383 = vmatprep.subr.bf16.mxu0 %v6704_v34 }
  0x68   :  { %5407 = vmatpush3.bf16.msra.mxu1 %v6727_v52 }
  0x69   :  { %5408 = vmatprep.subr.bf16.mxu1 %v7986_v31 }
  0x6a   :  { %5385 = vmatpush1.bf16.msra.mxu0 %v6716_v43 }
  0x6b   :  { %5387 = vmatprep.subr.bf16.mxu0 %v6722_v47 }
  0x6c   :  { %5410 = vmatpush3.bf16.msra.mxu1 %v6750_v1 }
  0x6d   :  { %5411 = vmatprep.subr.bf16.mxu1 %v7986_v31 }
  0x6e   :  { %5389 = vmatpush1.bf16.msra.mxu0 %v6736_v56 }
  0x6f   :  { %5391 = vmatprep.subr.bf16.mxu0 %v6742_v58 }
  0x70   :  { %5413 = vmatpush3.bf16.msra.mxu1 %v6763_v10 }
  0x71   :  { %5414 = vmatprep.subr.bf16.mxu1 %v7986_v31 }
  0x72   :  { %5393 = vmatpush1.bf16.msra.mxu0 %v6756_v4 }
  0x73   :  { %5395 = vmatprep.subr.bf16.mxu0 %v6759_v5 }
  0x74   :  { %5416 = vmatpush3.bf16.msra.mxu1 %v6777_v20 }
  0x75   :  { %5417 = vmatprep.subr.bf16.mxu1 %v7986_v31 }
  0x76   :  { %5397 = vmatpush1.bf16.msra.mxu0 %v6771_v14 }
  0x77   :  { %5399 = vmatprep.subr.bf16.mxu0 %v6774_v17 }
  0x78   :  { %5419 = vmatpush3.bf16.msra.mxu1 %v6787_v24 }
  0x79   :  { %5420 = vmatprep.subr.bf16.mxu1 %v7986_v31 }
  0x7a   :  { %5401 = vmatpush1.bf16.msra.mxu0 %v6783_v23 }
  0x7b   :  { %5427 = vmatprep.subr.bf16.mxu0 %v6670_v12 }
  0x7c   :  { %5422 = vmatpush3.bf16.msra.mxu1 %v6795_v29 }
  0x7d   :  { %5423 = vmatprep.subr.bf16.mxu1 %v7986_v31 }
  0x80   :  { %5425 = vmatpush3.bf16.msra.mxu1 %v6803_v35 }
  0x81   :  { %5458 = vmatprep.subr.bf16.mxu1 %v7986_v31  ;;  %v6977_v31 = vld [vmem:[%s7975_s4] ss:$0 sm:$0xff] }
 0x110   :  { %v6848_v42 = vpop.f32.mrb[0].mxu0 }
 0x111   :  { %v6851_v45 = vpop.f32.mrb[1].mxu0 }
 0x114   :  { %v205_v50 = vpop.f32.mrb[2].mxu0 }
 0x115   :  { %v206_v51 = vadd.f32 %v205_v50, %v6855_v46  ;;  %v207_v53 = vpop.f32.mrb[3].mxu0 }
 0x116   :  { %v208_v54 = vadd.f32 %v207_v53, %v6861_v49  ;;  %v4692_v55 = vpop.f32.mrb[0].mxu1 }
 0x117   :  { %v318_v57 = vadd.f32 %v4692_v55, %v104_v48  ;;  %v312_v59 = vpop.f32.mrb[1].mxu1 }
 0x118   :  { %v211_v60 = vpop.f32.mrb[4].mxu0  ;;  %v313_v40 = vadd.f32 %v312_v59, %v104_v48 }
 0x119   :  { %v212_v61 = vadd.f32 %v211_v60, %v6855_v46  ;;  %v213_v62 = vpop.f32.mrb[5].mxu0 }
 0x11a   :  { %v214_v63 = vadd.f32 %v213_v62, %v6861_v49  ;;  %v4695_v2 = vpop.f32.mrb[2].mxu1 }
 0x11b   :  { %v328_v3 = vadd.f32 %v4695_v2, %v104_v48  ;;  %v322_v6 = vpop.f32.mrb[3].mxu1 }
 0x11c   :  { %v217_v8 = vpop.f32.mrb[6].mxu0  ;;  %v323_v9 = vadd.f32 %v322_v6, %v104_v48 }
 0x11d   :  { %v218_v11 = vadd.f32 %v217_v8, %v6855_v46  ;;  %v219_v13 = vpop.f32.mrb[7].mxu0 }
 0x11e   :  { %v220_v18 = vadd.f32 %v219_v13, %v6861_v49  ;;  %v4698_v19 = vpop.f32.mrb[4].mxu1 }
 0x11f   :  { %v338_v21 = vadd.f32 %v4698_v19, %v104_v48  ;;  %v332_v22 = vpop.f32.mrb[5].mxu1 }
 0x120   :  { %v223_v27 = vpop.f32.mrb[8].mxu0  ;;  %v333_v28 = vadd.f32 %v332_v22, %v104_v48 }
 0x121   :  { %v224_v30 = vadd.f32 %v223_v27, %v6855_v46  ;;  %v225_v32 = vpop.f32.mrb[9].mxu0  ;;  %v6875_v36 = vsel %vm76_vm2, %v323_v9, %v338_v21  ;;  %v6879_v50 = vsel %vm76_vm2, %v338_v21, %v323_v9 }
 0x122   :  { %v226_v53 = vadd.f32 %v225_v32, %v6861_v49  ;;  %v6884_v55 = vsel %vm76_vm2, %v328_v3, %v333_v28  ;;  %v6888_v60 = vsel %vm76_vm2, %v333_v28, %v328_v3  ;;  %v4701_v62 = vpop.f32.mrb[6].mxu1 }
 0x123   :  { %v348_v59 = vadd.f32 %v4701_v62, %v104_v48  ;;  %v342_v2 = vpop.f32.mrb[7].mxu1  ;;  %v6892_v6 = vsel %vm76_vm2, %v218_v11, %v224_v30  ;;  %v6896_v8 = vsel %vm76_vm2, %v224_v30, %v218_v11 }
 0x124   :  { %v229_v9 = vpop.f32.mrb[10].mxu0  ;;  %v343_v13 = vadd.f32 %v342_v2, %v104_v48  ;;  %v6900_v19 = vsel %vm76_vm2, %v220_v18, %v226_v53  ;;  %v6904_v3 = vsel %vm76_vm2, %v226_v53, %v220_v18 }
 0x125   :  { %v230_v21 = vadd.f32 %v229_v9, %v6855_v46  ;;  %v231_v22 = vpop.f32.mrb[11].mxu0  ;;  %v390_v27 = vsel %vm76_vm2, %v313_v40, %v348_v59  ;;  %v6911_v11 = vsel %vm76_vm2, %v348_v59, %v313_v40 }
 0x126   :  { %v232_v48 = vadd.f32 %v231_v22, %v6861_v49  ;;  %v6916_v28 = vsel %vm76_vm2, %v318_v57, %v343_v13  ;;  %v6920_v18 = vsel %vm76_vm2, %v343_v13, %v318_v57  ;;  %v200_v22 = vadd.f32 %v6848_v42, %v6855_v46 }
 0x127   :  { %v6924_v30 = vsel %vm76_vm2, %v212_v61, %v230_v21  ;;  %v6928_v32 = vsel %vm76_vm2, %v230_v21, %v212_v61 }
 0x128   :  { %v235_v40 = vpop.f32.mrb[12].mxu0  ;;  %v6932_v53 = vsel %vm76_vm2, %v214_v63, %v232_v48  ;;  %v6936_v62 = vsel %vm76_vm2, %v232_v48, %v214_v63 }
 0x129   :  { %v236_v57 = vadd.f32 %v235_v40, %v6855_v46  ;;  %v237_v59 = vpop.f32.mrb[13].mxu0 }
 0x12a   :  { %v238_v2 = vadd.f32 %v237_v59, %v6861_v49  ;;  %v202_v59 = vadd.f32 %v6851_v45, %v6861_v49 }
 0x12b   :  { %v6942_v9 = vsel %vm76_vm2, %v206_v51, %v236_v57  ;;  %v6946_v61 = vsel %vm76_vm2, %v236_v57, %v206_v51 }
 0x12c   :  { %v241_v13 = vpop.f32.mrb[14].mxu0  ;;  %v6950_v21 = vsel %vm76_vm2, %v208_v54, %v238_v2  ;;  %v6954_v63 = vsel %vm76_vm2, %v238_v2, %v208_v54 }
 0x12d   :  { %v242_v48 = vadd.f32 %v241_v13, %v6855_v46  ;;  %v243_v40 = vpop.f32.mrb[15].mxu0 }
 0x12e   :  { %v244_v51 = vadd.f32 %v243_v40, %v6861_v49 }
 0x12f   :  { %v388_v57 = vsel %vm76_vm2, %v200_v22, %v242_v48  ;;  %v6966_v44 = vsel %vm76_vm2, %v242_v48, %v200_v22 }
 0x130   :  { %v505_v54 = vpop.f32.mrb[16].mxu0  ;;  %v389_v2 = vsel %vm76_vm2, %v202_v59, %v244_v51  ;;  %v6972_v42 = vsel %vm76_vm2, %v244_v51, %v202_v59 }
 0x131   :  { %v580_v46 = vadd.f32 %v505_v54, %v388_v57  ;;  %v507_v13 = vpop.f32.mrb[17].mxu0 }
 0x132   :  { %v587_v45 = vadd.f32 %v507_v13, %v389_v2 }
 0x133   :  { %v4347_v38 = vmul.f32 -1.442695, %v580_v46 }
 0x134   :  { %v4348_v49 = vmul.f32 -1.442695, %v587_v45 }
 0x135   :  { %6285 = vpow2.f32 %v4347_v38 }
 0x136   :  { %v576_v40 = vpop.f32.mrb[8].mxu1  ;;  %6287 = vpow2.f32 %v4348_v49  ;;  %v7991_v49 = vmov 0.0|0.0  }
 0x137   :  { %v4736_v39 = vpop.f32.mrb[9].mxu1  ;;  %v594_v51 = vadd.f32 %v6977_v31, %v576_v40 }
 0x13f   :  { %v6286_v0 = vpop.eup %6285 }
 0x140   :  { %v584_v22 = vadd.f32 1.0, %v6286_v0  ;;  %v6288_v48 = vpop.eup %6287 }
 0x141   :  { %v591_v59 = vadd.f32 1.0, %v6288_v48 }
 0x142   :  { %6289 = vrcp.f32 %v584_v22 }
 0x143   :  { %6291 = vrcp.f32 %v591_v59 }
 0x14c   :  { %v6290_v57 = vpop.eup %6289 }
 0x14d   :  { %v595_v54 = vmul.f32 %v6290_v57, %v594_v51  ;;  %v6292_v2 = vpop.eup %6291 }
 0x14e   :  { %v598_v39 = vsub.f32 1.0, %v6292_v2  ;;  %v600_v0 = vmul.f32 0.0, %v6292_v2 }
 0x14f   :  { %v596_v38 = vadd.f32 %v595_v54, %v390_v27  ;;  %v7992_v27 = vmov 0.0  }
 0x151   :  { %6293 = vtanh.f32 %v596_v38 }
 0x15b   :  { %v6294_v46 = vpop.eup %6293 }
 0x15c   :  { %v599_v13 = vmul.f32 %v6294_v46, %v598_v39 }
 0x15e   :  { %v6980_v45 = vadd.f32 %v600_v0, %v599_v13 }
 0x160   :  { %725 = vmatmul.mubr.f32.vlgmr.msra.gmra.mrb[18].mxu0 %v6980_v45  ;;  %4770 = vmatmul.mubr.f32.vlgmr.msra.gmra.mrb[10].mxu1 %v6980_v45 }
 0x161   :  { %5429 = vmatpush1.bf16.msra.mxu0 %v6672_v15  ;;  %5460 = vmatpush3.bf16.msra.mxu1 %v6709_v41 }
 0x162   :  { %5431 = vmatprep.subr.bf16.mxu0 %v6675_v16  ;;  %5461 = vmatprep.subr.bf16.mxu1 %v7991_v49 }
 0x163   :  { %945 = vmatprep.mubr.f32.mxu0 %v7992_v27  ;;  %4804 = vmatprep.mubr.msk.f32.mxu1 %vm6547_vm1, %v7992_v27 }
 0x165   :  { %5433 = vmatpush1.bf16.msra.mxu0 %v6689_v25  ;;  %5463 = vmatpush3.bf16.msra.mxu1 %v6727_v52 }
 0x166   :  { %5435 = vmatprep.subr.bf16.mxu0 %v6692_v26  ;;  %5464 = vmatprep.subr.bf16.mxu1 %v7991_v49 }
 0x169   :  { %5437 = vmatpush1.bf16.msra.mxu0 %v6701_v33  ;;  %5466 = vmatpush3.bf16.msra.mxu1 %v6750_v1 }
 0x16a   :  { %5439 = vmatprep.subr.bf16.mxu0 %v6704_v34  ;;  %5467 = vmatprep.subr.bf16.mxu1 %v7991_v49 }
 0x16d   :  { %5441 = vmatpush1.bf16.msra.mxu0 %v6716_v43  ;;  %5469 = vmatpush3.bf16.msra.mxu1 %v6763_v10 }
 0x16e   :  { %5443 = vmatprep.subr.bf16.mxu0 %v6722_v47  ;;  %5470 = vmatprep.subr.bf16.mxu1 %v7991_v49 }
 0x171   :  { %5445 = vmatpush1.bf16.msra.mxu0 %v6736_v56  ;;  %5472 = vmatpush3.bf16.msra.mxu1 %v6777_v20 }
 0x172   :  { %5447 = vmatprep.subr.bf16.mxu0 %v6742_v58  ;;  %5473 = vmatprep.subr.bf16.mxu1 %v7991_v49 }
 0x175   :  { %5449 = vmatpush1.bf16.msra.mxu0 %v6756_v4  ;;  %5475 = vmatpush3.bf16.msra.mxu1 %v6787_v24 }
 0x176   :  { %5451 = vmatprep.subr.bf16.mxu0 %v6759_v5  ;;  %5476 = vmatprep.subr.bf16.mxu1 %v7991_v49 }
 0x179   :  { %5453 = vmatpush1.bf16.msra.mxu0 %v6771_v14  ;;  %5478 = vmatpush3.bf16.msra.mxu1 %v6795_v29 }
 0x17a   :  { %5455 = vmatprep.subr.bf16.mxu0 %v6774_v17  ;;  %5479 = vmatprep.subr.bf16.mxu1 %v7991_v49 }
 0x17d   :  { %5457 = vmatpush1.bf16.msra.mxu0 %v6783_v23  ;;  %5481 = vmatpush3.bf16.msra.mxu1 %v6803_v35 }
 0x17e   :  { %5483 = vmatprep.subr.bf16.mxu0 %v6670_v12  ;;  %5514 = vmatprep.subr.bf16.mxu1 %v7991_v49 }
 0x233   :  { %v726_v40 = vpop.f32.mrb[18].mxu0  ;;  %v797_v22 = vpop.f32.mrb[10].mxu1 }
 0x234   :  { %v801_v48 = vadd.f32 %v726_v40, %v6942_v9  ;;  %v728_v59 = vpop.f32.mrb[19].mxu0  ;;  %v4771_v51 = vpop.f32.mrb[11].mxu1  ;;  %v815_v12 = vadd.f32 %v6977_v31, %v797_v22 }
 0x235   :  { %v808_v57 = vadd.f32 %v728_v59, %v6950_v21 }
 0x236   :  { %v4349_v54 = vmul.f32 -1.442695, %v801_v48 }
 0x237   :  { %v4350_v38 = vmul.f32 -1.442695, %v808_v57 }
 0x238   :  { %6295 = vpow2.f32 %v4349_v54  ;;  %v1280_v54 = vld [vmem:[#allocation5 + $0x28] sm:$0xff] }
 0x239   :  { %6297 = vpow2.f32 %v4350_v38 }
 0x242   :  { %v6296_v2 = vpop.eup %6295 }
 0x243   :  { %v805_v39 = vadd.f32 1.0, %v6296_v2  ;;  %v6298_v46 = vpop.eup %6297  ;;  %v1282_v2 = vld [vmem:[#allocation5 + $0x38] sm:$0xff] }
 0x244   :  { %v812_v13 = vadd.f32 1.0, %v6298_v46 }
 0x245   :  { %6299 = vrcp.f32 %v805_v39  ;;  %v1285_v39 = vld [vmem:[#allocation5 + $0x50] sm:$0xff] }
 0x246   :  { %6301 = vrcp.f32 %v812_v13  ;;  %v7083_v46 = vpack.c.bf16 %v1285_v39, %v1282_v2  ;;  %v1281_v13 = vld [vmem:[#allocation5 + $0x30] sm:$0xff]  ;;  %v1308_v39 = vld [vmem:[#allocation5 + $0x108] sm:$0xff] }
 0x24f   :  { %v6300_v0 = vpop.eup %6299 }
 0x250   :  { %v816_v37 = vmul.f32 %v6300_v0, %v815_v12  ;;  %v6302_v40 = vpop.eup %6301  ;;  %v1284_v12 = vld [vmem:[#allocation5 + $0x48] sm:$0xff]  ;;  %v1283_v0 = vld [vmem:[#allocation5 + $0x40] sm:$0xff] }
 0x251   :  { %v819_v51 = vsub.f32 1.0, %v6302_v40  ;;  %v821_v59 = vmul.f32 %v6302_v40, %v6980_v45  ;;  %v1286_v40 = vld [vmem:[#allocation5 + $0x58] sm:$0xff] }
 0x252   :  { %v817_v9 = vadd.f32 %v816_v37, %v6916_v28  ;;  %v1279_v37 = vld [vmem:[#allocation5 + $0x20] sm:$0xff] }
 0x253   :  { %v1275_v28 = vld [vmem:[#allocation5] sm:$0xff] }
 0x254   :  { %6303 = vtanh.f32 %v817_v9  ;;  %v7086_v9 = vpack.c.bf16 %v1284_v12, %v1281_v13  ;;  %v1307_v13 = vld [vmem:[#allocation5 + $0x100] sm:$0xff]  ;;  %v1310_v12 = vld [vmem:[#allocation5 + $0x118] sm:$0xff] }
 0x25e   :  { %v6304_v21 = vpop.eup %6303 }
 0x25f   :  { %v820_v48 = vmul.f32 %v6304_v21, %v819_v51  ;;  %v7089_v51 = vpack.c.bf16 %v1286_v40, %v1283_v0  ;;  %v1288_v21 = vld [vmem:[#allocation5 + $0x68] sm:$0xff]  ;;  %v7128_v40 = vpack.c.bf16 %v1310_v12, %v1307_v13 }
 0x261   :  { %v7024_v57 = vadd.f32 %v821_v59, %v820_v48  ;;  %v1291_v48 = vld [vmem:[#allocation5 + $0x80] sm:$0xff] }
 0x262   :  { %v7093_v59 = vpack.c.bf16 %v1291_v48, %v1288_v21  ;;  %v1312_v21 = vld [vmem:[#allocation5 + $0x128] sm:$0xff]  ;;  %v1315_v48 = vld [vmem:[#allocation5 + $0x140] sm:$0xff] }
 0x263   :  { %946 = vmatmul.mubr.f32.vlgmr.msra.gmra.mrb[20].mxu0 %v7024_v57  ;;  %4805 = vmatmul.mubr.f32.vlgmr.msra.gmra.mrb[12].mxu1 %v7024_v57 }
 0x264   :  { %5485 = vmatpush1.bf16.msra.mxu0 %v6672_v15  ;;  %5516 = vmatpush3.bf16.msra.mxu1 %v6709_v41 }
 0x265   :  { %5487 = vmatprep.subr.bf16.mxu0 %v6675_v16  ;;  %5517 = vmatprep.subr.bf16.mxu1 %v7991_v49 }
 0x266   :  { %1166 = vmatprep.mubr.f32.mxu0 %v7992_v27  ;;  %4839 = vmatprep.mubr.msk.f32.mxu1 %vm6547_vm1, %v7992_v27 }
 0x268   :  { %5489 = vmatpush1.bf16.msra.mxu0 %v6689_v25  ;;  %5519 = vmatpush3.bf16.msra.mxu1 %v6727_v52 }
 0x269   :  { %5491 = vmatprep.subr.bf16.mxu0 %v6692_v26  ;;  %5520 = vmatprep.subr.bf16.mxu1 %v7991_v49 }
 0x26c   :  { %5493 = vmatpush1.bf16.msra.mxu0 %v6701_v33  ;;  %5522 = vmatpush3.bf16.msra.mxu1 %v6750_v1 }
 0x26d   :  { %5495 = vmatprep.subr.bf16.mxu0 %v6704_v34  ;;  %5523 = vmatprep.subr.bf16.mxu1 %v7991_v49 }
 0x270   :  { %5497 = vmatpush1.bf16.msra.mxu0 %v6716_v43  ;;  %5525 = vmatpush3.bf16.msra.mxu1 %v6763_v10 }
 0x271   :  { %5499 = vmatprep.subr.bf16.mxu0 %v6722_v47  ;;  %5526 = vmatprep.subr.bf16.mxu1 %v7991_v49 }
 0x274   :  { %5501 = vmatpush1.bf16.msra.mxu0 %v6736_v56  ;;  %5528 = vmatpush3.bf16.msra.mxu1 %v6777_v20 }
 0x275   :  { %5503 = vmatprep.subr.bf16.mxu0 %v6742_v58  ;;  %5529 = vmatprep.subr.bf16.mxu1 %v7991_v49 }
 0x278   :  { %5505 = vmatpush1.bf16.msra.mxu0 %v6756_v4  ;;  %5531 = vmatpush3.bf16.msra.mxu1 %v6787_v24 }
 0x279   :  { %5507 = vmatprep.subr.bf16.mxu0 %v6759_v5  ;;  %5532 = vmatprep.subr.bf16.mxu1 %v7991_v49 }
 0x27c   :  { %5509 = vmatpush1.bf16.msra.mxu0 %v6771_v14  ;;  %5534 = vmatpush3.bf16.msra.mxu1 %v6795_v29 }
 0x27d   :  { %5511 = vmatprep.subr.bf16.mxu0 %v6774_v17  ;;  %5535 = vmatprep.subr.bf16.mxu1 %v7991_v49 }
 0x280   :  { %5513 = vmatpush1.bf16.msra.mxu0 %v6783_v23  ;;  %5537 = vmatpush3.bf16.msra.mxu1 %v6803_v35  ;;  %v1276_v35 = vld [vmem:[#allocation5 + $0x8] sm:$0xff] }
 0x281   :  { %5570 = vmatprep.subr.bf16.mxu1 %v7991_v49 }
 0x336   :  { %v947_v15 = vpop.f32.mrb[20].mxu0  ;;  %v1018_v16 = vpop.f32.mrb[12].mxu1 }
 0x337   :  { %v1022_v25 = vadd.f32 %v947_v15, %v6924_v30  ;;  %v949_v26 = vpop.f32.mrb[21].mxu0  ;;  %v4806_v33 = vpop.f32.mrb[13].mxu1  ;;  %v1036_v1 = vadd.f32 %v6977_v31, %v1018_v16  ;;  %v1278_v30 = vld [vmem:[#allocation5 + $0x18] sm:$0xff]  ;;  %v1287_v15 = vld [vmem:[#allocation5 + $0x60] sm:$0xff] }
 0x338   :  { %v1029_v34 = vadd.f32 %v949_v26, %v6932_v53  ;;  %v1277_v53 = vld [vmem:[#allocation5 + $0x10] sm:$0xff]  ;;  %v7076_v22 = vpack.c.bf16 %v1278_v30, %v1275_v28  ;;  %v1290_v16 = vld [vmem:[#allocation5 + $0x78] sm:$0xff]  ;;  %v1292_v33 = vld [vmem:[#allocation5 + $0x88] sm:$0xff] }
 0x339   :  { %v4351_v41 = vmul.f32 -1.442695, %v1022_v25  ;;  %v7079_v38 = vpack.c.bf16 %v1280_v54, %v1277_v53  ;;  %v1289_v25 = vld [vmem:[#allocation5 + $0x70] sm:$0xff]  ;;  %v7096_v26 = vpack.c.bf16 %v1290_v16, %v1287_v15  ;;  %v1306_v30 = vld [vmem:[#allocation5 + $0xf8] sm:$0xff]  ;;  %v1311_v15 = vld [vmem:[#allocation5 + $0x120] sm:$0xff]  ;;  %v7131_v16 = vpack.c.bf16 %v1315_v48, %v1312_v21 }
 0x33a   :  { %v4352_v43 = vmul.f32 -1.442695, %v1029_v34  ;;  %v7099_v34 = vpack.c.bf16 %v1292_v33, %v1289_v25  ;;  %v1309_v53 = vld [vmem:[#allocation5 + $0x110] sm:$0xff]  ;;  %v1314_v25 = vld [vmem:[#allocation5 + $0x138] sm:$0xff] }
 0x33b   :  { %6305 = vpow2.f32 %v4351_v41  ;;  %v1294_v41 = vld [vmem:[#allocation5 + $0x98] sm:$0xff]  ;;  %v1305_v54 = vld [vmem:[#allocation5 + $0xf0] sm:$0xff]  ;;  %v7123_v2 = vpack.c.bf16 %v1309_v53, %v1306_v30 }
 0x33c   :  { %6307 = vpow2.f32 %v4352_v43  ;;  %v1297_v43 = vld [vmem:[#allocation5 + $0xb0] sm:$0xff]  ;;  %v7126_v0 = vpack.c.bf16 %v1308_v39, %v1305_v54 }
 0x33d   :  { %v1313_v33 = vld [vmem:[#allocation5 + $0x130] sm:$0xff] }
 0x345   :  { %v6306_v47 = vpop.eup %6305 }
 0x346   :  { %v1026_v52 = vadd.f32 1.0, %v6306_v47  ;;  %v6308_v56 = vpop.eup %6307  ;;  %v7103_v47 = vpack.c.bf16 %v1297_v43, %v1294_v41  ;;  %v1316_v41 = vld [vmem:[#allocation5 + $0x148] sm:$0xff]  ;;  %v7134_v43 = vpack.c.bf16 %v1314_v25, %v1311_v15 }
 0x347   :  { %v1033_v58 = vadd.f32 1.0, %v6308_v56  ;;  %v1296_v56 = vld [vmem:[#allocation5 + $0xa8] sm:$0xff] }
 0x348   :  { %6309 = vrcp.f32 %v1026_v52  ;;  %v1293_v52 = vld [vmem:[#allocation5 + $0x90] sm:$0xff] }
 0x349   :  { %6311 = vrcp.f32 %v1033_v58  ;;  %v1295_v58 = vld [vmem:[#allocation5 + $0xa0] sm:$0xff] }
 0x352   :  { %v6310_v4 = vpop.eup %6309 }
 0x353   :  { %v1037_v5 = vmul.f32 %v6310_v4, %v1036_v1  ;;  %v6312_v14 = vpop.eup %6311  ;;  %v7106_v1 = vpack.c.bf16 %v1296_v56, %v1293_v52  ;;  %v1298_v4 = vld [vmem:[#allocation5 + $0xb8] sm:$0xff]  ;;  %v1321_v56 = vld [vmem:[#allocation5 + $0x170] sm:$0xff] }
 0x354   :  { %v1040_v17 = vsub.f32 1.0, %v6312_v14  ;;  %v1042_v24 = vmul.f32 %v6312_v14, %v7024_v57  ;;  %v1303_v14 = vld [vmem:[#allocation5 + $0xe0] sm:$0xff]  ;;  %v1318_v52 = vld [vmem:[#allocation5 + $0x158] sm:$0xff] }
 0x355   :  { %v1038_v10 = vadd.f32 %v1037_v5, %v6875_v36  ;;  %v7074_v36 = vpack.c.bf16 %v1279_v37, %v1276_v35  ;;  %v7109_v5 = vpack.c.bf16 %v1298_v4, %v1295_v58  ;;  %v1304_v37 = vld [vmem:[#allocation5 + $0xe8] sm:$0xff]  ;;  %v7138_v58 = vpack.c.bf16 %v1316_v41, %v1313_v33 }
 0x356   :  { %v7140_v4 = vpack.c.bf16 %v1321_v56, %v1318_v52 }
 0x357   :  { %6313 = vtanh.f32 %v1038_v10  ;;  %5539 = vmatprep.subr.bf16.mxu0 %v7074_v36  ;;  %v1300_v10 = vld [vmem:[#allocation5 + $0xc8] sm:$0xff] }
 0x361   :  { %v6314_v20 = vpop.eup %6313 }
 0x362   :  { %v1041_v23 = vmul.f32 %v6314_v20, %v1040_v17  ;;  %v7113_v17 = vpack.c.bf16 %v1303_v14, %v1300_v10  ;;  %v1299_v20 = vld [vmem:[#allocation5 + $0xc0] sm:$0xff]  ;;  %v1317_v10 = vld [vmem:[#allocation5 + $0x150] sm:$0xff]  ;;  %v1320_v14 = vld [vmem:[#allocation5 + $0x168] sm:$0xff] }
 0x364   :  { %v7067_v29 = vadd.f32 %v1042_v24, %v1041_v23  ;;  %v1302_v23 = vld [vmem:[#allocation5 + $0xd8] sm:$0xff]  ;;  %v1301_v24 = vld [vmem:[#allocation5 + $0xd0] sm:$0xff] }
 0x365   :  { %v7116_v35 = vpack.c.bf16 %v1302_v23, %v1299_v20  ;;  %v7119_v28 = vpack.c.bf16 %v1304_v37, %v1301_v24  ;;  %v1319_v20 = vld [vmem:[#allocation5 + $0x160] sm:$0xff]  ;;  %v1322_v23 = vld [vmem:[#allocation5 + $0x178] sm:$0xff]  ;;  %v7144_v24 = vpack.c.bf16 %v1320_v14, %v1317_v10 }
 0x366   :  { %1167 = vmatmul.mubr.f32.vlgmr.msra.gmra.mrb[22].mxu0 %v7067_v29  ;;  %4840 = vmatmul.mubr.f32.vlgmr.msra.gmra.mrb[14].mxu1 %v7067_v29  ;;  %v7148_v37 = vpack.c.bf16 %v1322_v23, %v1319_v20 }
 0x367   :  { %1387 = vmatprep.mubr.f32.mxu0 %v7992_v27  ;;  %4874 = vmatprep.mubr.msk.f32.mxu1 %vm6547_vm1, %v7992_v27 }
 0x368   :  { %5541 = vmatpush1.bf16.msra.mxu0 %v7076_v22  ;;  %5572 = vmatpush3.bf16.msra.mxu1 %v7079_v38 }
 0x369   :  { %5573 = vmatprep.subr.bf16.mxu1 %v7991_v49  ;;  %5543 = vmatprep.subr.bf16.mxu0 %v7083_v46 }
 0x36c   :  { %5545 = vmatpush1.bf16.msra.mxu0 %v7086_v9  ;;  %5575 = vmatpush3.bf16.msra.mxu1 %v7089_v51 }
 0x36d   :  { %5576 = vmatprep.subr.bf16.mxu1 %v7991_v49  ;;  %5547 = vmatprep.subr.bf16.mxu0 %v7093_v59 }
 0x370   :  { %5549 = vmatpush1.bf16.msra.mxu0 %v7096_v26  ;;  %5578 = vmatpush3.bf16.msra.mxu1 %v7099_v34 }
 0x371   :  { %5579 = vmatprep.subr.bf16.mxu1 %v7991_v49  ;;  %5551 = vmatprep.subr.bf16.mxu0 %v7103_v47 }
 0x374   :  { %5553 = vmatpush1.bf16.msra.mxu0 %v7106_v1  ;;  %5581 = vmatpush3.bf16.msra.mxu1 %v7109_v5 }
 0x375   :  { %5582 = vmatprep.subr.bf16.mxu1 %v7991_v49  ;;  %5555 = vmatprep.subr.bf16.mxu0 %v7113_v17 }
 0x378   :  { %5557 = vmatpush1.bf16.msra.mxu0 %v7116_v35  ;;  %5584 = vmatpush3.bf16.msra.mxu1 %v7119_v28 }
 0x379   :  { %5585 = vmatprep.subr.bf16.mxu1 %v7991_v49  ;;  %5559 = vmatprep.subr.bf16.mxu0 %v7123_v2 }
 0x37c   :  { %5561 = vmatpush1.bf16.msra.mxu0 %v7126_v0  ;;  %5587 = vmatpush3.bf16.msra.mxu1 %v7128_v40 }
 0x37d   :  { %5563 = vmatprep.subr.bf16.mxu0 %v7131_v16  ;;  %5588 = vmatprep.subr.bf16.mxu1 %v7991_v49 }
 0x380   :  { %5565 = vmatpush1.bf16.msra.mxu0 %v7134_v43  ;;  %5590 = vmatpush3.bf16.msra.mxu1 %v7138_v58 }
 0x381   :  { %5567 = vmatprep.subr.bf16.mxu0 %v7140_v4  ;;  %5591 = vmatprep.subr.bf16.mxu1 %v7991_v49 }
 0x384   :  { %5569 = vmatpush1.bf16.msra.mxu0 %v7144_v24  ;;  %5593 = vmatpush3.bf16.msra.mxu1 %v7148_v37 }
 0x385   :  { %5595 = vmatprep.subr.bf16.mxu0 %v7074_v36  ;;  %5626 = vmatprep.subr.bf16.mxu1 %v7991_v49 }
 0x439   :  { %v1168_v30 = vpop.f32.mrb[22].mxu0  ;;  %v1239_v53 = vpop.f32.mrb[14].mxu1 }
 0x43a   :  { %v1243_v54 = vadd.f32 %v1168_v30, %v6892_v6  ;;  %v1170_v39 = vpop.f32.mrb[23].mxu0  ;;  %v4841_v13 = vpop.f32.mrb[15].mxu1  ;;  %v1257_v52 = vadd.f32 %v6977_v31, %v1239_v53 }
 0x43b   :  { %v1250_v12 = vadd.f32 %v1170_v39, %v6900_v19 }
 0x43c   :  { %v4353_v21 = vmul.f32 -1.442695, %v1243_v54 }
 0x43d   :  { %v4354_v48 = vmul.f32 -1.442695, %v1250_v12 }
 0x43e   :  { %6315 = vpow2.f32 %v4353_v21 }
 0x43f   :  { %6317 = vpow2.f32 %v4354_v48 }
 0x448   :  { %v6316_v15 = vpop.eup %6315 }
 0x449   :  { %v1247_v25 = vadd.f32 1.0, %v6316_v15  ;;  %v6318_v33 = vpop.eup %6317 }
 0x44a   :  { %v1254_v41 = vadd.f32 1.0, %v6318_v33 }
 0x44b   :  { %6319 = vrcp.f32 %v1247_v25 }
 0x44c   :  { %6321 = vrcp.f32 %v1254_v41 }
 0x455   :  { %v6320_v56 = vpop.eup %6319 }
 0x456   :  { %v1258_v10 = vmul.f32 %v6320_v56, %v1257_v52  ;;  %v6322_v14 = vpop.eup %6321 }
 0x457   :  { %v1261_v20 = vsub.f32 1.0, %v6322_v14  ;;  %v1263_v30 = vmul.f32 %v6322_v14, %v7067_v29 }
 0x458   :  { %v1259_v6 = vadd.f32 %v1258_v10, %v6884_v55 }
 0x45a   :  { %6323 = vtanh.f32 %v1259_v6 }
 0x464   :  { %v6324_v19 = vpop.eup %6323 }
 0x465   :  { %v1262_v23 = vmul.f32 %v6324_v19, %v1261_v20 }
 0x467   :  { %v7160_v54 = vadd.f32 %v1263_v30, %v1262_v23 }
 0x469   :  { %1388 = vmatmul.mubr.f32.vlgmr.msra.gmra.mrb[24].mxu0 %v7160_v54  ;;  %4875 = vmatmul.mubr.f32.vlgmr.msra.gmra.mrb[16].mxu1 %v7160_v54 }
 0x46a   :  { %5597 = vmatpush1.bf16.msra.mxu0 %v7076_v22  ;;  %5628 = vmatpush3.bf16.msra.mxu1 %v7079_v38 }
 0x46b   :  { %5599 = vmatprep.subr.bf16.mxu0 %v7083_v46  ;;  %5629 = vmatprep.subr.bf16.mxu1 %v7991_v49 }
 0x46c   :  { %1608 = vmatprep.mubr.f32.mxu0 %v7992_v27  ;;  %4909 = vmatprep.mubr.msk.f32.mxu1 %vm6547_vm1, %v7992_v27 }
 0x46e   :  { %5601 = vmatpush1.bf16.msra.mxu0 %v7086_v9  ;;  %5631 = vmatpush3.bf16.msra.mxu1 %v7089_v51 }
 0x46f   :  { %5603 = vmatprep.subr.bf16.mxu0 %v7093_v59  ;;  %5632 = vmatprep.subr.bf16.mxu1 %v7991_v49 }
 0x472   :  { %5605 = vmatpush1.bf16.msra.mxu0 %v7096_v26  ;;  %5634 = vmatpush3.bf16.msra.mxu1 %v7099_v34 }
 0x473   :  { %5607 = vmatprep.subr.bf16.mxu0 %v7103_v47  ;;  %5635 = vmatprep.subr.bf16.mxu1 %v7991_v49 }
 0x476   :  { %5609 = vmatpush1.bf16.msra.mxu0 %v7106_v1  ;;  %5637 = vmatpush3.bf16.msra.mxu1 %v7109_v5 }
 0x477   :  { %5611 = vmatprep.subr.bf16.mxu0 %v7113_v17  ;;  %5638 = vmatprep.subr.bf16.mxu1 %v7991_v49 }
 0x47a   :  { %5613 = vmatpush1.bf16.msra.mxu0 %v7116_v35  ;;  %5640 = vmatpush3.bf16.msra.mxu1 %v7119_v28 }
 0x47b   :  { %5615 = vmatprep.subr.bf16.mxu0 %v7123_v2  ;;  %5641 = vmatprep.subr.bf16.mxu1 %v7991_v49 }
 0x47e   :  { %5617 = vmatpush1.bf16.msra.mxu0 %v7126_v0  ;;  %5643 = vmatpush3.bf16.msra.mxu1 %v7128_v40 }
 0x47f   :  { %5619 = vmatprep.subr.bf16.mxu0 %v7131_v16  ;;  %5644 = vmatprep.subr.bf16.mxu1 %v7991_v49 }
 0x482   :  { %5621 = vmatpush1.bf16.msra.mxu0 %v7134_v43  ;;  %5646 = vmatpush3.bf16.msra.mxu1 %v7138_v58 }
 0x483   :  { %5623 = vmatprep.subr.bf16.mxu0 %v7140_v4  ;;  %5647 = vmatprep.subr.bf16.mxu1 %v7991_v49 }
 0x486   :  { %5625 = vmatpush1.bf16.msra.mxu0 %v7144_v24  ;;  %5649 = vmatpush3.bf16.msra.mxu1 %v7148_v37 }
 0x487   :  { %5651 = vmatprep.subr.bf16.mxu0 %v7074_v36  ;;  %5682 = vmatprep.subr.bf16.mxu1 %v7991_v49 }
 0x53c   :  { %v1389_v55 = vpop.f32.mrb[24].mxu0  ;;  %v1460_v53 = vpop.f32.mrb[16].mxu1 }
 0x53d   :  { %v1464_v39 = vadd.f32 %v1389_v55, %v6896_v8  ;;  %v1391_v13 = vpop.f32.mrb[25].mxu0  ;;  %v4876_v12 = vpop.f32.mrb[17].mxu1  ;;  %v1478_v56 = vadd.f32 %v6977_v31, %v1460_v53 }
 0x53e   :  { %v1471_v21 = vadd.f32 %v1391_v13, %v6904_v3 }
 0x53f   :  { %v4355_v48 = vmul.f32 -1.442695, %v1464_v39 }
 0x540   :  { %v4356_v15 = vmul.f32 -1.442695, %v1471_v21 }
 0x541   :  { %6325 = vpow2.f32 %v4355_v48 }
 0x542   :  { %6327 = vpow2.f32 %v4356_v15 }
 0x54b   :  { %v6326_v25 = vpop.eup %6325 }
 0x54c   :  { %v1468_v33 = vadd.f32 1.0, %v6326_v25  ;;  %v6328_v41 = vpop.eup %6327 }
 0x54d   :  { %v1475_v52 = vadd.f32 1.0, %v6328_v41 }
 0x54e   :  { %6329 = vrcp.f32 %v1468_v33 }
 0x54f   :  { %6331 = vrcp.f32 %v1475_v52 }
 0x558   :  { %v6330_v10 = vpop.eup %6329 }
 0x559   :  { %v1479_v6 = vmul.f32 %v6330_v10, %v1478_v56  ;;  %v6332_v14 = vpop.eup %6331 }
 0x55a   :  { %v1482_v20 = vsub.f32 1.0, %v6332_v14  ;;  %v1484_v23 = vmul.f32 %v6332_v14, %v7160_v54 }
 0x55b   :  { %v1480_v8 = vadd.f32 %v1479_v6, %v6888_v60 }
 0x55d   :  { %6333 = vtanh.f32 %v1480_v8 }
 0x567   :  { %v6334_v3 = vpop.eup %6333 }
 0x568   :  { %v1483_v19 = vmul.f32 %v6334_v3, %v1482_v20 }
 0x56a   :  { %v7204_v30 = vadd.f32 %v1484_v23, %v1483_v19  ;;  %v2201_v23 = vld [vmem:[#allocation8 + $0x18] sm:$0xff] }
 0x56c   :  { %1609 = vmatmul.mubr.f32.vlgmr.msra.gmra.mrb[26].mxu0 %v7204_v30  ;;  %4910 = vmatmul.mubr.f32.vlgmr.msra.gmra.mrb[18].mxu1 %v7204_v30  ;;  %v7212_v55 = vsel %vm76_vm2, %v7160_v54, %v7204_v30  ;;  %v7218_v60 = vsel %vm76_vm2, %v7204_v30, %v7160_v54 }
 0x56d   :  { %5653 = vmatpush1.bf16.msra.mxu0 %v7076_v22  ;;  %5684 = vmatpush3.bf16.msra.mxu1 %v7079_v38  ;;  %2169 = vst [vmem:[#allocation11 + $0x30] sm:$0xff] %v7212_v55  ;;  %2174 = vst [vmem:[#allocation11 + $0x40] sm:$0xff] %v7218_v60 }
 0x56e   :  { %5655 = vmatprep.subr.bf16.mxu0 %v7083_v46  ;;  %5685 = vmatprep.subr.bf16.mxu1 %v7991_v49 }
 0x56f   :  { %1829 = vmatprep.mubr.f32.mxu0 %v7992_v27  ;;  %4944 = vmatprep.mubr.msk.f32.mxu1 %vm6547_vm1, %v7992_v27 }
 0x571   :  { %5657 = vmatpush1.bf16.msra.mxu0 %v7086_v9  ;;  %5687 = vmatpush3.bf16.msra.mxu1 %v7089_v51 }
 0x572   :  { %5659 = vmatprep.subr.bf16.mxu0 %v7093_v59  ;;  %5688 = vmatprep.subr.bf16.mxu1 %v7991_v49 }
 0x575   :  { %5661 = vmatpush1.bf16.msra.mxu0 %v7096_v26  ;;  %5690 = vmatpush3.bf16.msra.mxu1 %v7099_v34 }
 0x576   :  { %5663 = vmatprep.subr.bf16.mxu0 %v7103_v47  ;;  %5691 = vmatprep.subr.bf16.mxu1 %v7991_v49 }
 0x579   :  { %5665 = vmatpush1.bf16.msra.mxu0 %v7106_v1  ;;  %5693 = vmatpush3.bf16.msra.mxu1 %v7109_v5 }
 0x57a   :  { %5667 = vmatprep.subr.bf16.mxu0 %v7113_v17  ;;  %5694 = vmatprep.subr.bf16.mxu1 %v7991_v49 }
 0x57d   :  { %5669 = vmatpush1.bf16.msra.mxu0 %v7116_v35  ;;  %5696 = vmatpush3.bf16.msra.mxu1 %v7119_v28 }
 0x57e   :  { %5671 = vmatprep.subr.bf16.mxu0 %v7123_v2  ;;  %5697 = vmatprep.subr.bf16.mxu1 %v7991_v49 }
 0x581   :  { %5673 = vmatpush1.bf16.msra.mxu0 %v7126_v0  ;;  %5699 = vmatpush3.bf16.msra.mxu1 %v7128_v40 }
 0x582   :  { %5675 = vmatprep.subr.bf16.mxu0 %v7131_v16  ;;  %5700 = vmatprep.subr.bf16.mxu1 %v7991_v49 }
 0x585   :  { %5677 = vmatpush1.bf16.msra.mxu0 %v7134_v43  ;;  %5702 = vmatpush3.bf16.msra.mxu1 %v7138_v58 }
 0x586   :  { %5679 = vmatprep.subr.bf16.mxu0 %v7140_v4  ;;  %5703 = vmatprep.subr.bf16.mxu1 %v7991_v49 }
 0x589   :  { %5681 = vmatpush1.bf16.msra.mxu0 %v7144_v24  ;;  %5705 = vmatpush3.bf16.msra.mxu1 %v7148_v37 }
 0x58a   :  { %5707 = vmatprep.subr.bf16.mxu0 %v7074_v36  ;;  %5738 = vmatprep.subr.bf16.mxu1 %v7991_v49 }
 0x63f   :  { %v1610_v54 = vpop.f32.mrb[26].mxu0  ;;  %v1681_v53 = vpop.f32.mrb[18].mxu1 }
 0x640   :  { %v1685_v39 = vadd.f32 %v1610_v54, %v6928_v32  ;;  %v1612_v13 = vpop.f32.mrb[27].mxu0  ;;  %v4911_v12 = vpop.f32.mrb[19].mxu1  ;;  %v1699_v36 = vadd.f32 %v6977_v31, %v1681_v53  ;;  %v2203_v53 = vld [vmem:[#allocation8 + $0x28] sm:$0xff] }
 0x641   :  { %v1692_v21 = vadd.f32 %v1612_v13, %v6936_v62  ;;  %v2205_v13 = vld [vmem:[#allocation8 + $0x38] sm:$0xff] }
 0x642   :  { %v4357_v48 = vmul.f32 -1.442695, %v1685_v39 }
 0x643   :  { %v4358_v15 = vmul.f32 -1.442695, %v1692_v21  ;;  %v2204_v21 = vld [vmem:[#allocation8 + $0x30] sm:$0xff] }
 0x644   :  { %6335 = vpow2.f32 %v4357_v48  ;;  %v2207_v48 = vld [vmem:[#allocation8 + $0x48] sm:$0xff] }
 0x645   :  { %6337 = vpow2.f32 %v4358_v15  ;;  %v2206_v15 = vld [vmem:[#allocation8 + $0x40] sm:$0xff] }
 0x64e   :  { %v6336_v25 = vpop.eup %6335 }
 0x64f   :  { %v1689_v33 = vadd.f32 1.0, %v6336_v25  ;;  %v6338_v41 = vpop.eup %6337  ;;  %v5768_v25 = vpack.c.bf16 %v2207_v48, %v2204_v21  ;;  %v2241_v21 = vld [vmem:[#allocation8 + $0x158] sm:$0xff]  ;;  %v2244_v48 = vld [vmem:[#allocation8 + $0x170] sm:$0xff] }
 0x650   :  { %v1696_v52 = vadd.f32 1.0, %v6338_v41 }
 0x651   :  { %6339 = vrcp.f32 %v1689_v33  ;;  %v2209_v33 = vld [vmem:[#allocation8 + $0x58] sm:$0xff] }
 0x652   :  { %6341 = vrcp.f32 %v1696_v52  ;;  %v5798_v41 = vpack.c.bf16 %v2209_v33, %v2206_v15  ;;  %v2211_v52 = vld [vmem:[#allocation8 + $0x68] sm:$0xff]  ;;  %v2245_v33 = vld [vmem:[#allocation8 + $0x178] sm:$0xff] }
 0x65b   :  { %v6340_v56 = vpop.eup %6339 }
 0x65c   :  { %v1700_v10 = vmul.f32 %v6340_v56, %v1699_v36  ;;  %v6342_v6 = vpop.eup %6341  ;;  %v2214_v36 = vld [vmem:[#allocation8 + $0x80] sm:$0xff] }
 0x65d   :  { %v1703_v8 = vsub.f32 1.0, %v6342_v6  ;;  %v1705_v20 = vmul.f32 %v6342_v6, %v7204_v30  ;;  %v2200_v30 = vld [vmem:[#allocation8 + $0x10] sm:$0xff]  ;;  %v5770_v56 = vpack.c.bf16 %v2214_v36, %v2211_v52  ;;  %v2243_v36 = vld [vmem:[#allocation8 + $0x168] sm:$0xff] }
 0x65e   :  { %v1701_v32 = vadd.f32 %v1700_v10, %v6879_v50  ;;  %v5794_v39 = vpack.c.bf16 %v2203_v53, %v2200_v30  ;;  %v2210_v10 = vld [vmem:[#allocation8 + $0x60] sm:$0xff]  ;;  %v2212_v6 = vld [vmem:[#allocation8 + $0x70] sm:$0xff] }
 0x65f   :  { %v2238_v30 = vld [vmem:[#allocation8 + $0x140] sm:$0xff]  ;;  %v2240_v52 = vld [vmem:[#allocation8 + $0x150] sm:$0xff] }
 0x660   :  { %6343 = vtanh.f32 %v1701_v32  ;;  %v2213_v32 = vld [vmem:[#allocation8 + $0x78] sm:$0xff] }
 0x66a   :  { %v6344_v62 = vpop.eup %6343 }
 0x66b   :  { %v1704_v14 = vmul.f32 %v6344_v62, %v1703_v8  ;;  %v5772_v8 = vpack.c.bf16 %v2213_v32, %v2210_v10  ;;  %v2215_v62 = vld [vmem:[#allocation8 + $0x88] sm:$0xff]  ;;  %v5792_v10 = vpack.c.bf16 %v2243_v36, %v2240_v52 }
 0x66c   :  { %v2522_v32 = vld [vmem:[#allocation10 + $0x8] sm:$0xff] }
 0x66d   :  { %v7262_v3 = vadd.f32 %v1705_v20, %v1704_v14  ;;  %v5802_v14 = vpack.c.bf16 %v2215_v62, %v2212_v6  ;;  %v2217_v20 = vld [vmem:[#allocation8 + $0x98] sm:$0xff]  ;;  %v2525_v6 = vld [vmem:[#allocation10 + $0x20] sm:$0xff]  ;;  %v2538_v52 = vld [vmem:[#allocation10 + $0x88] sm:$0xff] }
 0x66f   :  { %1830 = vmatmul.mubr.f32.vlgmr.msra.gmra.mrb[28].mxu0 %v7262_v3  ;;  %4945 = vmatmul.mubr.f32.vlgmr.msra.gmra.mrb[20].mxu1 %v7262_v3  ;;  %v7270_v19 = vsel %vm76_vm2, %v7067_v29, %v7262_v3  ;;  %v7276_v50 = vsel %vm76_vm2, %v7262_v3, %v7067_v29 }
 0x670   :  { %5709 = vmatpush1.bf16.msra.mxu0 %v7076_v22  ;;  %5740 = vmatpush3.bf16.msra.mxu1 %v7079_v38  ;;  %2164 = vst [vmem:[#allocation11 + $0x20] sm:$0xff] %v7270_v19  ;;  %2179 = vst [vmem:[#allocation11 + $0x50] sm:$0xff] %v7276_v50 }
 0x671   :  { %5711 = vmatprep.subr.bf16.mxu0 %v7083_v46  ;;  %5741 = vmatprep.subr.bf16.mxu1 %v7991_v49 }
 0x672   :  { %2050 = vmatprep.mubr.f32.mxu0 %v7992_v27  ;;  %4979 = vmatprep.mubr.msk.f32.mxu1 %vm6547_vm1, %v7992_v27 }
 0x674   :  { %5713 = vmatpush1.bf16.msra.mxu0 %v7086_v9  ;;  %5743 = vmatpush3.bf16.msra.mxu1 %v7089_v51 }
 0x675   :  { %5715 = vmatprep.subr.bf16.mxu0 %v7093_v59  ;;  %5744 = vmatprep.subr.bf16.mxu1 %v7991_v49 }
 0x678   :  { %5717 = vmatpush1.bf16.msra.mxu0 %v7096_v26  ;;  %5746 = vmatpush3.bf16.msra.mxu1 %v7099_v34 }
 0x679   :  { %5719 = vmatprep.subr.bf16.mxu0 %v7103_v47  ;;  %5747 = vmatprep.subr.bf16.mxu1 %v7991_v49 }
 0x67c   :  { %5721 = vmatpush1.bf16.msra.mxu0 %v7106_v1  ;;  %5749 = vmatpush3.bf16.msra.mxu1 %v7109_v5 }
 0x67d   :  { %5723 = vmatprep.subr.bf16.mxu0 %v7113_v17  ;;  %5750 = vmatprep.subr.bf16.mxu1 %v7991_v49 }
 0x680   :  { %5725 = vmatpush1.bf16.msra.mxu0 %v7116_v35  ;;  %5752 = vmatpush3.bf16.msra.mxu1 %v7119_v28 }
 0x681   :  { %5727 = vmatprep.subr.bf16.mxu0 %v7123_v2  ;;  %5753 = vmatprep.subr.bf16.mxu1 %v7991_v49 }
 0x684   :  { %5729 = vmatpush1.bf16.msra.mxu0 %v7126_v0  ;;  %5755 = vmatpush3.bf16.msra.mxu1 %v7128_v40 }
 0x685   :  { %5731 = vmatprep.subr.bf16.mxu0 %v7131_v16  ;;  %5756 = vmatprep.subr.bf16.mxu1 %v7991_v49 }
 0x688   :  { %5733 = vmatpush1.bf16.msra.mxu0 %v7134_v43  ;;  %5758 = vmatpush3.bf16.msra.mxu1 %v7138_v58  ;;  %v2199_v58 = vld [vmem:[#allocation8 + $0x8] sm:$0xff] }
 0x689   :  { %5735 = vmatprep.subr.bf16.mxu0 %v7140_v4  ;;  %5759 = vmatprep.subr.bf16.mxu1 %v7991_v49  ;;  %v2202_v4 = vld [vmem:[#allocation8 + $0x20] sm:$0xff] }
 0x68c   :  { %5737 = vmatpush1.bf16.msra.mxu0 %v7144_v24  ;;  %5761 = vmatpush3.bf16.msra.mxu1 %v7148_v37  ;;  %v5762_v24 = vpack.c.bf16 %v2202_v4, %v2199_v58  ;;  %v2198_v37 = vld [vmem:[#allocation8] sm:$0xff]  ;;  %v2233_v4 = vld [vmem:[#allocation8 + $0x118] sm:$0xff] }
 0x68d   :  { %v5764_v54 = vpack.c.bf16 %v2201_v23, %v2198_v37  ;;  %5795 = vmatprep.subr.bf16.mxu1 %v5794_v39  ;;  %v2230_v58 = vld [vmem:[#allocation8 + $0x100] sm:$0xff]  ;;  %v2235_v23 = vld [vmem:[#allocation8 + $0x128] sm:$0xff] }
 0x68e   :  { %5763 = vmatprep.subr.bf16.mxu0 %v5762_v24  ;;  %v5814_v37 = vpack.c.bf16 %v2233_v4, %v2230_v58  ;;  %v5786_v53 = vpack.c.bf16 %v2238_v30, %v2235_v23  ;;  %v2526_v58 = vld [vmem:[#allocation10 + $0x28] sm:$0xff] }
 0x68f   :  { %v2530_v23 = vld [vmem:[#allocation10 + $0x48] sm:$0xff] }
 0x742   :  { %v1831_v29 = vpop.f32.mrb[28].mxu0  ;;  %v1902_v22 = vpop.f32.mrb[20].mxu1 }
 0x743   :  { %v1906_v38 = vadd.f32 %v1831_v29, %v6946_v61  ;;  %v1833_v46 = vpop.f32.mrb[29].mxu0  ;;  %v4946_v9 = vpop.f32.mrb[21].mxu1  ;;  %v1920_v17 = vadd.f32 %v6977_v31, %v1902_v22  ;;  %v2216_v22 = vld [vmem:[#allocation8 + $0x90] sm:$0xff] }
 0x744   :  { %v1913_v51 = vadd.f32 %v1833_v46, %v6954_v63  ;;  %v2218_v46 = vld [vmem:[#allocation8 + $0xa0] sm:$0xff] }
 0x745   :  { %v4359_v59 = vmul.f32 -1.442695, %v1906_v38  ;;  %v2219_v38 = vld [vmem:[#allocation8 + $0xa8] sm:$0xff] }
 0x746   :  { %v4360_v26 = vmul.f32 -1.442695, %v1913_v51  ;;  %v5776_v9 = vpack.c.bf16 %v2219_v38, %v2216_v22  ;;  %v2221_v51 = vld [vmem:[#allocation8 + $0xb8] sm:$0xff] }
 0x747   :  { %6345 = vpow2.f32 %v4359_v59  ;;  %v5806_v59 = vpack.c.bf16 %v2221_v51, %v2218_v46 }
 0x748   :  { %6347 = vpow2.f32 %v4360_v26  ;;  %v2223_v26 = vld [vmem:[#allocation8 + $0xc8] sm:$0xff] }
 0x751   :  { %v6346_v34 = vpop.eup %6345 }
 0x752   :  { %v1910_v47 = vadd.f32 1.0, %v6346_v34  ;;  %v6348_v1 = vpop.eup %6347  ;;  %v2226_v34 = vld [vmem:[#allocation8 + $0xe0] sm:$0xff] }
 0x753   :  { %v1917_v5 = vadd.f32 1.0, %v6348_v1  ;;  %v2222_v1 = vld [vmem:[#allocation8 + $0xc0] sm:$0xff] }
 0x754   :  { %6349 = vrcp.f32 %v1910_v47  ;;  %v5778_v47 = vpack.c.bf16 %v2226_v34, %v2223_v26  ;;  %v6445_v34 = vld [vmem:[%s7975_s4] ss:$0 sm:$0xff] }
 0x755   :  { %6351 = vrcp.f32 %v1917_v5  ;;  %v2225_v5 = vld [vmem:[#allocation8 + $0xd8] sm:$0xff] }
 0x75e   :  { %v6350_v35 = vpop.eup %6349 }
 0x75f   :  { %v1921_v28 = vmul.f32 %v6350_v35, %v1920_v17  ;;  %v6352_v2 = vpop.eup %6351  ;;  %v2224_v17 = vld [vmem:[#allocation8 + $0xd0] sm:$0xff]  ;;  %v5780_v35 = vpack.c.bf16 %v2225_v5, %v2222_v1 }
 0x760   :  { %v1924_v0 = vsub.f32 1.0, %v6352_v2  ;;  %v1926_v16 = vmul.f32 %v6352_v2, %v7262_v3  ;;  %v2220_v3 = vld [vmem:[#allocation8 + $0xb0] sm:$0xff]  ;;  %v2229_v2 = vld [vmem:[#allocation8 + $0xf8] sm:$0xff] }
 0x761   :  { %v1922_v61 = vadd.f32 %v1921_v28, %v6920_v18  ;;  %v5774_v29 = vpack.c.bf16 %v2220_v3, %v2217_v20  ;;  %v2227_v28 = vld [vmem:[#allocation8 + $0xe8] sm:$0xff] }
 0x763   :  { %6353 = vtanh.f32 %v1922_v61  ;;  %v5810_v61 = vpack.c.bf16 %v2227_v28, %v2224_v17  ;;  %v2521_v28 = vld [vmem:[#allocation10] sm:$0xff] }
 0x76d   :  { %v6354_v63 = vpop.eup %6353 }
 0x76e   :  { %v1925_v40 = vmul.f32 %v6354_v63, %v1924_v0  ;;  %v2232_v0 = vld [vmem:[#allocation8 + $0x110] sm:$0xff] }
 0x76f   :  { %v2228_v63 = vld [vmem:[#allocation8 + $0xf0] sm:$0xff] }
 0x770   :  { %v7318_v43 = vadd.f32 %v1926_v16, %v1925_v40  ;;  %v5782_v40 = vpack.c.bf16 %v2232_v0, %v2229_v2  ;;  %v2231_v16 = vld [vmem:[#allocation8 + $0x108] sm:$0xff] }
 0x771   :  { %v5784_v24 = vpack.c.bf16 %v2231_v16, %v2228_v63  ;;  %v2528_v63 = vld [vmem:[#allocation10 + $0x38] sm:$0xff]  ;;  %v2523_v16 = vld [vmem:[#allocation10 + $0x10] sm:$0xff] }
 0x772   :  { %2051 = vmatmul.mubr.f32.vlgmr.msra.gmra.mrb[30].mxu0 %v7318_v43  ;;  %4980 = vmatmul.mubr.f32.vlgmr.msra.gmra.mrb[22].mxu1 %v7318_v43  ;;  %v7326_v31 = vsel %vm76_vm2, %v7024_v57, %v7318_v43  ;;  %v7332_v18 = vsel %vm76_vm2, %v7318_v43, %v7024_v57  ;;  %v2208_v57 = vld [vmem:[#allocation8 + $0x50] sm:$0xff] }
 0x773   :  { %2327 = vmatprep.mubr.f32.mxu0 %v7992_v27  ;;  %2159 = vst [vmem:[#allocation11 + $0x10] sm:$0xff] %v7326_v31  ;;  %2184 = vst [vmem:[#allocation11 + $0x60] sm:$0xff] %v7332_v18  ;;  %5765 = vmatpush1.bf16.msra.mxu0 %v5764_v54  ;;  %v5766_v12 = vpack.c.bf16 %v2208_v57, %v2205_v13  ;;  %v2234_v54 = vld [vmem:[#allocation8 + $0x120] sm:$0xff]  ;;  %v2236_v13 = vld [vmem:[#allocation8 + $0x130] sm:$0xff] }
 0x774   :  { %5797 = vmatpush3.bf16.msra.mxu1 %v5794_v39  ;;  %v2237_v39 = vld [vmem:[#allocation8 + $0x138] sm:$0xff]  ;;  %v2239_v57 = vld [vmem:[#allocation8 + $0x148] sm:$0xff] }
 0x775   :  { %5767 = vmatprep.subr.bf16.mxu0 %v5766_v12  ;;  %5799 = vmatprep.subr.bf16.mxu1 %v5798_v41  ;;  %v5818_v12 = vpack.c.bf16 %v2239_v57, %v2236_v13  ;;  %v5788_v15 = vpack.c.bf16 %v2237_v39, %v2234_v54  ;;  %v2534_v54 = vld [vmem:[#allocation10 + $0x68] sm:$0xff]  ;;  %v2537_v39 = vld [vmem:[#allocation10 + $0x80] sm:$0xff]  ;;  %v2532_v57 = vld [vmem:[#allocation10 + $0x58] sm:$0xff] }
 0x776   :  { %v2529_v13 = vld [vmem:[#allocation10 + $0x40] sm:$0xff] }
 0x777   :  { %5769 = vmatpush1.bf16.msra.mxu0 %v5768_v25  ;;  %v2242_v25 = vld [vmem:[#allocation8 + $0x160] sm:$0xff] }
 0x778   :  { %5801 = vmatpush3.bf16.msra.mxu1 %v5798_v41  ;;  %5771 = vmatprep.subr.bf16.mxu0 %v5770_v56  ;;  %v5790_v41 = vpack.c.bf16 %v2244_v48, %v2241_v21  ;;  %v5822_v56 = vpack.c.bf16 %v2245_v33, %v2242_v25  ;;  %v2536_v21 = vld [vmem:[#allocation10 + $0x78] sm:$0xff]  ;;  %v7370_v48 = vpack.c.bf16 %v2537_v39, %v2534_v54  ;;  %v2543_v33 = vld [vmem:[#allocation10 + $0xb0] sm:$0xff] }
 0x779   :  { %5803 = vmatprep.subr.bf16.mxu1 %v5802_v14  ;;  %v7373_v25 = vpack.c.bf16 %v2532_v57, %v2529_v13  ;;  %v2568_v54 = vld [vmem:[#allocation10 + $0x178] sm:$0xff] }
 0x77b   :  { %5773 = vmatpush1.bf16.msra.mxu0 %v5772_v8  ;;  %v7337_v8 = vpack.c.bf16 %v2525_v6, %v2522_v32  ;;  %v2546_v32 = vld [vmem:[#allocation10 + $0xc8] sm:$0xff]  ;;  %v2549_v6 = vld [vmem:[#allocation10 + $0xe0] sm:$0xff] }
 0x77c   :  { %5805 = vmatpush3.bf16.msra.mxu1 %v5802_v14  ;;  %5775 = vmatprep.subr.bf16.mxu0 %v5774_v29 }
 0x77d   :  { %5807 = vmatprep.subr.bf16.mxu1 %v5806_v59 }
 0x77f   :  { %5777 = vmatpush1.bf16.msra.mxu0 %v5776_v9 }
 0x780   :  { %5809 = vmatpush3.bf16.msra.mxu1 %v5806_v59  ;;  %5779 = vmatprep.subr.bf16.mxu0 %v5778_v47 }
 0x781   :  { %5811 = vmatprep.subr.bf16.mxu1 %v5810_v61 }
 0x783   :  { %5781 = vmatpush1.bf16.msra.mxu0 %v5780_v35 }
 0x784   :  { %5813 = vmatpush3.bf16.msra.mxu1 %v5810_v61  ;;  %5783 = vmatprep.subr.bf16.mxu0 %v5782_v40  ;;  %v2524_v61 = vld [vmem:[#allocation10 + $0x18] sm:$0xff]  ;;  %v2531_v40 = vld [vmem:[#allocation10 + $0x50] sm:$0xff] }
 0x785   :  { %5815 = vmatprep.subr.bf16.mxu1 %v5814_v37  ;;  %v7353_v30 = vpack.c.bf16 %v2531_v40, %v2528_v63  ;;  %v2567_v63 = vld [vmem:[#allocation10 + $0x170] sm:$0xff] }
 0x786   :  { %v2559_v40 = vld [vmem:[#allocation10 + $0x130] sm:$0xff] }
 0x787   :  { %5785 = vmatpush1.bf16.msra.mxu0 %v5784_v24  ;;  %v7348_v24 = vpack.c.bf16 %v2524_v61, %v2521_v28  ;;  %v2557_v61 = vld [vmem:[#allocation10 + $0x120] sm:$0xff] }
 0x788   :  { %5787 = vmatprep.subr.bf16.mxu0 %v5786_v53  ;;  %5817 = vmatpush3.bf16.msra.mxu1 %v5814_v37  ;;  %v2527_v37 = vld [vmem:[#allocation10 + $0x30] sm:$0xff]  ;;  %v7360_v53 = vpack.c.bf16 %v2526_v58, %v2523_v16  ;;  %v2562_v16 = vld [vmem:[#allocation10 + $0x148] sm:$0xff] }
 0x789   :  { %5819 = vmatprep.subr.bf16.mxu1 %v5818_v12 }
 0x78b   :  { %5789 = vmatpush1.bf16.msra.mxu0 %v5788_v15  ;;  %v2540_v15 = vld [vmem:[#allocation10 + $0x98] sm:$0xff] }
 0x78c   :  { %5791 = vmatprep.subr.bf16.mxu0 %v5790_v41  ;;  %5821 = vmatpush3.bf16.msra.mxu1 %v5818_v12  ;;  %v7365_v12 = vpack.c.bf16 %v2530_v23, %v2527_v37  ;;  %v2535_v41 = vld [vmem:[#allocation10 + $0x70] sm:$0xff]  ;;  %v2566_v23 = vld [vmem:[#allocation10 + $0x168] sm:$0xff] }
 0x78d   :  { %5823 = vmatprep.subr.bf16.mxu1 %v5822_v56  ;;  %v2563_v37 = vld [vmem:[#allocation10 + $0x150] sm:$0xff] }
 0x78e   :  { %v7446_v39 = vpack.c.bf16 %v2566_v23, %v2563_v37 }
 0x78f   :  { %5793 = vmatpush1.bf16.msra.mxu0 %v5792_v10  ;;  %v2542_v10 = vld [vmem:[#allocation10 + $0xa8] sm:$0xff] }
 0x790   :  { %5825 = vmatpush3.bf16.msra.mxu1 %v5822_v56  ;;  %5827 = vmatprep.subr.bf16.mxu0 %v7337_v8  ;;  %v2539_v56 = vld [vmem:[#allocation10 + $0x90] sm:$0xff] }
 0x791   :  { %5858 = vmatprep.subr.bf16.mxu1 %v7991_v49 }
 0x845   :  { %v2052_v62 = vpop.f32.mrb[30].mxu0  ;;  %v2123_v14 = vpop.f32.mrb[22].mxu1 }
 0x846   :  { %v2127_v20 = vadd.f32 %v2052_v62, %v6966_v44  ;;  %v2054_v3 = vpop.f32.mrb[31].mxu0  ;;  %v4981_v29 = vpop.f32.mrb[23].mxu1  ;;  %v2141_v47 = vadd.f32 %v6445_v34, %v2123_v14  ;;  %v7387_v62 = vpack.c.bf16 %v2538_v52, %v2535_v41  ;;  %v2541_v14 = vld [vmem:[#allocation10 + $0xa0] sm:$0xff] }
 0x847   :  { %v2134_v22 = vadd.f32 %v2054_v3, %v6972_v42  ;;  %v7393_v3 = vpack.c.bf16 %v2542_v10, %v2539_v56  ;;  %v7397_v29 = vpack.c.bf16 %v2549_v6, %v2546_v32 }
 0x848   :  { %v4361_v38 = vmul.f32 -1.442695, %v2127_v20  ;;  %v2544_v20 = vld [vmem:[#allocation10 + $0xb8] sm:$0xff] }
 0x849   :  { %v4362_v46 = vmul.f32 -1.442695, %v2134_v22  ;;  %v2545_v22 = vld [vmem:[#allocation10 + $0xc0] sm:$0xff] }
 0x84a   :  { %6355 = vpow2.f32 %v4361_v38  ;;  %v2548_v38 = vld [vmem:[#allocation10 + $0xd8] sm:$0xff] }
 0x84b   :  { %6357 = vpow2.f32 %v4362_v46  ;;  %v2555_v46 = vld [vmem:[#allocation10 + $0x110] sm:$0xff] }
 0x854   :  { %v6356_v9 = vpop.eup %6355 }
 0x855   :  { %v2131_v51 = vadd.f32 1.0, %v6356_v9  ;;  %v6358_v59 = vpop.eup %6357  ;;  %v7401_v9 = vpack.c.bf16 %v2544_v20, %v2541_v14 }
 0x856   :  { %v2138_v26 = vadd.f32 1.0, %v6358_v59  ;;  %v2550_v59 = vld [vmem:[#allocation10 + $0xe8] sm:$0xff] }
 0x857   :  { %6359 = vrcp.f32 %v2131_v51  ;;  %v2547_v51 = vld [vmem:[#allocation10 + $0xd0] sm:$0xff] }
 0x858   :  { %6361 = vrcp.f32 %v2138_v26  ;;  %v7407_v26 = vpack.c.bf16 %v2548_v38, %v2545_v22 }
 0x861   :  { %v6360_v1 = vpop.eup %6359 }
 0x862   :  { %v2142_v44 = vmul.f32 %v6360_v1, %v2141_v47  ;;  %v6362_v42 = vpop.eup %6361  ;;  %v2551_v47 = vld [vmem:[#allocation10 + $0xf0] sm:$0xff]  ;;  %v2554_v1 = vld [vmem:[#allocation10 + $0x108] sm:$0xff] }
 0x863   :  { %v2145_v17 = vsub.f32 1.0, %v6362_v42  ;;  %v2147_v0 = vmul.f32 %v6362_v42, %v7318_v43  ;;  %v2553_v42 = vld [vmem:[#allocation10 + $0x100] sm:$0xff] }
 0x864   :  { %v2143_v5 = vadd.f32 %v2142_v44, %v6911_v11  ;;  %v2558_v44 = vld [vmem:[#allocation10 + $0x128] sm:$0xff] }
 0x866   :  { %6363 = vtanh.f32 %v2143_v5  ;;  %v7414_v5 = vpack.c.bf16 %v2550_v59, %v2547_v51 }
 0x870   :  { %v6364_v35 = vpop.eup %6363 }
 0x871   :  { %v2146_v2 = vmul.f32 %v6364_v35, %v2145_v17  ;;  %v2556_v17 = vld [vmem:[#allocation10 + $0x118] sm:$0xff]  ;;  %v7422_v35 = vpack.c.bf16 %v2554_v1, %v2551_v47 }
 0x873   :  { %v2148_v4 = vadd.f32 %v2147_v0, %v2146_v2  ;;  %v2560_v2 = vld [vmem:[#allocation10 + $0x138] sm:$0xff] }
 0x874   :  { %v2564_v0 = vld [vmem:[#allocation10 + $0x158] sm:$0xff]  ;;  %v7434_v58 = vpack.c.bf16 %v2560_v2, %v2557_v61 }
 0x875   :  { %v2152_v11 = vsel %vm76_vm2, %v6980_v45, %v2148_v4  ;;  %v7358_v43 = vsel %vm76_vm2, %v2148_v4, %v6980_v45  ;;  %v2533_v45 = vld [vmem:[#allocation10 + $0x60] sm:$0xff]  ;;  %v7437_v4 = vpack.c.bf16 %v2567_v63, %v2564_v0 }
 0x876   :  { %2154 = vst [vmem:[#allocation11] sm:$0xff] %v2152_v11  ;;  %2328 = vmatmul.mubr.f32.vlgmr.msra.gmra.mrb[32].mxu0 %v2152_v11  ;;  %5014 = vmatprep.mubr.f32.mxu1 %v2152_v11  ;;  %2189 = vst [vmem:[#allocation11 + $0x70] sm:$0xff] %v7358_v43  ;;  %v7379_v36 = vpack.c.bf16 %v2536_v21, %v2533_v45  ;;  %v7440_v11 = vpack.c.bf16 %v2562_v16, %v2559_v40 }
 0x877   :  { %5015 = vmatmul.mubr.f32.vlgmr.msra.gmra.mrb[24].mxu1 %v7326_v31  ;;  %5829 = vmatpush1.bf16.msra.mxu0 %v7348_v24 }
 0x878   :  { %5017 = vmatprep.mubr.f32.mxu1 %v7270_v19  ;;  %2333 = vmatprep.mubr.f32.mxu0 %v7992_v27 }
 0x879   :  { %5831 = vmatprep.subr.bf16.mxu0 %v7353_v30  ;;  %5860 = vmatpush3.bf16.msra.mxu1 %v7360_v53 }
 0x87a   :  { %2334 = vmatmul.mubr.f32.gmra.mrb[34].mxu0 %v7326_v31  ;;  %5861 = vmatprep.subr.bf16.mxu1 %v7991_v49  ;;  %v7384_v31 = vpack.c.bf16 %v2543_v33, %v2540_v15 }
 0x87b   :  { %5018 = vmatmul.mubr.f32.gmra.mrb[26].mxu1 %v7212_v55  ;;  %5833 = vmatpush1.bf16.msra.mxu0 %v7365_v12 }
 0x87c   :  { %5020 = vmatprep.mubr.f32.mxu1 %v7218_v60  ;;  %2339 = vmatprep.mubr.f32.mxu0 %v7992_v27 }
 0x87d   :  { %5835 = vmatprep.subr.bf16.mxu0 %v7370_v48  ;;  %5863 = vmatpush3.bf16.msra.mxu1 %v7373_v25 }
 0x87e   :  { %2340 = vmatmul.mubr.f32.gmra.mrb[36].mxu0 %v7270_v19  ;;  %5864 = vmatprep.subr.bf16.mxu1 %v7991_v49  ;;  %v2552_v19 = vld [vmem:[#allocation10 + $0xf8] sm:$0xff] }
 0x87f   :  { %5021 = vmatmul.mubr.f32.gmra.mrb[28].mxu1 %v7276_v50  ;;  %5837 = vmatpush1.bf16.msra.mxu0 %v7379_v36  ;;  %v7411_v34 = vpack.c.bf16 %v2555_v46, %v2552_v19 }
 0x880   :  { %5023 = vmatprep.mubr.f32.mxu1 %v7332_v18  ;;  %2345 = vmatprep.mubr.f32.mxu0 %v7992_v27 }
 0x881   :  { %5839 = vmatprep.subr.bf16.mxu0 %v7384_v31  ;;  %5866 = vmatpush3.bf16.msra.mxu1 %v7387_v62 }
 0x882   :  { %2346 = vmatmul.mubr.f32.gmra.mrb[38].mxu0 %v7212_v55  ;;  %5867 = vmatprep.subr.bf16.mxu1 %v7991_v49  ;;  %v2561_v55 = vld [vmem:[#allocation10 + $0x140] sm:$0xff] }
 0x883   :  { %5024 = vmatmul.mubr.f32.gmra.mrb[30].mxu1 %v7358_v43  ;;  %5841 = vmatpush1.bf16.msra.mxu0 %v7393_v3  ;;  %v7425_v28 = vpack.c.bf16 %v2561_v55, %v2558_v44 }
 0x884   :  { %2351 = vmatprep.mubr.f32.mxu0 %v7992_v27  ;;  %5843 = vmatprep.subr.bf16.mxu0 %v7397_v29 }
 0x885   :  { %5869 = vmatpush3.bf16.msra.mxu1 %v7401_v9  ;;  %5058 = vmatprep.mubr.msk.f32.mxu1 %vm6547_vm1, %v7992_v27 }
 0x886   :  { %2352 = vmatmul.mubr.f32.gmra.mrb[40].mxu0 %v7218_v60  ;;  %5870 = vmatprep.subr.bf16.mxu1 %v7991_v49  ;;  %v7428_v60 = vpack.c.bf16 %v2556_v17, %v2553_v42 }
 0x887   :  { %5845 = vmatpush1.bf16.msra.mxu0 %v7407_v26  ;;  %2357 = vmatprep.mubr.f32.mxu0 %v7992_v27 }
 0x888   :  { %5847 = vmatprep.subr.bf16.mxu0 %v7411_v34 }
 0x889   :  { %5872 = vmatpush3.bf16.msra.mxu1 %v7414_v5 }
 0x88a   :  { %2358 = vmatmul.mubr.f32.gmra.mrb[42].mxu0 %v7276_v50  ;;  %5873 = vmatprep.subr.bf16.mxu1 %v7991_v49  ;;  %v2565_v50 = vld [vmem:[#allocation10 + $0x160] sm:$0xff] }
 0x88b   :  { %5849 = vmatpush1.bf16.msra.mxu0 %v7422_v35  ;;  %2363 = vmatprep.mubr.f32.mxu0 %v7992_v27  ;;  %v7450_v13 = vpack.c.bf16 %v2568_v54, %v2565_v50 }
 0x88c   :  { %5851 = vmatprep.subr.bf16.mxu0 %v7425_v28 }
 0x88d   :  { %5875 = vmatpush3.bf16.msra.mxu1 %v7428_v60 }
 0x88e   :  { %2364 = vmatmul.mubr.f32.gmra.mrb[44].mxu0 %v7332_v18  ;;  %5876 = vmatprep.subr.bf16.mxu1 %v7991_v49  ;;  %v2246_v18 = vld [vmem:[%s7977_s6] sm:$0x7] }
 0x88f   :  { %5853 = vmatpush1.bf16.msra.mxu0 %v7434_v58  ;;  %2369 = vmatprep.mubr.f32.mxu0 %v7992_v27 }
 0x890   :  { %5855 = vmatprep.subr.bf16.mxu0 %v7437_v4 }
 0x891   :  { %5878 = vmatpush3.bf16.msra.mxu1 %v7440_v11 }
 0x892   :  { %2370 = vmatmul.mubr.f32.gmra.mrb[46].mxu0 %v7358_v43  ;;  %5879 = vmatprep.subr.bf16.mxu1 %v7991_v49  ;;  %v7993_v43 = vld [vmem:[#allocation15_spill] sm:$0xff] }
 0x893   :  { %5857 = vmatpush1.bf16.msra.mxu0 %v7446_v39  ;;  %2633 = vmatprep.mubr.f32.mxu0 %v7992_v27  ;;  %v7994_v57 = vsub.s32 2, %v7993_v43  ;;  %v7995_v56 = vsub.s32 0, %v7993_v43  ;;  %v7996_v32 = vsub.s32 1, %v7993_v43 }
 0x894   :  { %5883 = vmatprep.subr.bf16.mxu0 %v7337_v8 }
 0x895   :  { %5881 = vmatpush3.bf16.msra.mxu1 %v7450_v13  ;;  %v2259_v45 = vrot.slane %v2246_v18, %v7994_v57  ;;  %v2251_v10 = vrot.slane %v2246_v18, %v7995_v56  ;;  %v7509_v6 = vrot.slane %v2246_v18, %v7996_v32 }
 0x896   :  { %2634 = vmatmul.mubr.f32.vlgmr.msra.gmra.mrb[48].mxu0 %v7992_v27  ;;  %5914 = vmatprep.subr.bf16.mxu1 %v7991_v49 }
 0x897   :  { %5885 = vmatpush1.bf16.msra.mxu0 %v7348_v24  ;;  %2854 = vmatprep.mubr.f32.mxu0 %v7992_v27 }
 0x898   :  { %5059 = vmatmul.mubr.f32.vlgmr.msra.gmra.mrb[32].mxu1 %v7992_v27  ;;  %5887 = vmatprep.subr.bf16.mxu0 %v7353_v30 }
 0x899   :  { %5916 = vmatpush3.bf16.msra.mxu1 %v7360_v53  ;;  %5093 = vmatprep.mubr.msk.f32.mxu1 %vm6547_vm1, %v7992_v27 }
 0x89a   :  { %5917 = vmatprep.subr.bf16.mxu1 %v7991_v49 }
 0x89b   :  { %5889 = vmatpush1.bf16.msra.mxu0 %v7365_v12 }
 0x89c   :  { %5891 = vmatprep.subr.bf16.mxu0 %v7370_v48 }
 0x89d   :  { %5919 = vmatpush3.bf16.msra.mxu1 %v7373_v25 }
 0x89e   :  { %5920 = vmatprep.subr.bf16.mxu1 %v7991_v49 }
 0x89f   :  { %5893 = vmatpush1.bf16.msra.mxu0 %v7379_v36 }
 0x8a0   :  { %5895 = vmatprep.subr.bf16.mxu0 %v7384_v31 }
 0x8a1   :  { %5922 = vmatpush3.bf16.msra.mxu1 %v7387_v62 }
 0x8a2   :  { %5923 = vmatprep.subr.bf16.mxu1 %v7991_v49 }
 0x8a3   :  { %5897 = vmatpush1.bf16.msra.mxu0 %v7393_v3 }
 0x8a4   :  { %5899 = vmatprep.subr.bf16.mxu0 %v7397_v29 }
 0x8a5   :  { %5925 = vmatpush3.bf16.msra.mxu1 %v7401_v9 }
 0x8a6   :  { %5926 = vmatprep.subr.bf16.mxu1 %v7991_v49 }
 0x8a7   :  { %5901 = vmatpush1.bf16.msra.mxu0 %v7407_v26 }
 0x8a8   :  { %5903 = vmatprep.subr.bf16.mxu0 %v7411_v34 }
 0x8a9   :  { %5928 = vmatpush3.bf16.msra.mxu1 %v7414_v5 }
 0x8aa   :  { %5929 = vmatprep.subr.bf16.mxu1 %v7991_v49 }
 0x8ab   :  { %5905 = vmatpush1.bf16.msra.mxu0 %v7422_v35 }
 0x8ac   :  { %5907 = vmatprep.subr.bf16.mxu0 %v7425_v28 }
 0x8ad   :  { %5931 = vmatpush3.bf16.msra.mxu1 %v7428_v60 }
 0x8ae   :  { %5932 = vmatprep.subr.bf16.mxu1 %v7991_v49 }
 0x8af   :  { %5909 = vmatpush1.bf16.msra.mxu0 %v7434_v58 }
 0x8b0   :  { %5911 = vmatprep.subr.bf16.mxu0 %v7437_v4 }
 0x8b1   :  { %5934 = vmatpush3.bf16.msra.mxu1 %v7440_v11 }
 0x8b2   :  { %5935 = vmatprep.subr.bf16.mxu1 %v7991_v49 }
 0x8b3   :  { %5913 = vmatpush1.bf16.msra.mxu0 %v7446_v39 }
 0x8b4   :  { %5939 = vmatprep.subr.bf16.mxu0 %v7337_v8 }
 0x8b5   :  { %5937 = vmatpush3.bf16.msra.mxu1 %v7450_v13 }
 0x8b6   :  { %5970 = vmatprep.subr.bf16.mxu1 %v7991_v49 }
 0x949   :  { %v7501_v21 = vpop.f32.mrb[32].mxu0 }
 0x94a   :  { %v7503_v15 = vpop.f32.mrb[33].mxu0  ;;  %v5016_v33 = vpop.f32.mrb[24].mxu1 }
 0x94b   :  { %v2448_v41 = vadd.f32 %v5016_v33, %v2259_v45  ;;  %v2442_v52 = vpop.f32.mrb[25].mxu1 }
 0x94c   :  { %v2443_v18 = vadd.f32 %v2442_v52, %v2259_v45 }
 0x94d   :  { %v2335_v14 = vpop.f32.mrb[34].mxu0 }
 0x94e   :  { %v2336_v20 = vadd.f32 %v2335_v14, %v2251_v10  ;;  %v2337_v22 = vpop.f32.mrb[35].mxu0  ;;  %v5019_v38 = vpop.f32.mrb[26].mxu1 }
 0x94f   :  { %v2338_v19 = vadd.f32 %v2337_v22, %v7509_v6  ;;  %v2458_v46 = vadd.f32 %v5019_v38, %v2259_v45  ;;  %v2452_v51 = vpop.f32.mrb[27].mxu1 }
 0x950   :  { %v2453_v59 = vadd.f32 %v2452_v51, %v2259_v45 }
 0x951   :  { %v2341_v47 = vpop.f32.mrb[36].mxu0 }
 0x952   :  { %v2342_v1 = vadd.f32 %v2341_v47, %v2251_v10  ;;  %v2343_v44 = vpop.f32.mrb[37].mxu0  ;;  %v5022_v55 = vpop.f32.mrb[28].mxu1 }
 0x953   :  { %v2344_v42 = vadd.f32 %v2343_v44, %v7509_v6  ;;  %v2468_v17 = vadd.f32 %v5022_v55, %v2259_v45  ;;  %v2462_v61 = vpop.f32.mrb[29].mxu1 }
 0x954   :  { %v2463_v2 = vadd.f32 %v2462_v61, %v2259_v45 }
 0x955   :  { %v7515_v0 = vsel %vm76_vm2, %v2453_v59, %v2468_v17  ;;  %v7519_v63 = vsel %vm76_vm2, %v2468_v17, %v2453_v59  ;;  %v2347_v40 = vpop.f32.mrb[38].mxu0 }
 0x956   :  { %v7523_v16 = vsel %vm76_vm2, %v2458_v46, %v2463_v2  ;;  %v7527_v37 = vsel %vm76_vm2, %v2463_v2, %v2458_v46  ;;  %v2348_v23 = vadd.f32 %v2347_v40, %v2251_v10  ;;  %v2349_v50 = vpop.f32.mrb[39].mxu0  ;;  %v5025_v54 = vpop.f32.mrb[30].mxu1 }
 0x957   :  { %v2350_v43 = vadd.f32 %v2349_v50, %v7509_v6  ;;  %v2478_v57 = vadd.f32 %v5025_v54, %v2259_v45  ;;  %v2472_v33 = vpop.f32.mrb[31].mxu1 }
 0x958   :  { %v2473_v56 = vadd.f32 %v2472_v33, %v2259_v45 }
 0x959   :  { %v2520_v32 = vsel %vm76_vm2, %v2443_v18, %v2478_v57  ;;  %v7534_v14 = vsel %vm76_vm2, %v2478_v57, %v2443_v18  ;;  %v2353_v22 = vpop.f32.mrb[40].mxu0 }
 0x95a   :  { %7997 = vst [vmem:[#allocation15_spill] sm:$0xff] %v7534_v14  ;;  %v7538_v38 = vsel %vm76_vm2, %v2448_v41, %v2473_v56  ;;  %v7542_v52 = vsel %vm76_vm2, %v2473_v56, %v2448_v41  ;;  %v2354_v46 = vadd.f32 %v2353_v22, %v2251_v10  ;;  %v2355_v51 = vpop.f32.mrb[41].mxu0  ;;  %v7614_v14 = vld [vmem:[%s7979_s8] ss:$0 sm:$0xff]  ;;  %s6548_s8 = smov [#allocation11]  }
 0x95b   :  { %v2356_v45 = vadd.f32 %v2355_v51, %v7509_v6  ;;  %v2330_v51 = vadd.f32 %v7501_v21, %v2251_v10  ;;  %s4317_s13 = sshll.u32 %s6548_s8, 4  ;;  %s4318_s13 = int_to_ptr.vmem [resolvable:$true] %s4317_s13 }
 0x95c   :  { %v7547_v59 = vsel %vm76_vm2, %v2348_v23, %v2354_v46  ;;  %v7551_v47 = vsel %vm76_vm2, %v2354_v46, %v2348_v23  ;;  %s6512_s5 = scalar_lea.vmem %s4318_s13, 2048  ;;  %p6517_p11 = scmp.lt.s32.totalorder %s4318_s13, %s4318_s13 }
 0x95d   :  { %v2359_v44 = vpop.f32.mrb[42].mxu0  ;;  %v7555_v55 = vsel %vm76_vm2, %v2350_v43, %v2356_v45  ;;  %v7559_v41 = vsel %vm76_vm2, %v2356_v45, %v2350_v43  ;;  %p6513_p10 = scmp.ne.s32.totalorder %s4318_s13, %s6512_s5  ;;  %p6518_p12 = scmp.lt.s32.totalorder %s6512_s5, %s6512_s5 }
 0x95e   :  { %v2360_v17 = vadd.f32 %v2359_v44, %v2251_v10  ;;  %v2361_v61 = vpop.f32.mrb[43].mxu0 }
 0x95f   :  { %v2362_v2 = vadd.f32 %v2361_v61, %v7509_v6  ;;  %p6519_p13 = por %p6518_p12, %p6517_p11 }
 0x960   :  { %v7564_v40 = vsel %vm76_vm2, %v2342_v1, %v2360_v17  ;;  %v7568_v23 = vsel %vm76_vm2, %v2360_v17, %v2342_v1  ;;  %v2332_v17 = vadd.f32 %v7503_v15, %v7509_v6 }
 0x961   :  { %v2365_v50 = vpop.f32.mrb[44].mxu0  ;;  %v7572_v54 = vsel %vm76_vm2, %v2344_v42, %v2362_v2  ;;  %v7576_v18 = vsel %vm76_vm2, %v2362_v2, %v2344_v42  ;;  %p6520_p0 = pnand %p6519_p13, %p6513_p10 }
 0x962   :  { %v2366_v43 = vadd.f32 %v2365_v50, %v2251_v10  ;;  %v2367_v57 = vpop.f32.mrb[45].mxu0 }
 0x963   :  { %v2368_v33 = vadd.f32 %v2367_v57, %v7509_v6 }
 0x964   :  { %v7581_v56 = vsel %vm76_vm2, %v2336_v20, %v2366_v43  ;;  %v7585_v1 = vsel %vm76_vm2, %v2366_v43, %v2336_v20 }
 0x965   :  { %v2371_v22 = vpop.f32.mrb[46].mxu0  ;;  %v7589_v46 = vsel %vm76_vm2, %v2338_v19, %v2368_v33  ;;  %v7593_v42 = vsel %vm76_vm2, %v2368_v33, %v2338_v19 }
 0x966   :  { %v2372_v45 = vadd.f32 %v2371_v22, %v2251_v10  ;;  %v2373_v44 = vpop.f32.mrb[47].mxu0 }
 0x967   :  { %v2374_v61 = vadd.f32 %v2373_v44, %v7509_v6 }
 0x968   :  { %v2518_v20 = vsel %vm76_vm2, %v2330_v51, %v2372_v45  ;;  %v7603_v2 = vsel %vm76_vm2, %v2372_v45, %v2330_v51 }
 0x969   :  { %v2635_v50 = vpop.f32.mrb[48].mxu0  ;;  %v2519_v19 = vsel %vm76_vm2, %v2332_v17, %v2374_v61  ;;  %v7609_v21 = vsel %vm76_vm2, %v2374_v61, %v2332_v17 }
 0x96a   :  { %v2710_v10 = vadd.f32 %v2635_v50, %v2518_v20  ;;  %v2637_v43 = vpop.f32.mrb[49].mxu0 }
 0x96b   :  { %v2717_v15 = vadd.f32 %v2637_v43, %v2519_v19  ;;  %v2706_v57 = vpop.f32.mrb[32].mxu1 }
 0x96c   :  { %v4364_v6 = vmul.f32 -1.442695, %v2710_v10  ;;  %v5060_v33 = vpop.f32.mrb[33].mxu1  ;;  %v2724_v61 = vadd.f32 %v7614_v14, %v2706_v57 }
 0x96d   :  { %v4365_v22 = vmul.f32 -1.442695, %v2717_v15 }
 0x96e   :  { %6365 = vpow2.f32 %v4364_v6 }
 0x96f   :  { %6367 = vpow2.f32 %v4365_v22 }
 0x978   :  { %v6366_v44 = vpop.eup %6365 }
 0x979   :  { %v2714_v51 = vadd.f32 1.0, %v6366_v44  ;;  %v6368_v45 = vpop.eup %6367 }
 0x97a   :  { %v2721_v17 = vadd.f32 1.0, %v6368_v45 }
 0x97b   :  { %6369 = vrcp.f32 %v2714_v51 }
 0x97c   :  { %6371 = vrcp.f32 %v2721_v17 }
 0x985   :  { %v6370_v20 = vpop.eup %6369 }
 0x986   :  { %v2725_v50 = vmul.f32 %v6370_v20, %v2724_v61  ;;  %v6372_v10 = vpop.eup %6371 }
 0x987   :  { %v2728_v43 = vsub.f32 1.0, %v6372_v10  ;;  %v2730_v33 = vmul.f32 0.0, %v6372_v10 }
 0x988   :  { %v2726_v19 = vadd.f32 %v2725_v50, %v2520_v32 }
 0x98a   :  { %6373 = vtanh.f32 %v2726_v19 }
 0x994   :  { %v6374_v15 = vpop.eup %6373 }
 0x995   :  { %v2729_v6 = vmul.f32 %v6374_v15, %v2728_v43 }
 0x997   :  { %v7617_v22 = vadd.f32 %v2730_v33, %v2729_v6 }
 0x999   :  { %2855 = vmatmul.mubr.f32.vlgmr.msra.gmra.mrb[50].mxu0 %v7617_v22  ;;  %5094 = vmatmul.mubr.f32.vlgmr.msra.gmra.mrb[34].mxu1 %v7617_v22 }
 0x99a   :  { %5941 = vmatpush1.bf16.msra.mxu0 %v7348_v24  ;;  %5972 = vmatpush3.bf16.msra.mxu1 %v7360_v53 }
 0x99b   :  { %5943 = vmatprep.subr.bf16.mxu0 %v7353_v30  ;;  %5973 = vmatprep.subr.bf16.mxu1 %v7991_v49 }
 0x99c   :  { %3075 = vmatprep.mubr.f32.mxu0 %v7992_v27  ;;  %5128 = vmatprep.mubr.msk.f32.mxu1 %vm6547_vm1, %v7992_v27 }
 0x99e   :  { %5945 = vmatpush1.bf16.msra.mxu0 %v7365_v12  ;;  %5975 = vmatpush3.bf16.msra.mxu1 %v7373_v25 }
 0x99f   :  { %5947 = vmatprep.subr.bf16.mxu0 %v7370_v48  ;;  %5976 = vmatprep.subr.bf16.mxu1 %v7991_v49 }
 0x9a2   :  { %5949 = vmatpush1.bf16.msra.mxu0 %v7379_v36  ;;  %5978 = vmatpush3.bf16.msra.mxu1 %v7387_v62 }
 0x9a3   :  { %5951 = vmatprep.subr.bf16.mxu0 %v7384_v31  ;;  %5979 = vmatprep.subr.bf16.mxu1 %v7991_v49 }
 0x9a6   :  { %5953 = vmatpush1.bf16.msra.mxu0 %v7393_v3  ;;  %5981 = vmatpush3.bf16.msra.mxu1 %v7401_v9 }
 0x9a7   :  { %5955 = vmatprep.subr.bf16.mxu0 %v7397_v29  ;;  %5982 = vmatprep.subr.bf16.mxu1 %v7991_v49 }
 0x9aa   :  { %5957 = vmatpush1.bf16.msra.mxu0 %v7407_v26  ;;  %5984 = vmatpush3.bf16.msra.mxu1 %v7414_v5 }
 0x9ab   :  { %5959 = vmatprep.subr.bf16.mxu0 %v7411_v34  ;;  %5985 = vmatprep.subr.bf16.mxu1 %v7991_v49 }
 0x9ae   :  { %5961 = vmatpush1.bf16.msra.mxu0 %v7422_v35  ;;  %5987 = vmatpush3.bf16.msra.mxu1 %v7428_v60 }
 0x9af   :  { %5963 = vmatprep.subr.bf16.mxu0 %v7425_v28  ;;  %5988 = vmatprep.subr.bf16.mxu1 %v7991_v49 }
 0x9b2   :  { %5965 = vmatpush1.bf16.msra.mxu0 %v7434_v58  ;;  %5990 = vmatpush3.bf16.msra.mxu1 %v7440_v11 }
 0x9b3   :  { %5967 = vmatprep.subr.bf16.mxu0 %v7437_v4  ;;  %5991 = vmatprep.subr.bf16.mxu1 %v7991_v49 }
 0x9b6   :  { %5969 = vmatpush1.bf16.msra.mxu0 %v7446_v39  ;;  %5993 = vmatpush3.bf16.msra.mxu1 %v7450_v13 }
 0x9b7   :  { %5995 = vmatprep.subr.bf16.mxu0 %v7337_v8  ;;  %6026 = vmatprep.subr.bf16.mxu1 %v7991_v49 }
 0xa6c   :  { %v2856_v32 = vpop.f32.mrb[50].mxu0  ;;  %v2927_v57 = vpop.f32.mrb[34].mxu1 }
 0xa6d   :  { %v2931_v44 = vadd.f32 %v2856_v32, %v7581_v56  ;;  %v2858_v51 = vpop.f32.mrb[51].mxu0  ;;  %v5095_v45 = vpop.f32.mrb[35].mxu1  ;;  %v2945_v8 = vadd.f32 %v7614_v14, %v2927_v57  ;;  %v3407_v57 = vld [vmem:[#allocation10 + $0x10] sm:$0xff] }
 0xa6e   :  { %v2938_v17 = vadd.f32 %v2858_v51, %v7589_v46 }
 0xa6f   :  { %v4366_v61 = vmul.f32 -1.442695, %v2931_v44 }
 0xa70   :  { %v4367_v20 = vmul.f32 -1.442695, %v2938_v17 }
 0xa71   :  { %6375 = vpow2.f32 %v4366_v61  ;;  %v3410_v61 = vld [vmem:[#allocation10 + $0x28] sm:$0xff] }
 0xa72   :  { %6377 = vpow2.f32 %v4367_v20  ;;  %v7716_v20 = vpack.c.bf16 %v3410_v61, %v3407_v57  ;;  %v3435_v57 = vld [vmem:[#allocation10 + $0xf0] sm:$0xff] }
 0xa7b   :  { %v6376_v50 = vpop.eup %6375 }
 0xa7c   :  { %v2935_v19 = vadd.f32 1.0, %v6376_v50  ;;  %v6378_v10 = vpop.eup %6377  ;;  %v3412_v50 = vld [vmem:[#allocation10 + $0x38] sm:$0xff] }
 0xa7d   :  { %v2942_v43 = vadd.f32 1.0, %v6378_v10 }
 0xa7e   :  { %6379 = vrcp.f32 %v2935_v19  ;;  %v3415_v19 = vld [vmem:[#allocation10 + $0x50] sm:$0xff] }
 0xa7f   :  { %6381 = vrcp.f32 %v2942_v43  ;;  %v7720_v10 = vpack.c.bf16 %v3415_v19, %v3412_v50  ;;  %v3411_v43 = vld [vmem:[#allocation10 + $0x30] sm:$0xff]  ;;  %v3438_v50 = vld [vmem:[#allocation10 + $0x108] sm:$0xff]  ;;  %v3437_v19 = vld [vmem:[#allocation10 + $0x100] sm:$0xff] }
 0xa88   :  { %v6380_v15 = vpop.eup %6379 }
 0xa89   :  { %v2946_v6 = vmul.f32 %v6380_v15, %v2945_v8  ;;  %v6382_v33 = vpop.eup %6381  ;;  %v3414_v8 = vld [vmem:[#allocation10 + $0x48] sm:$0xff]  ;;  %v3413_v15 = vld [vmem:[#allocation10 + $0x40] sm:$0xff] }
 0xa8a   :  { %v2949_v32 = vsub.f32 1.0, %v6382_v33  ;;  %v2951_v51 = vmul.f32 %v6382_v33, %v7617_v22 }
 0xa8b   :  { %v2947_v56 = vadd.f32 %v2946_v6, %v7538_v38  ;;  %v7723_v6 = vpack.c.bf16 %v3414_v8, %v3411_v43  ;;  %v3440_v43 = vld [vmem:[#allocation10 + $0x118] sm:$0xff]  ;;  %v7763_v8 = vpack.c.bf16 %v3438_v50, %v3435_v57 }
 0xa8d   :  { %6383 = vtanh.f32 %v2947_v56  ;;  %v3416_v56 = vld [vmem:[#allocation10 + $0x58] sm:$0xff] }
 0xa8e   :  { %v7726_v33 = vpack.c.bf16 %v3416_v56, %v3413_v15  ;;  %v7765_v15 = vpack.c.bf16 %v3440_v43, %v3437_v19  ;;  %v3442_v56 = vld [vmem:[#allocation10 + $0x128] sm:$0xff] }
 0xa97   :  { %v6384_v46 = vpop.eup %6383 }
 0xa98   :  { %v2950_v44 = vmul.f32 %v6384_v46, %v2949_v32  ;;  %v3418_v32 = vld [vmem:[#allocation10 + $0x68] sm:$0xff]  ;;  %v3421_v46 = vld [vmem:[#allocation10 + $0x80] sm:$0xff] }
 0xa9a   :  { %v7661_v45 = vadd.f32 %v2951_v51, %v2950_v44  ;;  %v7730_v44 = vpack.c.bf16 %v3421_v46, %v3418_v32  ;;  %v3417_v51 = vld [vmem:[#allocation10 + $0x60] sm:$0xff] }
 0xa9b   :  { %v3445_v32 = vld [vmem:[#allocation10 + $0x140] sm:$0xff] }
 0xa9c   :  { %3076 = vmatmul.mubr.f32.vlgmr.msra.gmra.mrb[52].mxu0 %v7661_v45  ;;  %5129 = vmatmul.mubr.f32.vlgmr.msra.gmra.mrb[36].mxu1 %v7661_v45  ;;  %v3441_v46 = vld [vmem:[#allocation10 + $0x120] sm:$0xff] }
 0xa9d   :  { %5997 = vmatpush1.bf16.msra.mxu0 %v7348_v24  ;;  %6028 = vmatpush3.bf16.msra.mxu1 %v7360_v53 }
 0xa9e   :  { %5999 = vmatprep.subr.bf16.mxu0 %v7353_v30  ;;  %6029 = vmatprep.subr.bf16.mxu1 %v7991_v49 }
 0xa9f   :  { %3296 = vmatprep.mubr.f32.mxu0 %v7992_v27  ;;  %5163 = vmatprep.mubr.msk.f32.mxu1 %vm6547_vm1, %v7992_v27 }
 0xaa1   :  { %6001 = vmatpush1.bf16.msra.mxu0 %v7365_v12  ;;  %6031 = vmatpush3.bf16.msra.mxu1 %v7373_v25 }
 0xaa2   :  { %6003 = vmatprep.subr.bf16.mxu0 %v7370_v48  ;;  %6032 = vmatprep.subr.bf16.mxu1 %v7991_v49 }
 0xaa5   :  { %6005 = vmatpush1.bf16.msra.mxu0 %v7379_v36  ;;  %6034 = vmatpush3.bf16.msra.mxu1 %v7387_v62 }
 0xaa6   :  { %6007 = vmatprep.subr.bf16.mxu0 %v7384_v31  ;;  %6035 = vmatprep.subr.bf16.mxu1 %v7991_v49 }
 0xaa9   :  { %6009 = vmatpush1.bf16.msra.mxu0 %v7393_v3  ;;  %6037 = vmatpush3.bf16.msra.mxu1 %v7401_v9 }
 0xaaa   :  { %6011 = vmatprep.subr.bf16.mxu0 %v7397_v29  ;;  %6038 = vmatprep.subr.bf16.mxu1 %v7991_v49 }
 0xaad   :  { %6013 = vmatpush1.bf16.msra.mxu0 %v7407_v26  ;;  %6040 = vmatpush3.bf16.msra.mxu1 %v7414_v5 }
 0xaae   :  { %6015 = vmatprep.subr.bf16.mxu0 %v7411_v34  ;;  %6041 = vmatprep.subr.bf16.mxu1 %v7991_v49 }
 0xab1   :  { %6017 = vmatpush1.bf16.msra.mxu0 %v7422_v35  ;;  %6043 = vmatpush3.bf16.msra.mxu1 %v7428_v60 }
 0xab2   :  { %6019 = vmatprep.subr.bf16.mxu0 %v7425_v28  ;;  %6044 = vmatprep.subr.bf16.mxu1 %v7991_v49 }
 0xab5   :  { %6021 = vmatpush1.bf16.msra.mxu0 %v7434_v58  ;;  %6046 = vmatpush3.bf16.msra.mxu1 %v7440_v11 }
 0xab6   :  { %6023 = vmatprep.subr.bf16.mxu0 %v7437_v4  ;;  %6047 = vmatprep.subr.bf16.mxu1 %v7991_v49 }
 0xab9   :  { %6025 = vmatpush1.bf16.msra.mxu0 %v7446_v39  ;;  %6049 = vmatpush3.bf16.msra.mxu1 %v7450_v13  ;;  %v3406_v13 = vld [vmem:[#allocation10 + $0x8] sm:$0xff] }
 0xaba   :  { %6082 = vmatprep.subr.bf16.mxu1 %v7991_v49 }
 0xb6f   :  { %v3077_v24 = vpop.f32.mrb[52].mxu0  ;;  %v3148_v30 = vpop.f32.mrb[36].mxu1 }
 0xb70   :  { %v3152_v53 = vadd.f32 %v3077_v24, %v7564_v40  ;;  %v3079_v12 = vpop.f32.mrb[53].mxu0  ;;  %v5130_v48 = vpop.f32.mrb[37].mxu1  ;;  %v3166_v26 = vadd.f32 %v7614_v14, %v3148_v30  ;;  %v3405_v40 = vld [vmem:[#allocation10] sm:$0xff]  ;;  %v3420_v24 = vld [vmem:[#allocation10 + $0x78] sm:$0xff]  ;;  %v3419_v30 = vld [vmem:[#allocation10 + $0x70] sm:$0xff] }
 0xb71   :  { %v3159_v25 = vadd.f32 %v3079_v12, %v7572_v54  ;;  %v3408_v54 = vld [vmem:[#allocation10 + $0x18] sm:$0xff]  ;;  %v3422_v12 = vld [vmem:[#allocation10 + $0x88] sm:$0xff] }
 0xb72   :  { %v4368_v36 = vmul.f32 -1.442695, %v3152_v53  ;;  %v7713_v17 = vpack.c.bf16 %v3408_v54, %v3405_v40  ;;  %v7733_v53 = vpack.c.bf16 %v3420_v24, %v3417_v51  ;;  %v7736_v48 = vpack.c.bf16 %v3422_v12, %v3419_v30  ;;  %v3436_v40 = vld [vmem:[#allocation10 + $0xf8] sm:$0xff]  ;;  %v3439_v54 = vld [vmem:[#allocation10 + $0x110] sm:$0xff]  ;;  %v3446_v12 = vld [vmem:[#allocation10 + $0x148] sm:$0xff] }
 0xb73   :  { %v4369_v31 = vmul.f32 -1.442695, %v3159_v25  ;;  %v3424_v25 = vld [vmem:[#allocation10 + $0x98] sm:$0xff]  ;;  %v7760_v61 = vpack.c.bf16 %v3439_v54, %v3436_v40  ;;  %v7768_v51 = vpack.c.bf16 %v3445_v32, %v3442_v56  ;;  %v3443_v30 = vld [vmem:[#allocation10 + $0x130] sm:$0xff] }
 0xb74   :  { %6385 = vpow2.f32 %v4368_v36  ;;  %v3427_v36 = vld [vmem:[#allocation10 + $0xb0] sm:$0xff]  ;;  %v3444_v24 = vld [vmem:[#allocation10 + $0x138] sm:$0xff] }
 0xb75   :  { %6387 = vpow2.f32 %v4369_v31  ;;  %v7740_v31 = vpack.c.bf16 %v3427_v36, %v3424_v25  ;;  %v7771_v25 = vpack.c.bf16 %v3444_v24, %v3441_v46  ;;  %v3448_v36 = vld [vmem:[#allocation10 + $0x158] sm:$0xff] }
 0xb7e   :  { %v6386_v62 = vpop.eup %6385 }
 0xb7f   :  { %v3156_v3 = vadd.f32 1.0, %v6386_v62  ;;  %v6388_v29 = vpop.eup %6387  ;;  %v3423_v62 = vld [vmem:[#allocation10 + $0x90] sm:$0xff] }
 0xb80   :  { %v3163_v9 = vadd.f32 1.0, %v6388_v29  ;;  %v3425_v29 = vld [vmem:[#allocation10 + $0xa0] sm:$0xff] }
 0xb81   :  { %6389 = vrcp.f32 %v3156_v3  ;;  %v3426_v3 = vld [vmem:[#allocation10 + $0xa8] sm:$0xff] }
 0xb82   :  { %6391 = vrcp.f32 %v3163_v9  ;;  %v7743_v9 = vpack.c.bf16 %v3426_v3, %v3423_v62  ;;  %v3451_v62 = vld [vmem:[#allocation10 + $0x170] sm:$0xff]  ;;  %v7775_v3 = vpack.c.bf16 %v3446_v12, %v3443_v30 }
 0xb8b   :  { %v6390_v34 = vpop.eup %6389 }
 0xb8c   :  { %v3167_v5 = vmul.f32 %v6390_v34, %v3166_v26  ;;  %v6392_v28 = vpop.eup %6391  ;;  %v3428_v26 = vld [vmem:[#allocation10 + $0xb8] sm:$0xff] }
 0xb8d   :  { %v3170_v60 = vsub.f32 1.0, %v6392_v28  ;;  %v3172_v11 = vmul.f32 %v6392_v28, %v7661_v45  ;;  %v7746_v34 = vpack.c.bf16 %v3428_v26, %v3425_v29  ;;  %v7777_v29 = vpack.c.bf16 %v3451_v62, %v3448_v36  ;;  %v3447_v26 = vld [vmem:[#allocation10 + $0x150] sm:$0xff] }
 0xb8e   :  { %v3168_v35 = vadd.f32 %v3167_v5, %v7515_v0  ;;  %v3409_v0 = vld [vmem:[#allocation10 + $0x20] sm:$0xff]  ;;  %v3430_v5 = vld [vmem:[#allocation10 + $0xc8] sm:$0xff] }
 0xb8f   :  { %v7711_v38 = vpack.c.bf16 %v3409_v0, %v3406_v13  ;;  %v3434_v13 = vld [vmem:[#allocation10 + $0xe8] sm:$0xff] }
 0xb90   :  { %6393 = vtanh.f32 %v3168_v35  ;;  %v3433_v35 = vld [vmem:[#allocation10 + $0xe0] sm:$0xff] }
 0xb91   :  { %6051 = vmatprep.subr.bf16.mxu0 %v7711_v38  ;;  %v7750_v28 = vpack.c.bf16 %v3433_v35, %v3430_v5  ;;  %v3450_v5 = vld [vmem:[#allocation10 + $0x168] sm:$0xff]  ;;  %v3449_v35 = vld [vmem:[#allocation10 + $0x160] sm:$0xff] }
 0xb9a   :  { %v6394_v58 = vpop.eup %6393 }
 0xb9b   :  { %v3171_v4 = vmul.f32 %v6394_v58, %v3170_v60  ;;  %v3429_v60 = vld [vmem:[#allocation10 + $0xc0] sm:$0xff]  ;;  %v3432_v58 = vld [vmem:[#allocation10 + $0xd8] sm:$0xff] }
 0xb9d   :  { %v7704_v39 = vadd.f32 %v3172_v11, %v3171_v4  ;;  %v3431_v4 = vld [vmem:[#allocation10 + $0xd0] sm:$0xff]  ;;  %v7753_v11 = vpack.c.bf16 %v3432_v58, %v3429_v60  ;;  %v3452_v60 = vld [vmem:[#allocation10 + $0x178] sm:$0xff]  ;;  %v7781_v58 = vpack.c.bf16 %v3450_v5, %v3447_v26 }
 0xb9e   :  { %v7756_v0 = vpack.c.bf16 %v3434_v13, %v3431_v4  ;;  %v7785_v4 = vpack.c.bf16 %v3452_v60, %v3449_v35 }
 0xb9f   :  { %3297 = vmatmul.mubr.f32.vlgmr.msra.gmra.mrb[54].mxu0 %v7704_v39  ;;  %5164 = vmatmul.mubr.f32.vlgmr.msra.gmra.mrb[38].mxu1 %v7704_v39 }
 0xba0   :  { %3517 = vmatprep.mubr.f32.mxu0 %v7992_v27  ;;  %5198 = vmatprep.mubr.msk.f32.mxu1 %vm6547_vm1, %v7992_v27 }
 0xba1   :  { %6053 = vmatpush1.bf16.msra.mxu0 %v7713_v17  ;;  %6084 = vmatpush3.bf16.msra.mxu1 %v7716_v20 }
 0xba2   :  { %6085 = vmatprep.subr.bf16.mxu1 %v7991_v49  ;;  %6055 = vmatprep.subr.bf16.mxu0 %v7720_v10 }
 0xba5   :  { %6057 = vmatpush1.bf16.msra.mxu0 %v7723_v6  ;;  %6087 = vmatpush3.bf16.msra.mxu1 %v7726_v33 }
 0xba6   :  { %6088 = vmatprep.subr.bf16.mxu1 %v7991_v49  ;;  %6059 = vmatprep.subr.bf16.mxu0 %v7730_v44 }
 0xba9   :  { %6061 = vmatpush1.bf16.msra.mxu0 %v7733_v53  ;;  %6090 = vmatpush3.bf16.msra.mxu1 %v7736_v48 }
 0xbaa   :  { %6091 = vmatprep.subr.bf16.mxu1 %v7991_v49  ;;  %6063 = vmatprep.subr.bf16.mxu0 %v7740_v31 }
 0xbad   :  { %6065 = vmatpush1.bf16.msra.mxu0 %v7743_v9  ;;  %6093 = vmatpush3.bf16.msra.mxu1 %v7746_v34 }
 0xbae   :  { %6094 = vmatprep.subr.bf16.mxu1 %v7991_v49  ;;  %6067 = vmatprep.subr.bf16.mxu0 %v7750_v28 }
 0xbb1   :  { %6069 = vmatpush1.bf16.msra.mxu0 %v7753_v11  ;;  %6096 = vmatpush3.bf16.msra.mxu1 %v7756_v0 }
 0xbb2   :  { %6097 = vmatprep.subr.bf16.mxu1 %v7991_v49  ;;  %6071 = vmatprep.subr.bf16.mxu0 %v7760_v61 }
 0xbb5   :  { %6073 = vmatpush1.bf16.msra.mxu0 %v7763_v8  ;;  %6099 = vmatpush3.bf16.msra.mxu1 %v7765_v15 }
 0xbb6   :  { %6075 = vmatprep.subr.bf16.mxu0 %v7768_v51  ;;  %6100 = vmatprep.subr.bf16.mxu1 %v7991_v49 }
 0xbb9   :  { %6077 = vmatpush1.bf16.msra.mxu0 %v7771_v25  ;;  %6102 = vmatpush3.bf16.msra.mxu1 %v7775_v3 }
 0xbba   :  { %6079 = vmatprep.subr.bf16.mxu0 %v7777_v29  ;;  %6103 = vmatprep.subr.bf16.mxu1 %v7991_v49 }
 0xbbd   :  { %6081 = vmatpush1.bf16.msra.mxu0 %v7781_v58  ;;  %6105 = vmatpush3.bf16.msra.mxu1 %v7785_v4 }
 0xbbe   :  { %6107 = vmatprep.subr.bf16.mxu0 %v7711_v38  ;;  %6138 = vmatprep.subr.bf16.mxu1 %v7991_v49 }
 0xc72   :  { %v3298_v13 = vpop.f32.mrb[54].mxu0  ;;  %v3369_v40 = vpop.f32.mrb[38].mxu1 }
 0xc73   :  { %v3373_v54 = vadd.f32 %v3298_v13, %v7547_v59  ;;  %v3300_v57 = vpop.f32.mrb[55].mxu0  ;;  %v5165_v50 = vpop.f32.mrb[39].mxu1  ;;  %v3387_v12 = vadd.f32 %v7614_v14, %v3369_v40 }
 0xc74   :  { %v3380_v19 = vadd.f32 %v3300_v57, %v7555_v55 }
 0xc75   :  { %v4370_v43 = vmul.f32 -1.442695, %v3373_v54 }
 0xc76   :  { %v4371_v56 = vmul.f32 -1.442695, %v3380_v19 }
 0xc77   :  { %6395 = vpow2.f32 %v4370_v43 }
 0xc78   :  { %6397 = vpow2.f32 %v4371_v56 }
 0xc81   :  { %v6396_v32 = vpop.eup %6395 }
 0xc82   :  { %v3377_v46 = vadd.f32 1.0, %v6396_v32  ;;  %v6398_v24 = vpop.eup %6397 }
 0xc83   :  { %v3384_v30 = vadd.f32 1.0, %v6398_v24 }
 0xc84   :  { %6399 = vrcp.f32 %v3377_v46 }
 0xc85   :  { %6401 = vrcp.f32 %v3384_v30 }
 0xc8e   :  { %v6400_v36 = vpop.eup %6399 }
 0xc8f   :  { %v3388_v62 = vmul.f32 %v6400_v36, %v3387_v12  ;;  %v6402_v26 = vpop.eup %6401 }
 0xc90   :  { %v3391_v5 = vsub.f32 1.0, %v6402_v26  ;;  %v3393_v60 = vmul.f32 %v6402_v26, %v7704_v39 }
 0xc91   :  { %v3389_v59 = vadd.f32 %v3388_v62, %v7523_v16 }
 0xc93   :  { %6403 = vtanh.f32 %v3389_v59 }
 0xc9d   :  { %v6404_v55 = vpop.eup %6403 }
 0xc9e   :  { %v3392_v35 = vmul.f32 %v6404_v55, %v3391_v5 }
 0xca0   :  { %v7797_v13 = vadd.f32 %v3393_v60, %v3392_v35 }
 0xca2   :  { %3518 = vmatmul.mubr.f32.vlgmr.msra.gmra.mrb[56].mxu0 %v7797_v13  ;;  %5199 = vmatmul.mubr.f32.vlgmr.msra.gmra.mrb[40].mxu1 %v7797_v13 }
 0xca3   :  { %6109 = vmatpush1.bf16.msra.mxu0 %v7713_v17  ;;  %6140 = vmatpush3.bf16.msra.mxu1 %v7716_v20 }
 0xca4   :  { %6111 = vmatprep.subr.bf16.mxu0 %v7720_v10  ;;  %6141 = vmatprep.subr.bf16.mxu1 %v7991_v49 }
 0xca5   :  { %3738 = vmatprep.mubr.f32.mxu0 %v7992_v27  ;;  %5233 = vmatprep.mubr.msk.f32.mxu1 %vm6547_vm1, %v7992_v27 }
 0xca7   :  { %6113 = vmatpush1.bf16.msra.mxu0 %v7723_v6  ;;  %6143 = vmatpush3.bf16.msra.mxu1 %v7726_v33 }
 0xca8   :  { %6115 = vmatprep.subr.bf16.mxu0 %v7730_v44  ;;  %6144 = vmatprep.subr.bf16.mxu1 %v7991_v49 }
 0xcab   :  { %6117 = vmatpush1.bf16.msra.mxu0 %v7733_v53  ;;  %6146 = vmatpush3.bf16.msra.mxu1 %v7736_v48 }
 0xcac   :  { %6119 = vmatprep.subr.bf16.mxu0 %v7740_v31  ;;  %6147 = vmatprep.subr.bf16.mxu1 %v7991_v49 }
 0xcaf   :  { %6121 = vmatpush1.bf16.msra.mxu0 %v7743_v9  ;;  %6149 = vmatpush3.bf16.msra.mxu1 %v7746_v34 }
 0xcb0   :  { %6123 = vmatprep.subr.bf16.mxu0 %v7750_v28  ;;  %6150 = vmatprep.subr.bf16.mxu1 %v7991_v49 }
 0xcb3   :  { %6125 = vmatpush1.bf16.msra.mxu0 %v7753_v11  ;;  %6152 = vmatpush3.bf16.msra.mxu1 %v7756_v0 }
 0xcb4   :  { %6127 = vmatprep.subr.bf16.mxu0 %v7760_v61  ;;  %6153 = vmatprep.subr.bf16.mxu1 %v7991_v49 }
 0xcb7   :  { %6129 = vmatpush1.bf16.msra.mxu0 %v7763_v8  ;;  %6155 = vmatpush3.bf16.msra.mxu1 %v7765_v15 }
 0xcb8   :  { %6131 = vmatprep.subr.bf16.mxu0 %v7768_v51  ;;  %6156 = vmatprep.subr.bf16.mxu1 %v7991_v49 }
 0xcbb   :  { %6133 = vmatpush1.bf16.msra.mxu0 %v7771_v25  ;;  %6158 = vmatpush3.bf16.msra.mxu1 %v7775_v3 }
 0xcbc   :  { %6135 = vmatprep.subr.bf16.mxu0 %v7777_v29  ;;  %6159 = vmatprep.subr.bf16.mxu1 %v7991_v49 }
 0xcbf   :  { %6137 = vmatpush1.bf16.msra.mxu0 %v7781_v58  ;;  %6161 = vmatpush3.bf16.msra.mxu1 %v7785_v4 }
 0xcc0   :  { %6163 = vmatprep.subr.bf16.mxu0 %v7711_v38  ;;  %6194 = vmatprep.subr.bf16.mxu1 %v7991_v49 }
 0xd75   :  { %v3519_v16 = vpop.f32.mrb[56].mxu0  ;;  %v3590_v40 = vpop.f32.mrb[40].mxu1 }
 0xd76   :  { %v3594_v54 = vadd.f32 %v3519_v16, %v7551_v47  ;;  %v3521_v57 = vpop.f32.mrb[57].mxu0  ;;  %v5200_v50 = vpop.f32.mrb[41].mxu1  ;;  %v3608_v12 = vadd.f32 %v7614_v14, %v3590_v40 }
 0xd77   :  { %v3601_v19 = vadd.f32 %v3521_v57, %v7559_v41 }
 0xd78   :  { %v4372_v43 = vmul.f32 -1.442695, %v3594_v54 }
 0xd79   :  { %v4373_v56 = vmul.f32 -1.442695, %v3601_v19 }
 0xd7a   :  { %6405 = vpow2.f32 %v4372_v43 }
 0xd7b   :  { %6407 = vpow2.f32 %v4373_v56 }
 0xd84   :  { %v6406_v32 = vpop.eup %6405 }
 0xd85   :  { %v3598_v46 = vadd.f32 1.0, %v6406_v32  ;;  %v6408_v24 = vpop.eup %6407 }
 0xd86   :  { %v3605_v30 = vadd.f32 1.0, %v6408_v24 }
 0xd87   :  { %6409 = vrcp.f32 %v3598_v46 }
 0xd88   :  { %6411 = vrcp.f32 %v3605_v30 }
 0xd91   :  { %v6410_v36 = vpop.eup %6409 }
 0xd92   :  { %v3609_v62 = vmul.f32 %v6410_v36, %v3608_v12  ;;  %v6412_v59 = vpop.eup %6411 }
 0xd93   :  { %v3612_v26 = vsub.f32 1.0, %v6412_v59  ;;  %v3614_v55 = vmul.f32 %v6412_v59, %v7797_v13 }
 0xd94   :  { %v3610_v47 = vadd.f32 %v3609_v62, %v7527_v37 }
 0xd96   :  { %6413 = vtanh.f32 %v3610_v47 }
 0xda0   :  { %v6414_v41 = vpop.eup %6413 }
 0xda1   :  { %v3613_v5 = vmul.f32 %v6414_v41, %v3612_v26 }
 0xda3   :  { %v7841_v35 = vadd.f32 %v3614_v55, %v3613_v5 }
 0xda5   :  { %3739 = vmatmul.mubr.f32.vlgmr.msra.gmra.mrb[58].mxu0 %v7841_v35  ;;  %v4294_v60 = vsel %vm76_vm2, %v7797_v13, %v7841_v35  ;;  %v4298_v37 = vsel %vm76_vm2, %v7841_v35, %v7797_v13  ;;  %5234 = vmatmul.mubr.f32.vlgmr.msra.gmra.mrb[42].mxu1 %v7841_v35 }
 0xda6   :  { %4295 = vst [vmem:[#allocation11 + $0x38] sm:$0xff] %v4294_v60  ;;  %4299 = vst [vmem:[#allocation11 + $0x48] sm:$0xff] %v4298_v37  ;;  %6165 = vmatpush1.bf16.msra.mxu0 %v7713_v17  ;;  %6196 = vmatpush3.bf16.msra.mxu1 %v7716_v20 }
 0xda7   :  { %6167 = vmatprep.subr.bf16.mxu0 %v7720_v10  ;;  %6197 = vmatprep.subr.bf16.mxu1 %v7991_v49 }
 0xda8   :  { %3959 = vmatprep.mubr.f32.mxu0 %v7992_v27  ;;  %5268 = vmatprep.mubr.msk.f32.mxu1 %vm6547_vm1, %v7992_v27 }
 0xdaa   :  { %6169 = vmatpush1.bf16.msra.mxu0 %v7723_v6  ;;  %6199 = vmatpush3.bf16.msra.mxu1 %v7726_v33 }
 0xdab   :  { %6171 = vmatprep.subr.bf16.mxu0 %v7730_v44  ;;  %6200 = vmatprep.subr.bf16.mxu1 %v7991_v49 }
 0xdae   :  { %6173 = vmatpush1.bf16.msra.mxu0 %v7733_v53  ;;  %6202 = vmatpush3.bf16.msra.mxu1 %v7736_v48 }
 0xdaf   :  { %6175 = vmatprep.subr.bf16.mxu0 %v7740_v31  ;;  %6203 = vmatprep.subr.bf16.mxu1 %v7991_v49 }
 0xdb2   :  { %6177 = vmatpush1.bf16.msra.mxu0 %v7743_v9  ;;  %6205 = vmatpush3.bf16.msra.mxu1 %v7746_v34 }
 0xdb3   :  { %6179 = vmatprep.subr.bf16.mxu0 %v7750_v28  ;;  %6206 = vmatprep.subr.bf16.mxu1 %v7991_v49 }
 0xdb6   :  { %6181 = vmatpush1.bf16.msra.mxu0 %v7753_v11  ;;  %6208 = vmatpush3.bf16.msra.mxu1 %v7756_v0 }
 0xdb7   :  { %6183 = vmatprep.subr.bf16.mxu0 %v7760_v61  ;;  %6209 = vmatprep.subr.bf16.mxu1 %v7991_v49 }
 0xdba   :  { %6185 = vmatpush1.bf16.msra.mxu0 %v7763_v8  ;;  %6211 = vmatpush3.bf16.msra.mxu1 %v7765_v15 }
 0xdbb   :  { %6187 = vmatprep.subr.bf16.mxu0 %v7768_v51  ;;  %6212 = vmatprep.subr.bf16.mxu1 %v7991_v49 }
 0xdbe   :  { %6189 = vmatpush1.bf16.msra.mxu0 %v7771_v25  ;;  %6214 = vmatpush3.bf16.msra.mxu1 %v7775_v3 }
 0xdbf   :  { %6191 = vmatprep.subr.bf16.mxu0 %v7777_v29  ;;  %6215 = vmatprep.subr.bf16.mxu1 %v7991_v49 }
 0xdc2   :  { %6193 = vmatpush1.bf16.msra.mxu0 %v7781_v58  ;;  %6217 = vmatpush3.bf16.msra.mxu1 %v7785_v4 }
 0xdc3   :  { %6219 = vmatprep.subr.bf16.mxu0 %v7711_v38  ;;  %6250 = vmatprep.subr.bf16.mxu1 %v7991_v49 }
 0xe78   :  { %v3740_v13 = vpop.f32.mrb[58].mxu0  ;;  %v3811_v16 = vpop.f32.mrb[42].mxu1 }
 0xe79   :  { %v3815_v40 = vadd.f32 %v3740_v13, %v7568_v23  ;;  %v3742_v54 = vpop.f32.mrb[59].mxu0  ;;  %v5235_v57 = vpop.f32.mrb[43].mxu1  ;;  %v3829_v38 = vadd.f32 %v7614_v14, %v3811_v16 }
 0xe7a   :  { %v3822_v50 = vadd.f32 %v3742_v54, %v7576_v18  ;;  %v7998_v57 = vld [vmem:[#allocation15_spill] sm:$0xff] }
 0xe7b   :  { %v4374_v19 = vmul.f32 -1.442695, %v3815_v40 }
 0xe7c   :  { %v4375_v43 = vmul.f32 -1.442695, %v3822_v50 }
 0xe7d   :  { %6415 = vpow2.f32 %v4374_v19 }
 0xe7e   :  { %6417 = vpow2.f32 %v4375_v43 }
 0xe87   :  { %v6416_v56 = vpop.eup %6415 }
 0xe88   :  { %v3819_v32 = vadd.f32 1.0, %v6416_v56  ;;  %v6418_v46 = vpop.eup %6417 }
 0xe89   :  { %v3826_v24 = vadd.f32 1.0, %v6418_v46 }
 0xe8a   :  { %6419 = vrcp.f32 %v3819_v32 }
 0xe8b   :  { %6421 = vrcp.f32 %v3826_v24 }
 0xe94   :  { %v6420_v30 = vpop.eup %6419 }
 0xe95   :  { %v3830_v12 = vmul.f32 %v6420_v30, %v3829_v38  ;;  %v6422_v36 = vpop.eup %6421 }
 0xe96   :  { %v3833_v62 = vsub.f32 1.0, %v6422_v36  ;;  %v3835_v59 = vmul.f32 %v6422_v36, %v7841_v35 }
 0xe97   :  { %v3831_v23 = vadd.f32 %v3830_v12, %v7519_v63 }
 0xe99   :  { %6423 = vtanh.f32 %v3831_v23 }
 0xea3   :  { %v6424_v18 = vpop.eup %6423 }
 0xea4   :  { %v3834_v47 = vmul.f32 %v6424_v18, %v3833_v62 }
 0xea6   :  { %v7893_v26 = vadd.f32 %v3835_v59, %v3834_v47 }
 0xea8   :  { %3960 = vmatmul.mubr.f32.vlgmr.msra.gmra.mrb[60].mxu0 %v7893_v26  ;;  %v4290_v41 = vsel %vm76_vm2, %v7704_v39, %v7893_v26  ;;  %v4302_v63 = vsel %vm76_vm2, %v7893_v26, %v7704_v39  ;;  %5269 = vmatmul.mubr.f32.vlgmr.msra.gmra.mrb[44].mxu1 %v7893_v26 }
 0xea9   :  { %4291 = vst [vmem:[#allocation11 + $0x28] sm:$0xff] %v4290_v41  ;;  %4303 = vst [vmem:[#allocation11 + $0x58] sm:$0xff] %v4302_v63  ;;  %6221 = vmatpush1.bf16.msra.mxu0 %v7713_v17  ;;  %6252 = vmatpush3.bf16.msra.mxu1 %v7716_v20 }
 0xeaa   :  { %6223 = vmatprep.subr.bf16.mxu0 %v7720_v10  ;;  %6253 = vmatprep.subr.bf16.mxu1 %v7991_v49 }
 0xeab   :  { %4180 = vmatprep.mubr.f32.mxu0 %v7992_v27  ;;  %5303 = vmatprep.mubr.msk.f32.mxu1 %vm6547_vm1, %v7992_v27 }
 0xead   :  { %6225 = vmatpush1.bf16.msra.mxu0 %v7723_v6  ;;  %6255 = vmatpush3.bf16.msra.mxu1 %v7726_v33 }
 0xeae   :  { %6227 = vmatprep.subr.bf16.mxu0 %v7730_v44  ;;  %6256 = vmatprep.subr.bf16.mxu1 %v7991_v49 }
 0xeb1   :  { %6229 = vmatpush1.bf16.msra.mxu0 %v7733_v53  ;;  %6258 = vmatpush3.bf16.msra.mxu1 %v7736_v48 }
 0xeb2   :  { %6231 = vmatprep.subr.bf16.mxu0 %v7740_v31  ;;  %6259 = vmatprep.subr.bf16.mxu1 %v7991_v49 }
 0xeb5   :  { %6233 = vmatpush1.bf16.msra.mxu0 %v7743_v9  ;;  %6261 = vmatpush3.bf16.msra.mxu1 %v7746_v34 }
 0xeb6   :  { %6235 = vmatprep.subr.bf16.mxu0 %v7750_v28  ;;  %6262 = vmatprep.subr.bf16.mxu1 %v7991_v49 }
 0xeb9   :  { %6237 = vmatpush1.bf16.msra.mxu0 %v7753_v11  ;;  %6264 = vmatpush3.bf16.msra.mxu1 %v7756_v0 }
 0xeba   :  { %6239 = vmatprep.subr.bf16.mxu0 %v7760_v61  ;;  %6265 = vmatprep.subr.bf16.mxu1 %v7991_v49 }
 0xebd   :  { %6241 = vmatpush1.bf16.msra.mxu0 %v7763_v8  ;;  %6267 = vmatpush3.bf16.msra.mxu1 %v7765_v15 }
 0xebe   :  { %6243 = vmatprep.subr.bf16.mxu0 %v7768_v51  ;;  %6268 = vmatprep.subr.bf16.mxu1 %v7991_v49 }
 0xec1   :  { %6245 = vmatpush1.bf16.msra.mxu0 %v7771_v25  ;;  %6270 = vmatpush3.bf16.msra.mxu1 %v7775_v3 }
 0xec2   :  { %6247 = vmatprep.subr.bf16.mxu0 %v7777_v29  ;;  %6271 = vmatprep.subr.bf16.mxu1 %v7991_v49 }
 0xec5   :  { %6249 = vmatpush1.bf16.msra.mxu0 %v7781_v58  ;;  %6273 = vmatpush3.bf16.msra.mxu1 %v7785_v4 }
 0xf7b   :  { %v3961_v27 = vpop.f32.mrb[60].mxu0  ;;  %v4032_v39 = vpop.f32.mrb[44].mxu1 }
 0xf7c   :  { %v4036_v17 = vadd.f32 %v3961_v27, %v7585_v1  ;;  %v3963_v20 = vpop.f32.mrb[61].mxu0  ;;  %v5270_v10 = vpop.f32.mrb[45].mxu1  ;;  %v4050_v9 = vadd.f32 %v7614_v14, %v4032_v39 }
 0xf7d   :  { %v4043_v6 = vadd.f32 %v3963_v20, %v7593_v42 }
 0xf7e   :  { %v4376_v33 = vmul.f32 -1.442695, %v4036_v17 }
 0xf7f   :  { %v4377_v44 = vmul.f32 -1.442695, %v4043_v6 }
 0xf80   :  { %6425 = vpow2.f32 %v4376_v33 }
 0xf81   :  { %6427 = vpow2.f32 %v4377_v44 }
 0xf8a   :  { %v6426_v53 = vpop.eup %6425 }
 0xf8b   :  { %v4040_v48 = vadd.f32 1.0, %v6426_v53  ;;  %v6428_v49 = vpop.eup %6427 }
 0xf8c   :  { %v4047_v31 = vadd.f32 1.0, %v6428_v49 }
 0xf8d   :  { %6429 = vrcp.f32 %v4040_v48 }
 0xf8e   :  { %6431 = vrcp.f32 %v4047_v31 }
 0xf97   :  { %v6430_v34 = vpop.eup %6429 }
 0xf98   :  { %v4051_v28 = vmul.f32 %v6430_v34, %v4050_v9  ;;  %v6432_v11 = vpop.eup %6431 }
 0xf99   :  { %v4054_v0 = vsub.f32 1.0, %v6432_v11  ;;  %v4056_v8 = vmul.f32 %v6432_v11, %v7893_v26 }
 0xf9a   :  { %v4052_v1 = vadd.f32 %v4051_v28, %v7542_v52 }
 0xf9c   :  { %6433 = vtanh.f32 %v4052_v1 }
 0xfa6   :  { %v6434_v42 = vpop.eup %6433 }
 0xfa7   :  { %v4055_v61 = vmul.f32 %v6434_v42, %v4054_v0 }
 0xfa9   :  { %v4057_v15 = vadd.f32 %v4056_v8, %v4055_v61 }
 0xfab   :  { %4181 = vmatmul.mubr.f32.vlgmr.msra.gmra.mrb[62].mxu0 %v4057_v15  ;;  %v4286_v51 = vsel %vm76_vm2, %v7661_v45, %v4057_v15  ;;  %v4306_v25 = vsel %vm76_vm2, %v4057_v15, %v7661_v45  ;;  %5304 = vmatmul.mubr.f32.vlgmr.msra.gmra.mrb[46].mxu1 %v4057_v15 }
 0xfac   :  { %4287 = vst [vmem:[#allocation11 + $0x18] sm:$0xff] %v4286_v51  ;;  %4307 = vst [vmem:[#allocation11 + $0x68] sm:$0xff] %v4306_v25 }
0x107e   :  { %v4182_v52 = vpop.f32.mrb[62].mxu0  ;;  %v4253_v3 = vpop.f32.mrb[46].mxu1 }
0x107f   :  { %v4257_v29 = vadd.f32 %v4182_v52, %v7603_v2  ;;  %v4184_v58 = vpop.f32.mrb[63].mxu0  ;;  %v5305_v4 = vpop.f32.mrb[47].mxu1  ;;  %v4271_v16 = vadd.f32 %v7614_v14, %v4253_v3 }
0x1080   :  { %v4264_v5 = vadd.f32 %v4184_v58, %v7609_v21 }
0x1081   :  { %v4378_v55 = vmul.f32 -1.442695, %v4257_v29 }
0x1082   :  { %v4379_v35 = vmul.f32 -1.442695, %v4264_v5 }
0x1083   :  { %6435 = vpow2.f32 %v4378_v55 }
0x1084   :  { %6437 = vpow2.f32 %v4379_v35 }
0x108d   :  { %v6436_v60 = vpop.eup %6435 }
0x108e   :  { %v4261_v37 = vadd.f32 1.0, %v6436_v60  ;;  %v6438_v13 = vpop.eup %6437 }
0x108f   :  { %v4268_v45 = vadd.f32 1.0, %v6438_v13 }
0x1090   :  { %6439 = vrcp.f32 %v4261_v37 }
0x1091   :  { %6441 = vrcp.f32 %v4268_v45 }
0x109a   :  { %v6440_v40 = vpop.eup %6439 }
0x109b   :  { %v4272_v54 = vmul.f32 %v6440_v40, %v4271_v16  ;;  %v6442_v50 = vpop.eup %6441 }
0x109c   :  { %v4275_v19 = vsub.f32 1.0, %v6442_v50  ;;  %v4277_v56 = vmul.f32 %v6442_v50, %v4057_v15 }
0x109d   :  { %v4273_v2 = vadd.f32 %v4272_v54, %v7998_v57 }
0x109f   :  { %6443 = vtanh.f32 %v4273_v2 }
0x10a9   :  { %v6444_v21 = vpop.eup %6443 }
0x10aa   :  { %v4276_v43 = vmul.f32 %v6444_v21, %v4275_v19 }
0x10ac   :  { %v4278_v32 = vadd.f32 %v4277_v56, %v4276_v43 }
0x10ae   :  { %v4282_v46 = vsel %vm76_vm2, %v7617_v22, %v4278_v32  ;;  %v4310_v14 = vsel %vm76_vm2, %v4278_v32, %v7617_v22 }
0x10af   :  { %4283 = vst [vmem:[#allocation11 + $0x8] sm:$0xff] %v4282_v46  ;;  %4311 = vst [vmem:[#allocation11 + $0x78] sm:$0xff] %v4310_v14 }
0x10b0   :  { %6523 = shalt.err (!%p6520_p0)
}
0x10b1   :  { %s6524_s15 = scalar_lea.hbm %s7980_s9, 2048 }
0x10b2   :  { %p6525_p1 = scmp.ne.s32.totalorder %s7980_s9, %s6524_s15  ;;  %p6528_p2 = scmp.lt.u32.totalorder %s6524_s15, %s7980_s9 }
0x10b4   :  { %p6530_p3 = pnand %p6528_p2, %p6525_p1 }
0x10b6   :  { %6533 = shalt.err (!%p6530_p3)
}
0x10b7   :  { %s6549_s19 = smov 256   ;;  %s6550_s20 = smov 16  }
0x10b8   :  { %4323 = dma.vmem_to_hbm [thread:$0]  %s4318_s13, 2048, %s7980_s9, [#allocation7], %s6549_s19, %s6549_s19, %s6550_s20  }
0x10b9   :  { %6538 = dma.done.wait [#allocation7], 2048  }
0x10ba   :  { %6539 = vsyncadd [#allocation7], 4294965248 }
0x10bb   :  { %4327 = vsyncpa [#allocation6], 1 }
0x10bc   :  { %4328 = vsyncpa [#allocation9], 1 }
0x10bd   :  { %4329 = vsyncpa [#allocation7], 1 }

</bundles_post_ra>
